<compile_context>
chip_gen: v7x
topology: tpu7x:2x2x1
jax: 0.10.0
libtpu: 0.0.40
codegen_flags: <defaults>
</compile_context>

<pallas_src>
import functools

import jax
import jax.numpy as jnp
from jax.experimental import pallas as pl
from jax.experimental.pallas import tpu as pltpu

INPUT_DIM = 784
IN_PAD = 896            # 7 * 128 — lane-dense padding of the 784-wide image
HIDDEN_DIM = 512
HIDDEN2 = 256
LATENT_DIM = 50
LAT_PAD = 128           # latent padded to one full lane tile
BN_EPS = 1e-5


def _linear(h, w_ref, b_ref):
    # bf16 operands on the MXU, f32 accumulation, f32 bias add.
    # astype is a no-op when h is already bf16 (x input, _bn_relu outputs).
    return jnp.dot(h.astype(jnp.bfloat16), w_ref[...],
                   preferred_element_type=jnp.float32) + b_ref[...]


def _bn_relu(h, g_ref, be_ref, inv_n, row_mask):
    # BatchNorm1d (training mode: biased batch stats) + ReLU.
    # Stats in f32 with the centered form E[(h-mean)^2] (matches PyTorch,
    # avoids E[h^2]-mean^2 cancellation). Output is cast to bf16 so the next
    # matmul consumes it directly and no f32 activation copy stays live.
    if row_mask is None:
        mean = jnp.sum(h, axis=0, keepdims=True) * inv_n
        hc = h - mean
        var = jnp.sum(hc * hc, axis=0, keepdims=True) * inv_n
    else:
        mean = jnp.sum(h * row_mask, axis=0, keepdims=True) * inv_n
        hc = h - mean
        hcm = hc * row_mask           # mask padded rows out of the var sum
        var = jnp.sum(hcm * hcm, axis=0, keepdims=True) * inv_n
    hn = hc * jax.lax.rsqrt(var + BN_EPS)
    return jnp.maximum(hn * g_ref[...] + be_ref[...], 0.0).astype(jnp.bfloat16)


def vae_kernel(
    x_ref, eps_ref,
    w1, b1, g1, be1,
    w2, b2, g2, be2,
    wml, bml,
    w3, b3, g3, be3,
    w4, b4, g4, be4,
    w5, b5,
    recon_ref, mulv_ref,
    *, n_valid,
):
    b_pad = x_ref.shape[0]
    inv_n = 1.0 / float(n_valid)
    if b_pad > n_valid:
        # Mask out sublane-padding rows so BN statistics use the real batch.
        row_mask = (jax.lax.broadcasted_iota(jnp.int32, (b_pad, 1), 0)
                    < n_valid).astype(jnp.float32)
    else:
        row_mask = None

    x = x_ref[...]                                           # (B, 896) bf16

    # ---------------- encoder ----------------
    h1 = _bn_relu(_linear(x, w1, b1), g1, be1, inv_n, row_mask)    # (B, 512) bf16
    h2 = _bn_relu(_linear(h1, w2, b2), g2, be2, inv_n, row_mask)   # (B, 256) bf16

    # Fused fc_mu / fc_logvar: one K=256, N=256 matmul; cols [0:128) hold the
    # zero-padded mu, cols [128:256) the zero-padded logvar.
    mulv = _linear(h2, wml, bml)                             # (B, 256) f32
    mulv_ref[...] = mulv                                     # lane-dense store
    mu_p = mulv[:, :LAT_PAD]                                 # 128-aligned slice
    logvar_p = mulv[:, LAT_PAD:]

    # ---------------- reparameterize ----------------
    # Padded latent columns stay exactly zero: zero weight/bias and zero eps.
    z = mu_p + eps_ref[...] * jnp.exp(0.5 * logvar_p)        # (B, 128) f32

    # ---------------- decoder ----------------
    h3 = _bn_relu(_linear(z, w3, b3), g3, be3, inv_n, row_mask)    # (B, 256) bf16
    h4 = _bn_relu(_linear(h3, w4, b4), g4, be4, inv_n, row_mask)   # (B, 512) bf16
    # Sigmoid in f32 (safe on all generations), bf16 store halves recon DMA.
    recon_ref[...] = jax.nn.sigmoid(_linear(h4, w5, b5)).astype(recon_ref.dtype)


def _uniform(key, shape, fan_in):
    bound = 1.0 / float(fan_in) ** 0.5
    return jax.random.uniform(key, shape, jnp.float32, -bound, bound)


def init_params(key):
    """Kernel-ready parameters.

    Mimics PyTorch Linear default init U(-1/sqrt(fan_in), 1/sqrt(fan_in)),
    stores matmul weights pre-transposed to (in, out), zero-padded to
    lane-dense shapes, and cast to bf16. Biases and BN affine stay f32.
    """
    ks = jax.random.split(key, 14)
    w1 = _uniform(ks[0], (INPUT_DIM, HIDDEN_DIM), INPUT_DIM)
    b1 = _uniform(ks[1], (1, HIDDEN_DIM), INPUT_DIM)
    w2 = _uniform(ks[2], (HIDDEN_DIM, HIDDEN2), HIDDEN_DIM)
    b2 = _uniform(ks[3], (1, HIDDEN2), HIDDEN_DIM)
    wmu = _uniform(ks[4], (HIDDEN2, LATENT_DIM), HIDDEN2)
    bmu = _uniform(ks[5], (1, LATENT_DIM), HIDDEN2)
    wlv = _uniform(ks[6], (HIDDEN2, LATENT_DIM), HIDDEN2)
    blv = _uniform(ks[7], (1, LATENT_DIM), HIDDEN2)
    w3 = _uniform(ks[8], (LATENT_DIM, HIDDEN2), LATENT_DIM)
    b3 = _uniform(ks[9], (1, HIDDEN2), LATENT_DIM)
    w4 = _uniform(ks[10], (HIDDEN2, HIDDEN_DIM), HIDDEN2)
    b4 = _uniform(ks[11], (1, HIDDEN_DIM), HIDDEN2)
    w5 = _uniform(ks[12], (HIDDEN_DIM, INPUT_DIM), HIDDEN_DIM)
    b5 = _uniform(ks[13], (1, INPUT_DIM), HIDDEN_DIM)

    p = {}
    # fc1: pad K 784 -> 896 with zero rows (input is zero-padded to match).
    p["fc1_w"] = (jnp.zeros((IN_PAD, HIDDEN_DIM), jnp.float32)
                  .at[:INPUT_DIM].set(w1).astype(jnp.bfloat16))
    p["fc1_b"] = b1
    p["fc2_w"] = w2.astype(jnp.bfloat16)
    p["fc2_b"] = b2
    # fused fc_mu / fc_logvar: (256, 256) with two zero-padded 128-wide halves.
    wml = (jnp.zeros((HIDDEN2, 2 * LAT_PAD), jnp.float32)
           .at[:, :LATENT_DIM].set(wmu)
           .at[:, LAT_PAD:LAT_PAD + LATENT_DIM].set(wlv))
    bml = (jnp.zeros((1, 2 * LAT_PAD), jnp.float32)
           .at[:, :LATENT_DIM].set(bmu)
           .at[:, LAT_PAD:LAT_PAD + LATENT_DIM].set(blv))
    p["fc_mulv_w"] = wml.astype(jnp.bfloat16)
    p["fc_mulv_b"] = bml
    # fc3: pad K 50 -> 128 with zero rows (padded z columns are zero anyway).
    p["fc3_w"] = (jnp.zeros((LAT_PAD, HIDDEN2), jnp.float32)
                  .at[:LATENT_DIM].set(w3).astype(jnp.bfloat16))
    p["fc3_b"] = b3
    p["fc4_w"] = w4.astype(jnp.bfloat16)
    p["fc4_b"] = b4
    # fc5: pad N 784 -> 896 with zero cols; recon is sliced back in the wrapper.
    p["fc5_w"] = (jnp.zeros((HIDDEN_DIM, IN_PAD), jnp.float32)
                  .at[:, :INPUT_DIM].set(w5).astype(jnp.bfloat16))
    p["fc5_b"] = jnp.zeros((1, IN_PAD), jnp.float32).at[:, :INPUT_DIM].set(b5)
    for name, dim in [("bn1", HIDDEN_DIM), ("bn2", HIDDEN2),
                      ("bn3", HIDDEN2), ("bn4", HIDDEN_DIM)]:
        p[name + "_g"] = jnp.ones((1, dim), jnp.float32)
        p[name + "_b"] = jnp.zeros((1, dim), jnp.float32)

    # Padded-latent invariant: these zero regions must stay in sync with the
    # zero eps padding done in vae_forward, or z's padded lanes go nonzero.
    assert not bool(jnp.any(p["fc_mulv_w"][:, LATENT_DIM:LAT_PAD]))
    assert not bool(jnp.any(p["fc_mulv_w"][:, LAT_PAD + LATENT_DIM:]))
    assert not bool(jnp.any(p["fc_mulv_b"][:, LATENT_DIM:LAT_PAD]))
    assert not bool(jnp.any(p["fc_mulv_b"][:, LAT_PAD + LATENT_DIM:]))
    assert not bool(jnp.any(p["fc3_w"][LATENT_DIM:]))
    return p


def _vmem_limit_bytes():
    # Per-generation VMEM cap: ~3/4 of physical (≈96 MiB on v5e/v6e's 128 MiB,
    # ≈48 MiB on v7x's 64 MiB) instead of baking in a single number.
    cap = 128 << 20
    try:
        cap = int(getattr(pltpu.get_tpu_info(), "vmem_capacity_bytes", cap))
    except Exception:
        pass
    return (cap * 3) // 4


@jax.jit
def vae_forward(x_nchw, eps, params):
    b = x_nchw.shape[0]
    b_pad = ((b + 7) // 8) * 8                       # sublane-aligned batch
    # bf16 transport for the widest input: halves the x DMA and VMEM residency
    # (the kernel multiplies it in bf16 anyway).
    x = x_nchw.reshape(b, INPUT_DIM).astype(jnp.bfloat16)    # x.view(-1, 784)
    x = jnp.pad(x, ((0, b_pad - b), (0, IN_PAD - INPUT_DIM)))
    eps_p = jnp.pad(eps.astype(jnp.float32),
                    ((0, b_pad - b), (0, LAT_PAD - LATENT_DIM)))

    p = params
    inputs = (
        x, eps_p,
        p["fc1_w"], p["fc1_b"], p["bn1_g"], p["bn1_b"],
        p["fc2_w"], p["fc2_b"], p["bn2_g"], p["bn2_b"],
        p["fc_mulv_w"], p["fc_mulv_b"],
        p["fc3_w"], p["fc3_b"], p["bn3_g"], p["bn3_b"],
        p["fc4_w"], p["fc4_b"], p["bn4_g"], p["bn4_b"],
        p["fc5_w"], p["fc5_b"],
    )

    # Advisory cost estimate so XLA schedules the surrounding pad/slice (and any
    # downstream loss) around the custom call instead of treating it as opaque.
    flops = 2 * b_pad * (IN_PAD * HIDDEN_DIM + HIDDEN_DIM * HIDDEN2
                         + HIDDEN2 * 2 * LAT_PAD + LAT_PAD * HIDDEN2
                         + HIDDEN2 * HIDDEN_DIM + HIDDEN_DIM * IN_PAD)
    transcendentals = b_pad * (LAT_PAD + IN_PAD) + 4 * (HIDDEN_DIM + HIDDEN2)
    in_bytes = sum(int(a.size) * a.dtype.itemsize for a in inputs)
    out_bytes = b_pad * IN_PAD * 2 + b_pad * 2 * LAT_PAD * 4
    cost = pl.CostEstimate(flops=int(flops),
                           transcendentals=int(transcendentals),
                           bytes_accessed=int(in_bytes + out_bytes))

    vmem = pl.BlockSpec(memory_space=pltpu.MemorySpace.VMEM)
    recon_pad, mulv = pl.pallas_call(
        functools.partial(vae_kernel, n_valid=b),
        out_shape=(
            jax.ShapeDtypeStruct((b_pad, IN_PAD), jnp.bfloat16),      # recon pad
            jax.ShapeDtypeStruct((b_pad, 2 * LAT_PAD), jnp.float32),  # mu|logvar
        ),
        in_specs=[vmem] * len(inputs),
        out_specs=(vmem, vmem),
        compiler_params=pltpu.CompilerParams(
            vmem_limit_bytes=_vmem_limit_bytes()),
        cost_estimate=cost,
    )(*inputs)

    recon = recon_pad[:b, :INPUT_DIM]
    mu = mulv[:b, :LATENT_DIM]
    logvar = mulv[:b, LAT_PAD:LAT_PAD + LATENT_DIM]
    return recon, mu, logvar


def _reference(x_nchw, eps, p):
    # Pure-JAX reference mirroring the kernel's numerics (bf16 weights and
    # activations, f32 accumulation and BN stats, centered variance). BN stats
    # here use exactly the real batch rows (no padding), so it also validates
    # the kernel's masked-BN path when B % 8 != 0.
    b = x_nchw.shape[0]
    x = jnp.pad(x_nchw.reshape(b, INPUT_DIM).astype(jnp.bfloat16),
                ((0, 0), (0, IN_PAD - INPUT_DIM)))
    eps_p = jnp.pad(eps.astype(jnp.float32), ((0, 0), (0, LAT_PAD - LATENT_DIM)))

    def lin(h, w, bias):
        return jnp.dot(h.astype(jnp.bfloat16), w,
                       preferred_element_type=jnp.float32) + bias

    def bn_relu(h, g, be):
        mean = jnp.mean(h, axis=0, keepdims=True)
        hc = h - mean
        var = jnp.mean(hc * hc, axis=0, keepdims=True)
        return jnp.maximum(hc * jax.lax.rsqrt(var + BN_EPS) * g + be,
                           0.0).astype(jnp.bfloat16)

    h1 = bn_relu(lin(x, p["fc1_w"], p["fc1_b"]), p["bn1_g"], p["bn1_b"])
    h2 = bn_relu(lin(h1, p["fc2_w"], p["fc2_b"]), p["bn2_g"], p["bn2_b"])
    mulv = lin(h2, p["fc_mulv_w"], p["fc_mulv_b"])
    mu_p, logvar_p = mulv[:, :LAT_PAD], mulv[:, LAT_PAD:]
    z = mu_p + eps_p * jnp.exp(0.5 * logvar_p)
    h3 = bn_relu(lin(z, p["fc3_w"], p["fc3_b"]), p["bn3_g"], p["bn3_b"])
    h4 = bn_relu(lin(h3, p["fc4_w"], p["fc4_b"]), p["bn4_g"], p["bn4_b"])
    recon = jax.nn.sigmoid(lin(h4, p["fc5_w"], p["fc5_b"])).astype(jnp.bfloat16)
    return recon[:, :INPUT_DIM], mu_p[:, :LATENT_DIM], logvar_p[:, :LATENT_DIM]


if __name__ == "__main__":
    key = jax.random.PRNGKey(0)
    k_param, k_x, k_eps = jax.random.split(key, 3)

    B = 6  # not a multiple of 8 -> exercises the masked-BN (sublane-pad) path
    x = jax.random.uniform(k_x, (B, 1, 28, 28), jnp.float32)       # NCHW image
    eps = jax.random.normal(k_eps, (B, LATENT_DIM), jnp.float32)   # randn_like(std)
    params = init_params(k_param)

    recon, mu, logvar = vae_forward(x, eps, params)
    jax.block_until_ready((recon, mu, logvar))

    assert recon.shape == (B, INPUT_DIM)
    assert mu.shape == (B, LATENT_DIM)
    assert logvar.shape == (B, LATENT_DIM)
    assert bool(jnp.all(jnp.isfinite(recon.astype(jnp.float32))))

    r_recon, r_mu, r_logvar = _reference(x, eps, params)
    assert bool(jnp.allclose(recon.astype(jnp.float32),
                             r_recon.astype(jnp.float32), rtol=5e-3, atol=5e-3))
    assert bool(jnp.allclose(mu, r_mu, rtol=5e-3, atol=5e-3))
    assert bool(jnp.allclose(logvar, r_logvar, rtol=5e-3, atol=5e-3))

    print("KERNEL_OK")
</pallas_src>

<mosaic_0001>
module attributes {stable_mosaic.version = 11 : i64} {
  func.func @vae_kernel(%arg0: memref<8x896xbf16, #tpu.memory_space<vmem>>, %arg1: memref<8x128xf32, #tpu.memory_space<vmem>>, %arg2: memref<896x512xbf16, #tpu.memory_space<vmem>>, %arg3: memref<1x512xf32, #tpu.memory_space<vmem>>, %arg4: memref<1x512xf32, #tpu.memory_space<vmem>>, %arg5: memref<1x512xf32, #tpu.memory_space<vmem>>, %arg6: memref<512x256xbf16, #tpu.memory_space<vmem>>, %arg7: memref<1x256xf32, #tpu.memory_space<vmem>>, %arg8: memref<1x256xf32, #tpu.memory_space<vmem>>, %arg9: memref<1x256xf32, #tpu.memory_space<vmem>>, %arg10: memref<256x256xbf16, #tpu.memory_space<vmem>>, %arg11: memref<1x256xf32, #tpu.memory_space<vmem>>, %arg12: memref<128x256xbf16, #tpu.memory_space<vmem>>, %arg13: memref<1x256xf32, #tpu.memory_space<vmem>>, %arg14: memref<1x256xf32, #tpu.memory_space<vmem>>, %arg15: memref<1x256xf32, #tpu.memory_space<vmem>>, %arg16: memref<256x512xbf16, #tpu.memory_space<vmem>>, %arg17: memref<1x512xf32, #tpu.memory_space<vmem>>, %arg18: memref<1x512xf32, #tpu.memory_space<vmem>>, %arg19: memref<1x512xf32, #tpu.memory_space<vmem>>, %arg20: memref<512x896xbf16, #tpu.memory_space<vmem>>, %arg21: memref<1x896xf32, #tpu.memory_space<vmem>>, %arg22: memref<8x896xbf16, #tpu.memory_space<vmem>>, %arg23: memref<8x256xf32, #tpu.memory_space<vmem>>) attributes {dimension_semantics = [], scalar_prefetch = 0 : i64, scratch_operands = 0 : i64, tpu.core_type = #tpu.core_type<tc>} {
    %0 = tpu.iota {dimensions = array<i32: 0>} : vector<8x1xi32>
    %c6_i32 = arith.constant 6 : i32
    %1 = vector.broadcast %c6_i32 : i32 to vector<8x1xi32>
    %2 = arith.cmpi slt, %0, %1 : vector<8x1xi32>
    %3 = arith.extui %2 : vector<8x1xi1> to vector<8x1xi32>
    %4 = arith.sitofp %3 : vector<8x1xi32> to vector<8x1xf32>
    %c0 = arith.constant 0 : index
    %c0_0 = arith.constant 0 : index
    %5 = vector.load %arg0[%c0, %c0_0] : memref<8x896xbf16, #tpu.memory_space<vmem>>, vector<8x896xbf16>
    %c0_1 = arith.constant 0 : index
    %c0_2 = arith.constant 0 : index
    %6 = vector.load %arg2[%c0_1, %c0_2] : memref<896x512xbf16, #tpu.memory_space<vmem>>, vector<896x512xbf16>
    %cst = arith.constant dense<0.000000e+00> : vector<8x512xf32>
    %7 = tpu.matmul %5, %6, %cst {dimension_numbers = #tpu.dot_dimension_numbers<[1], [0], [0], [1], [0, 0, 1, 1], [], []>} : vector<8x896xbf16>, vector<896x512xbf16>, vector<8x512xf32> -> vector<8x512xf32>
    %c0_3 = arith.constant 0 : index
    %c0_4 = arith.constant 0 : index
    %8 = vector.load %arg3[%c0_3, %c0_4] : memref<1x512xf32, #tpu.memory_space<vmem>>, vector<1x512xf32>
    %9 = vector.broadcast %8 : vector<1x512xf32> to vector<8x512xf32>
    %10 = arith.addf %7, %9 : vector<8x512xf32>
    %11 = vector.broadcast %4 : vector<8x1xf32> to vector<8x512xf32>
    %12 = arith.mulf %10, %11 : vector<8x512xf32>
    %cst_5 = arith.constant dense<0.000000e+00> : vector<512xf32>
    %13 = vector.multi_reduction <add>, %12, %cst_5 [0] : vector<8x512xf32> to vector<512xf32>
    %14 = vector.shape_cast %13 : vector<512xf32> to vector<1x512xf32>
    %cst_6 = arith.constant 0.166666672 : f32
    %15 = vector.broadcast %cst_6 : f32 to vector<1x512xf32>
    %16 = arith.mulf %14, %15 : vector<1x512xf32>
    %17 = vector.broadcast %16 : vector<1x512xf32> to vector<8x512xf32>
    %18 = arith.subf %10, %17 : vector<8x512xf32>
    %19 = vector.broadcast %4 : vector<8x1xf32> to vector<8x512xf32>
    %20 = arith.mulf %18, %19 : vector<8x512xf32>
    %21 = arith.mulf %20, %20 : vector<8x512xf32>
    %cst_7 = arith.constant dense<0.000000e+00> : vector<512xf32>
    %22 = vector.multi_reduction <add>, %21, %cst_7 [0] : vector<8x512xf32> to vector<512xf32>
    %23 = vector.shape_cast %22 : vector<512xf32> to vector<1x512xf32>
    %cst_8 = arith.constant 0.166666672 : f32
    %24 = vector.broadcast %cst_8 : f32 to vector<1x512xf32>
    %25 = arith.mulf %23, %24 : vector<1x512xf32>
    %cst_9 = arith.constant 9.99999974E-6 : f32
    %26 = vector.broadcast %cst_9 : f32 to vector<1x512xf32>
    %27 = arith.addf %25, %26 : vector<1x512xf32>
    %28 = math.rsqrt %27 : vector<1x512xf32>
    %29 = vector.broadcast %28 : vector<1x512xf32> to vector<8x512xf32>
    %30 = arith.mulf %18, %29 : vector<8x512xf32>
    %c0_10 = arith.constant 0 : index
    %c0_11 = arith.constant 0 : index
    %31 = vector.load %arg4[%c0_10, %c0_11] : memref<1x512xf32, #tpu.memory_space<vmem>>, vector<1x512xf32>
    %32 = vector.broadcast %31 : vector<1x512xf32> to vector<8x512xf32>
    %33 = arith.mulf %30, %32 : vector<8x512xf32>
    %c0_12 = arith.constant 0 : index
    %c0_13 = arith.constant 0 : index
    %34 = vector.load %arg5[%c0_12, %c0_13] : memref<1x512xf32, #tpu.memory_space<vmem>>, vector<1x512xf32>
    %35 = vector.broadcast %34 : vector<1x512xf32> to vector<8x512xf32>
    %36 = arith.addf %33, %35 : vector<8x512xf32>
    %cst_14 = arith.constant 0.000000e+00 : f32
    %37 = vector.broadcast %cst_14 : f32 to vector<8x512xf32>
    %38 = arith.maximumf %36, %37 : vector<8x512xf32>
    %39 = arith.truncf %38 : vector<8x512xf32> to vector<8x512xbf16>
    %c0_15 = arith.constant 0 : index
    %c0_16 = arith.constant 0 : index
    %40 = vector.load %arg6[%c0_15, %c0_16] : memref<512x256xbf16, #tpu.memory_space<vmem>>, vector<512x256xbf16>
    %cst_17 = arith.constant dense<0.000000e+00> : vector<8x256xf32>
    %41 = tpu.matmul %39, %40, %cst_17 {dimension_numbers = #tpu.dot_dimension_numbers<[1], [0], [0], [1], [0, 0, 1, 1], [], []>} : vector<8x512xbf16>, vector<512x256xbf16>, vector<8x256xf32> -> vector<8x256xf32>
    %c0_18 = arith.constant 0 : index
    %c0_19 = arith.constant 0 : index
    %42 = vector.load %arg7[%c0_18, %c0_19] : memref<1x256xf32, #tpu.memory_space<vmem>>, vector<1x256xf32>
    %43 = vector.broadcast %42 : vector<1x256xf32> to vector<8x256xf32>
    %44 = arith.addf %41, %43 : vector<8x256xf32>
    %45 = vector.broadcast %4 : vector<8x1xf32> to vector<8x256xf32>
    %46 = arith.mulf %44, %45 : vector<8x256xf32>
    %cst_20 = arith.constant dense<0.000000e+00> : vector<256xf32>
    %47 = vector.multi_reduction <add>, %46, %cst_20 [0] : vector<8x256xf32> to vector<256xf32>
    %48 = vector.shape_cast %47 : vector<256xf32> to vector<1x256xf32>
    %cst_21 = arith.constant 0.166666672 : f32
    %49 = vector.broadcast %cst_21 : f32 to vector<1x256xf32>
    %50 = arith.mulf %48, %49 : vector<1x256xf32>
    %51 = vector.broadcast %50 : vector<1x256xf32> to vector<8x256xf32>
    %52 = arith.subf %44, %51 : vector<8x256xf32>
    %53 = vector.broadcast %4 : vector<8x1xf32> to vector<8x256xf32>
    %54 = arith.mulf %52, %53 : vector<8x256xf32>
    %55 = arith.mulf %54, %54 : vector<8x256xf32>
    %cst_22 = arith.constant dense<0.000000e+00> : vector<256xf32>
    %56 = vector.multi_reduction <add>, %55, %cst_22 [0] : vector<8x256xf32> to vector<256xf32>
    %57 = vector.shape_cast %56 : vector<256xf32> to vector<1x256xf32>
    %cst_23 = arith.constant 0.166666672 : f32
    %58 = vector.broadcast %cst_23 : f32 to vector<1x256xf32>
    %59 = arith.mulf %57, %58 : vector<1x256xf32>
    %cst_24 = arith.constant 9.99999974E-6 : f32
    %60 = vector.broadcast %cst_24 : f32 to vector<1x256xf32>
    %61 = arith.addf %59, %60 : vector<1x256xf32>
    %62 = math.rsqrt %61 : vector<1x256xf32>
    %63 = vector.broadcast %62 : vector<1x256xf32> to vector<8x256xf32>
    %64 = arith.mulf %52, %63 : vector<8x256xf32>
    %c0_25 = arith.constant 0 : index
    %c0_26 = arith.constant 0 : index
    %65 = vector.load %arg8[%c0_25, %c0_26] : memref<1x256xf32, #tpu.memory_space<vmem>>, vector<1x256xf32>
    %66 = vector.broadcast %65 : vector<1x256xf32> to vector<8x256xf32>
    %67 = arith.mulf %64, %66 : vector<8x256xf32>
    %c0_27 = arith.constant 0 : index
    %c0_28 = arith.constant 0 : index
    %68 = vector.load %arg9[%c0_27, %c0_28] : memref<1x256xf32, #tpu.memory_space<vmem>>, vector<1x256xf32>
    %69 = vector.broadcast %68 : vector<1x256xf32> to vector<8x256xf32>
    %70 = arith.addf %67, %69 : vector<8x256xf32>
    %cst_29 = arith.constant 0.000000e+00 : f32
    %71 = vector.broadcast %cst_29 : f32 to vector<8x256xf32>
    %72 = arith.maximumf %70, %71 : vector<8x256xf32>
    %73 = arith.truncf %72 : vector<8x256xf32> to vector<8x256xbf16>
    %c0_30 = arith.constant 0 : index
    %c0_31 = arith.constant 0 : index
    %74 = vector.load %arg10[%c0_30, %c0_31] : memref<256x256xbf16, #tpu.memory_space<vmem>>, vector<256x256xbf16>
    %cst_32 = arith.constant dense<0.000000e+00> : vector<8x256xf32>
    %75 = tpu.matmul %73, %74, %cst_32 {dimension_numbers = #tpu.dot_dimension_numbers<[1], [0], [0], [1], [0, 0, 1, 1], [], []>} : vector<8x256xbf16>, vector<256x256xbf16>, vector<8x256xf32> -> vector<8x256xf32>
    %c0_33 = arith.constant 0 : index
    %c0_34 = arith.constant 0 : index
    %76 = vector.load %arg11[%c0_33, %c0_34] : memref<1x256xf32, #tpu.memory_space<vmem>>, vector<1x256xf32>
    %77 = vector.broadcast %76 : vector<1x256xf32> to vector<8x256xf32>
    %78 = arith.addf %75, %77 : vector<8x256xf32>
    %c0_35 = arith.constant 0 : index
    %c0_36 = arith.constant 0 : index
    %79 = vector.load %arg23[%c0_35, %c0_36] : memref<8x256xf32, #tpu.memory_space<vmem>>, vector<8x256xf32>
    tpu.vector_store %arg23[%c0_35, %c0_36], %78 {strides = array<i32>} : memref<8x256xf32, #tpu.memory_space<vmem>>, vector<8x256xf32>,
    %80 = vector.extract_strided_slice %78 {offsets = [0, 0], sizes = [8, 128], strides = [1, 1]} : vector<8x256xf32> to vector<8x128xf32>
    %81 = vector.extract_strided_slice %78 {offsets = [0, 128], sizes = [8, 128], strides = [1, 1]} : vector<8x256xf32> to vector<8x128xf32>
    %c0_37 = arith.constant 0 : index
    %c0_38 = arith.constant 0 : index
    %82 = vector.load %arg1[%c0_37, %c0_38] : memref<8x128xf32, #tpu.memory_space<vmem>>, vector<8x128xf32>
    %cst_39 = arith.constant 5.000000e-01 : f32
    %83 = vector.broadcast %cst_39 : f32 to vector<8x128xf32>
    %84 = arith.mulf %83, %81 : vector<8x128xf32>
    %85 = math.exp %84 : vector<8x128xf32>
    %86 = arith.mulf %82, %85 : vector<8x128xf32>
    %87 = arith.addf %80, %86 : vector<8x128xf32>
    %88 = arith.truncf %87 : vector<8x128xf32> to vector<8x128xbf16>
    %c0_40 = arith.constant 0 : index
    %c0_41 = arith.constant 0 : index
    %89 = vector.load %arg12[%c0_40, %c0_41] : memref<128x256xbf16, #tpu.memory_space<vmem>>, vector<128x256xbf16>
    %cst_42 = arith.constant dense<0.000000e+00> : vector<8x256xf32>
    %90 = tpu.matmul %88, %89, %cst_42 {dimension_numbers = #tpu.dot_dimension_numbers<[1], [0], [0], [1], [0, 0, 1, 1], [], []>} : vector<8x128xbf16>, vector<128x256xbf16>, vector<8x256xf32> -> vector<8x256xf32>
    %c0_43 = arith.constant 0 : index
    %c0_44 = arith.constant 0 : index
    %91 = vector.load %arg13[%c0_43, %c0_44] : memref<1x256xf32, #tpu.memory_space<vmem>>, vector<1x256xf32>
    %92 = vector.broadcast %91 : vector<1x256xf32> to vector<8x256xf32>
    %93 = arith.addf %90, %92 : vector<8x256xf32>
    %94 = vector.broadcast %4 : vector<8x1xf32> to vector<8x256xf32>
    %95 = arith.mulf %93, %94 : vector<8x256xf32>
    %cst_45 = arith.constant dense<0.000000e+00> : vector<256xf32>
    %96 = vector.multi_reduction <add>, %95, %cst_45 [0] : vector<8x256xf32> to vector<256xf32>
    %97 = vector.shape_cast %96 : vector<256xf32> to vector<1x256xf32>
    %cst_46 = arith.constant 0.166666672 : f32
    %98 = vector.broadcast %cst_46 : f32 to vector<1x256xf32>
    %99 = arith.mulf %97, %98 : vector<1x256xf32>
    %100 = vector.broadcast %99 : vector<1x256xf32> to vector<8x256xf32>
    %101 = arith.subf %93, %100 : vector<8x256xf32>
    %102 = vector.broadcast %4 : vector<8x1xf32> to vector<8x256xf32>
    %103 = arith.mulf %101, %102 : vector<8x256xf32>
    %104 = arith.mulf %103, %103 : vector<8x256xf32>
    %cst_47 = arith.constant dense<0.000000e+00> : vector<256xf32>
    %105 = vector.multi_reduction <add>, %104, %cst_47 [0] : vector<8x256xf32> to vector<256xf32>
    %106 = vector.shape_cast %105 : vector<256xf32> to vector<1x256xf32>
    %cst_48 = arith.constant 0.166666672 : f32
    %107 = vector.broadcast %cst_48 : f32 to vector<1x256xf32>
    %108 = arith.mulf %106, %107 : vector<1x256xf32>
    %cst_49 = arith.constant 9.99999974E-6 : f32
    %109 = vector.broadcast %cst_49 : f32 to vector<1x256xf32>
    %110 = arith.addf %108, %109 : vector<1x256xf32>
    %111 = math.rsqrt %110 : vector<1x256xf32>
    %112 = vector.broadcast %111 : vector<1x256xf32> to vector<8x256xf32>
    %113 = arith.mulf %101, %112 : vector<8x256xf32>
    %c0_50 = arith.constant 0 : index
    %c0_51 = arith.constant 0 : index
    %114 = vector.load %arg14[%c0_50, %c0_51] : memref<1x256xf32, #tpu.memory_space<vmem>>, vector<1x256xf32>
    %115 = vector.broadcast %114 : vector<1x256xf32> to vector<8x256xf32>
    %116 = arith.mulf %113, %115 : vector<8x256xf32>
    %c0_52 = arith.constant 0 : index
    %c0_53 = arith.constant 0 : index
    %117 = vector.load %arg15[%c0_52, %c0_53] : memref<1x256xf32, #tpu.memory_space<vmem>>, vector<1x256xf32>
    %118 = vector.broadcast %117 : vector<1x256xf32> to vector<8x256xf32>
    %119 = arith.addf %116, %118 : vector<8x256xf32>
    %cst_54 = arith.constant 0.000000e+00 : f32
    %120 = vector.broadcast %cst_54 : f32 to vector<8x256xf32>
    %121 = arith.maximumf %119, %120 : vector<8x256xf32>
    %122 = arith.truncf %121 : vector<8x256xf32> to vector<8x256xbf16>
    %c0_55 = arith.constant 0 : index
    %c0_56 = arith.constant 0 : index
    %123 = vector.load %arg16[%c0_55, %c0_56] : memref<256x512xbf16, #tpu.memory_space<vmem>>, vector<256x512xbf16>
    %cst_57 = arith.constant dense<0.000000e+00> : vector<8x512xf32>
    %124 = tpu.matmul %122, %123, %cst_57 {dimension_numbers = #tpu.dot_dimension_numbers<[1], [0], [0], [1], [0, 0, 1, 1], [], []>} : vector<8x256xbf16>, vector<256x512xbf16>, vector<8x512xf32> -> vector<8x512xf32>
    %c0_58 = arith.constant 0 : index
    %c0_59 = arith.constant 0 : index
    %125 = vector.load %arg17[%c0_58, %c0_59] : memref<1x512xf32, #tpu.memory_space<vmem>>, vector<1x512xf32>
    %126 = vector.broadcast %125 : vector<1x512xf32> to vector<8x512xf32>
    %127 = arith.addf %124, %126 : vector<8x512xf32>
    %128 = vector.broadcast %4 : vector<8x1xf32> to vector<8x512xf32>
    %129 = arith.mulf %127, %128 : vector<8x512xf32>
    %cst_60 = arith.constant dense<0.000000e+00> : vector<512xf32>
    %130 = vector.multi_reduction <add>, %129, %cst_60 [0] : vector<8x512xf32> to vector<512xf32>
    %131 = vector.shape_cast %130 : vector<512xf32> to vector<1x512xf32>
    %cst_61 = arith.constant 0.166666672 : f32
    %132 = vector.broadcast %cst_61 : f32 to vector<1x512xf32>
    %133 = arith.mulf %131, %132 : vector<1x512xf32>
    %134 = vector.broadcast %133 : vector<1x512xf32> to vector<8x512xf32>
    %135 = arith.subf %127, %134 : vector<8x512xf32>
    %136 = vector.broadcast %4 : vector<8x1xf32> to vector<8x512xf32>
    %137 = arith.mulf %135, %136 : vector<8x512xf32>
    %138 = arith.mulf %137, %137 : vector<8x512xf32>
    %cst_62 = arith.constant dense<0.000000e+00> : vector<512xf32>
    %139 = vector.multi_reduction <add>, %138, %cst_62 [0] : vector<8x512xf32> to vector<512xf32>
    %140 = vector.shape_cast %139 : vector<512xf32> to vector<1x512xf32>
    %cst_63 = arith.constant 0.166666672 : f32
    %141 = vector.broadcast %cst_63 : f32 to vector<1x512xf32>
    %142 = arith.mulf %140, %141 : vector<1x512xf32>
    %cst_64 = arith.constant 9.99999974E-6 : f32
    %143 = vector.broadcast %cst_64 : f32 to vector<1x512xf32>
    %144 = arith.addf %142, %143 : vector<1x512xf32>
    %145 = math.rsqrt %144 : vector<1x512xf32>
    %146 = vector.broadcast %145 : vector<1x512xf32> to vector<8x512xf32>
    %147 = arith.mulf %135, %146 : vector<8x512xf32>
    %c0_65 = arith.constant 0 : index
    %c0_66 = arith.constant 0 : index
    %148 = vector.load %arg18[%c0_65, %c0_66] : memref<1x512xf32, #tpu.memory_space<vmem>>, vector<1x512xf32>
    %149 = vector.broadcast %148 : vector<1x512xf32> to vector<8x512xf32>
    %150 = arith.mulf %147, %149 : vector<8x512xf32>
    %c0_67 = arith.constant 0 : index
    %c0_68 = arith.constant 0 : index
    %151 = vector.load %arg19[%c0_67, %c0_68] : memref<1x512xf32, #tpu.memory_space<vmem>>, vector<1x512xf32>
    %152 = vector.broadcast %151 : vector<1x512xf32> to vector<8x512xf32>
    %153 = arith.addf %150, %152 : vector<8x512xf32>
    %cst_69 = arith.constant 0.000000e+00 : f32
    %154 = vector.broadcast %cst_69 : f32 to vector<8x512xf32>
    %155 = arith.maximumf %153, %154 : vector<8x512xf32>
    %156 = arith.truncf %155 : vector<8x512xf32> to vector<8x512xbf16>
    %c0_70 = arith.constant 0 : index
    %c0_71 = arith.constant 0 : index
    %157 = vector.load %arg20[%c0_70, %c0_71] : memref<512x896xbf16, #tpu.memory_space<vmem>>, vector<512x896xbf16>
    %cst_72 = arith.constant dense<0.000000e+00> : vector<8x896xf32>
    %158 = tpu.matmul %156, %157, %cst_72 {dimension_numbers = #tpu.dot_dimension_numbers<[1], [0], [0], [1], [0, 0, 1, 1], [], []>} : vector<8x512xbf16>, vector<512x896xbf16>, vector<8x896xf32> -> vector<8x896xf32>
    %c0_73 = arith.constant 0 : index
    %c0_74 = arith.constant 0 : index
    %159 = vector.load %arg21[%c0_73, %c0_74] : memref<1x896xf32, #tpu.memory_space<vmem>>, vector<1x896xf32>
    %160 = vector.broadcast %159 : vector<1x896xf32> to vector<8x896xf32>
    %161 = arith.addf %158, %160 : vector<8x896xf32>
    %162 = arith.negf %161 : vector<8x896xf32>
    %163 = math.exp %162 : vector<8x896xf32>
    %cst_75 = arith.constant 1.000000e+00 : f32
    %164 = vector.broadcast %cst_75 : f32 to vector<8x896xf32>
    %165 = arith.addf %164, %163 : vector<8x896xf32>
    %166 = arith.divf %164, %165 : vector<8x896xf32>
    %167 = arith.truncf %166 : vector<8x896xf32> to vector<8x896xbf16>
    %c0_76 = arith.constant 0 : index
    %c0_77 = arith.constant 0 : index
    %168 = vector.load %arg22[%c0_76, %c0_77] : memref<8x896xbf16, #tpu.memory_space<vmem>>, vector<8x896xbf16>
    tpu.vector_store %arg22[%c0_76, %c0_77], %167 {strides = array<i32>} : memref<8x896xbf16, #tpu.memory_space<vmem>>, vector<8x896xbf16>,
    return
  }
}

</mosaic_0001>

<bundles_post_ra>
// kernel: vae_forward.1
= control target key start
LH: loop header
LB: loop body
LE: loop exit
PB: predicated region body
PF: predicated region fallthrough
CT: control target
= control target key end

     0   :  { %s8697_s0 = inlined_call_operand.hbm [shape: bf16[8,896], index: 0, kind: input, shape index: {}]   ;;  %s8698_s1 = inlined_call_operand.hbm [shape: f32[8,128], index: 1, kind: input, shape index: {}]   ;;  %s8699_s2 = inlined_call_operand.hbm [shape: bf16[896,512], index: 2, kind: input, shape index: {}]   ;;  %s8700_s3 = inlined_call_operand.hbm [shape: f32[1,512], index: 3, kind: input, shape index: {}]   ;;  %s8701_s4 = inlined_call_operand.hbm [shape: f32[1,512], index: 4, kind: input, shape index: {}]   ;;  %s8702_s5 = inlined_call_operand.hbm [shape: f32[1,512], index: 5, kind: input, shape index: {}]   ;;  %s8703_s6 = inlined_call_operand.hbm [shape: bf16[512,256], index: 6, kind: input, shape index: {}]   ;;  %s8704_s7 = inlined_call_operand.hbm [shape: f32[1,256], index: 7, kind: input, shape index: {}]   ;;  %s8705_s8 = inlined_call_operand.hbm [shape: f32[1,256], index: 8, kind: input, shape index: {}]   ;;  %s8706_s9 = inlined_call_operand.hbm [shape: f32[1,256], index: 9, kind: input, shape index: {}]   ;;  %s8707_s10 = inlined_call_operand.hbm [shape: bf16[256,256], index: 10, kind: input, shape index: {}]   ;;  %s8708_s11 = inlined_call_operand.hbm [shape: f32[1,256], index: 11, kind: input, shape index: {}]   ;;  %s8709_s12 = inlined_call_operand.hbm [shape: bf16[128,256], index: 12, kind: input, shape index: {}]   ;;  %s8710_s13 = inlined_call_operand.hbm [shape: f32[1,256], index: 13, kind: input, shape index: {}]   ;;  %s8711_s14 = inlined_call_operand.hbm [shape: f32[1,256], index: 14, kind: input, shape index: {}]   ;;  %s8712_s15 = inlined_call_operand.hbm [shape: f32[1,256], index: 15, kind: input, shape index: {}]   ;;  %s8713_s16 = inlined_call_operand.hbm [shape: bf16[256,512], index: 16, kind: input, shape index: {}]   ;;  %s8714_s17 = inlined_call_operand.hbm [shape: f32[1,512], index: 17, kind: input, shape index: {}]   ;;  %s8715_s18 = inlined_call_operand.hbm [shape: f32[1,512], index: 18, kind: input, shape index: {}]   ;;  %s8716_s19 = inlined_call_operand.hbm [shape: f32[1,512], index: 19, kind: input, shape index: {}]   ;;  %s8717_s20 = inlined_call_operand.hbm [shape: bf16[512,896], index: 20, kind: input, shape index: {}]   ;;  %s8718_s21 = inlined_call_operand.hbm [shape: f32[1,896], index: 21, kind: input, shape index: {}]   ;;  %s8719_s22 = inlined_call_operand.hbm [shape: bf16[8,896], index: 22, kind: output, shape index: {0}]   ;;  %s8720_s23 = inlined_call_operand.hbm [shape: f32[8,256], index: 23, kind: output, shape index: {1}]  }
   0x1   :  { %8730 = sst [smem:[#allocation54_spill]] %s8697_s0 }
   0x2   :  { %8731 = sst [smem:[#allocation55_spill]] %s8698_s1 }
   0x3   :  { %8732 = sst [smem:[#allocation56_spill]] %s8699_s2 }
   0x4   :  { %8733 = sst [smem:[#allocation57_spill]] %s8700_s3 }
   0x5   :  { %8734 = sst [smem:[#allocation58_spill]] %s8701_s4 }
   0x6   :  { %8735 = sst [smem:[#allocation59_spill]] %s8702_s5 }
   0x7   :  { %8736 = sst [smem:[#allocation60_spill]] %s8703_s6 }
   0x8   :  { %8737 = sst [smem:[#allocation61_spill]] %s8704_s7 }
   0x9   :  { %8738 = sst [smem:[#allocation62_spill]] %s8719_s22 }
   0xa   :  { %29 = vsyncpa [#allocation3], 0 }
   0xb   :  { %30 = vsyncpa [#allocation6], 0 }
   0xc   :  { %31 = vsyncpa [#allocation9], 0 }
   0xd   :  { %32 = vsyncpa [#allocation12], 0 }
   0xe   :  { %33 = vsyncpa [#allocation15], 0 }
   0xf   :  { %34 = vsyncpa [#allocation18], 0 }
  0x10   :  { %35 = vsyncpa [#allocation21], 0 }
  0x11   :  { %36 = vsyncpa [#allocation24], 0 }
  0x12   :  { %37 = vsyncpa [#allocation27], 0 }
  0x13   :  { %38 = vsyncpa [#allocation30], 0 }
  0x14   :  { %39 = vsyncpa [#allocation33], 0 }
  0x15   :  { %40 = vsyncpa [#allocation36], 0 }
  0x16   :  { %41 = vsyncpa [#allocation4], 0 }
  0x17   :  { %42 = vsyncpa [#allocation39], 0  ;;  %s8073_s4 = smov [#allocation5]   ;;  %s8074_s24 = smov [#allocation8]  }
  0x18   :  { %s59_s30 = sshll.u32 %s8073_s4, 4  ;;  %s81_s25 = sshll.u32 %s8074_s24, 4  ;;  %s60_s30 = int_to_ptr.vmem [resolvable:$true] %s59_s30  ;;  %s82_s25 = int_to_ptr.vmem [resolvable:$true] %s81_s25 }
  0x19   :  { %s8739_s26 = sld [smem:[#allocation55_spill]] }
  0x1f   :  { %s7517_s2 = scalar_lea.hbm %s8739_s26, 128 }
  0x20   :  { %p7518_p0 = scmp.ne.s32.totalorder %s8739_s26, %s7517_s2  ;;  %p7521_p1 = scmp.lt.u32.totalorder %s7517_s2, %s8739_s26 }
  0x22   :  { %p7523_p2 = pnand %p7521_p1, %p7518_p0 }
  0x24   :  { %7526 = shalt.err (!%p7523_p2)
}
  0x25   :  { %s7527_s29 = scalar_lea.vmem %s60_s30, 128  ;;  %p7532_p4 = scmp.lt.s32.totalorder %s60_s30, %s60_s30 }
  0x26   :  { %p7528_p3 = scmp.ne.s32.totalorder %s60_s30, %s7527_s29  ;;  %p7533_p5 = scmp.lt.s32.totalorder %s7527_s29, %s7527_s29 }
  0x28   :  { %p7534_p6 = por %p7533_p5, %p7532_p4 }
  0x2a   :  { %p7535_p7 = pnand %p7534_p6, %p7528_p3 }
  0x2c   :  { %7538 = shalt.err (!%p7535_p7)
}
  0x2d   :  { %62 = dma.hbm_to_vmem [thread:$0]  %s8739_s26, 128, %s60_s30, [#allocation6]  }
  0x2e   :  { %s8740_s5 = sld [smem:[#allocation57_spill]] }
  0x34   :  { %s7539_s1 = scalar_lea.hbm %s8740_s5, 64 }
  0x35   :  { %p7540_p8 = scmp.ne.s32.totalorder %s8740_s5, %s7539_s1  ;;  %p7543_p9 = scmp.lt.u32.totalorder %s7539_s1, %s8740_s5 }
  0x37   :  { %p7545_p10 = pnand %p7543_p9, %p7540_p8 }
  0x39   :  { %7548 = shalt.err (!%p7545_p10)
}
  0x3a   :  { %s7549_s28 = scalar_lea.vmem %s82_s25, 64  ;;  %p7554_p12 = scmp.lt.s32.totalorder %s82_s25, %s82_s25 }
  0x3b   :  { %p7550_p11 = scmp.ne.s32.totalorder %s82_s25, %s7549_s28  ;;  %p7555_p13 = scmp.lt.s32.totalorder %s7549_s28, %s7549_s28 }
  0x3d   :  { %p7556_p0 = por %p7555_p13, %p7554_p12 }
  0x3f   :  { %p7557_p1 = pnand %p7556_p0, %p7550_p11 }
  0x41   :  { %7560 = shalt.err (!%p7557_p1)
}
  0x42   :  { %84 = dma.hbm_to_vmem [thread:$0]  %s8740_s5, 64, %s82_s25, [#allocation9]  }
  0x43   :  { %s8075_s29 = smov [#allocation11]   ;;  %s8076_s0 = smov [#allocation14]  }
  0x44   :  { %s101_s3 = sshll.u32 %s8075_s29, 4  ;;  %s123_s4 = sshll.u32 %s8076_s0, 4  ;;  %s102_s3 = int_to_ptr.vmem [resolvable:$true] %s101_s3  ;;  %s124_s4 = int_to_ptr.vmem [resolvable:$true] %s123_s4 }
  0x45   :  { %s8741_s6 = sld [smem:[#allocation59_spill]] }
  0x4b   :  { %s7561_s27 = scalar_lea.hbm %s8741_s6, 64 }
  0x4c   :  { %p7562_p2 = scmp.ne.s32.totalorder %s8741_s6, %s7561_s27  ;;  %p7565_p3 = scmp.lt.u32.totalorder %s7561_s27, %s8741_s6 }
  0x4e   :  { %p7567_p4 = pnand %p7565_p3, %p7562_p2 }
  0x50   :  { %7570 = shalt.err (!%p7567_p4)
}
  0x51   :  { %s7571_s25 = scalar_lea.vmem %s102_s3, 64  ;;  %p7576_p6 = scmp.lt.s32.totalorder %s102_s3, %s102_s3 }
  0x52   :  { %p7572_p5 = scmp.ne.s32.totalorder %s102_s3, %s7571_s25  ;;  %p7577_p7 = scmp.lt.s32.totalorder %s7571_s25, %s7571_s25 }
  0x54   :  { %p7578_p8 = por %p7577_p7, %p7576_p6 }
  0x56   :  { %p7579_p9 = pnand %p7578_p8, %p7572_p5 }
  0x58   :  { %7582 = shalt.err (!%p7579_p9)
}
  0x59   :  { %104 = dma.hbm_to_vmem [thread:$0]  %s8741_s6, 64, %s102_s3, [#allocation12]  }
  0x5a   :  { %s8742_s0 = sld [smem:[#allocation61_spill]] }
  0x60   :  { %s7583_s24 = scalar_lea.hbm %s8742_s0, 32 }
  0x61   :  { %p7584_p10 = scmp.ne.s32.totalorder %s8742_s0, %s7583_s24  ;;  %p7587_p11 = scmp.lt.u32.totalorder %s7583_s24, %s8742_s0 }
  0x63   :  { %p7589_p12 = pnand %p7587_p11, %p7584_p10 }
  0x65   :  { %7592 = shalt.err (!%p7589_p12)
}
  0x66   :  { %s7593_s7 = scalar_lea.vmem %s124_s4, 32  ;;  %p7598_p0 = scmp.lt.s32.totalorder %s124_s4, %s124_s4 }
  0x67   :  { %p7594_p13 = scmp.ne.s32.totalorder %s124_s4, %s7593_s7  ;;  %p7599_p1 = scmp.lt.s32.totalorder %s7593_s7, %s7593_s7 }
  0x69   :  { %p7600_p2 = por %p7599_p1, %p7598_p0 }
  0x6b   :  { %p7601_p3 = pnand %p7600_p2, %p7594_p13 }
  0x6d   :  { %7604 = shalt.err (!%p7601_p3)
}
  0x6e   :  { %126 = dma.hbm_to_vmem [thread:$0]  %s8742_s0, 32, %s124_s4, [#allocation15]  }
  0x6f   :  { %s8077_s28 = smov [#allocation17]   ;;  %s8078_s5 = smov [#allocation20]  }
  0x70   :  { %s143_s25 = sshll.u32 %s8077_s28, 4  ;;  %s165_s30 = sshll.u32 %s8078_s5, 4  ;;  %s144_s25 = int_to_ptr.vmem [resolvable:$true] %s143_s25  ;;  %s166_s30 = int_to_ptr.vmem [resolvable:$true] %s165_s30 }
  0x71   :  { %s7605_s24 = scalar_lea.hbm %s8706_s9, 32 }
  0x72   :  { %p7606_p4 = scmp.ne.s32.totalorder %s8706_s9, %s7605_s24  ;;  %p7609_p5 = scmp.lt.u32.totalorder %s7605_s24, %s8706_s9 }
  0x74   :  { %p7611_p6 = pnand %p7609_p5, %p7606_p4 }
  0x76   :  { %7614 = shalt.err (!%p7611_p6)
}
  0x77   :  { %s7615_s4 = scalar_lea.vmem %s144_s25, 32  ;;  %p7620_p8 = scmp.lt.s32.totalorder %s144_s25, %s144_s25 }
  0x78   :  { %p7616_p7 = scmp.ne.s32.totalorder %s144_s25, %s7615_s4  ;;  %p7621_p9 = scmp.lt.s32.totalorder %s7615_s4, %s7615_s4 }
  0x7a   :  { %p7622_p10 = por %p7621_p9, %p7620_p8 }
  0x7c   :  { %p7623_p11 = pnand %p7622_p10, %p7616_p7 }
  0x7e   :  { %7626 = shalt.err (!%p7623_p11)
}
  0x7f   :  { %146 = dma.hbm_to_vmem [thread:$0]  %s8706_s9, 32, %s144_s25, [#allocation18]  }
  0x80   :  { %s7627_s28 = scalar_lea.hbm %s8708_s11, 32 }
  0x81   :  { %p7628_p12 = scmp.ne.s32.totalorder %s8708_s11, %s7627_s28  ;;  %p7631_p13 = scmp.lt.u32.totalorder %s7627_s28, %s8708_s11 }
  0x83   :  { %p7633_p0 = pnand %p7631_p13, %p7628_p12 }
  0x85   :  { %7636 = shalt.err (!%p7633_p0)
}
  0x86   :  { %s7637_s1 = scalar_lea.vmem %s166_s30, 32  ;;  %p7642_p2 = scmp.lt.s32.totalorder %s166_s30, %s166_s30 }
  0x87   :  { %p7638_p1 = scmp.ne.s32.totalorder %s166_s30, %s7637_s1  ;;  %p7643_p3 = scmp.lt.s32.totalorder %s7637_s1, %s7637_s1 }
  0x89   :  { %p7644_p4 = por %p7643_p3, %p7642_p2 }
  0x8b   :  { %p7645_p5 = pnand %p7644_p4, %p7638_p1 }
  0x8d   :  { %7648 = shalt.err (!%p7645_p5)
}
  0x8e   :  { %168 = dma.hbm_to_vmem [thread:$0]  %s8708_s11, 32, %s166_s30, [#allocation21]  }
  0x8f   :  { %s8079_s22 = smov [#allocation23]   ;;  %s8080_s2 = smov [#allocation26]  }
  0x90   :  { %s187_s27 = sshll.u32 %s8079_s22, 4  ;;  %s207_s4 = sshll.u32 %s8080_s2, 4  ;;  %s188_s27 = int_to_ptr.vmem [resolvable:$true] %s187_s27  ;;  %s208_s4 = int_to_ptr.vmem [resolvable:$true] %s207_s4 }
  0x91   :  { %s7649_s3 = scalar_lea.hbm %s8710_s13, 32 }
  0x92   :  { %p7650_p6 = scmp.ne.s32.totalorder %s8710_s13, %s7649_s3  ;;  %p7653_p7 = scmp.lt.u32.totalorder %s7649_s3, %s8710_s13 }
  0x94   :  { %p7655_p8 = pnand %p7653_p7, %p7650_p6 }
  0x96   :  { %7658 = shalt.err (!%p7655_p8)
}
  0x97   :  { %s7659_s11 = scalar_lea.vmem %s188_s27, 32  ;;  %p7664_p10 = scmp.lt.s32.totalorder %s188_s27, %s188_s27 }
  0x98   :  { %p7660_p9 = scmp.ne.s32.totalorder %s188_s27, %s7659_s11  ;;  %p7665_p11 = scmp.lt.s32.totalorder %s7659_s11, %s7659_s11 }
  0x9a   :  { %p7666_p12 = por %p7665_p11, %p7664_p10 }
  0x9c   :  { %p7667_p13 = pnand %p7666_p12, %p7660_p9 }
  0x9e   :  { %7670 = shalt.err (!%p7667_p13)
}
  0x9f   :  { %190 = dma.hbm_to_vmem [thread:$0]  %s8710_s13, 32, %s188_s27, [#allocation24]  }
  0xa0   :  { %s7671_s9 = scalar_lea.hbm %s8712_s15, 32 }
  0xa1   :  { %p7672_p0 = scmp.ne.s32.totalorder %s8712_s15, %s7671_s9  ;;  %p7675_p1 = scmp.lt.u32.totalorder %s7671_s9, %s8712_s15 }
  0xa3   :  { %p7677_p2 = pnand %p7675_p1, %p7672_p0 }
  0xa5   :  { %7680 = shalt.err (!%p7677_p2)
}
  0xa6   :  { %s7681_s7 = scalar_lea.vmem %s208_s4, 32  ;;  %p7686_p4 = scmp.lt.s32.totalorder %s208_s4, %s208_s4 }
  0xa7   :  { %p7682_p3 = scmp.ne.s32.totalorder %s208_s4, %s7681_s7  ;;  %p7687_p5 = scmp.lt.s32.totalorder %s7681_s7, %s7681_s7 }
  0xa9   :  { %p7688_p6 = por %p7687_p5, %p7686_p4 }
  0xab   :  { %p7689_p7 = pnand %p7688_p6, %p7682_p3 }
  0xad   :  { %7692 = shalt.err (!%p7689_p7)
}
  0xae   :  { %210 = dma.hbm_to_vmem [thread:$0]  %s8712_s15, 32, %s208_s4, [#allocation27]  }
  0xaf   :  { %s8081_s3 = smov [#allocation29]   ;;  %s8082_s28 = smov [#allocation32]  }
  0xb0   :  { %s229_s6 = sshll.u32 %s8081_s3, 4  ;;  %s249_s5 = sshll.u32 %s8082_s28, 4  ;;  %s230_s6 = int_to_ptr.vmem [resolvable:$true] %s229_s6  ;;  %s250_s5 = int_to_ptr.vmem [resolvable:$true] %s249_s5 }
  0xb1   :  { %s7693_s30 = scalar_lea.hbm %s8714_s17, 64 }
  0xb2   :  { %p7694_p8 = scmp.ne.s32.totalorder %s8714_s17, %s7693_s30  ;;  %p7697_p9 = scmp.lt.u32.totalorder %s7693_s30, %s8714_s17 }
  0xb4   :  { %p7699_p10 = pnand %p7697_p9, %p7694_p8 }
  0xb6   :  { %7702 = shalt.err (!%p7699_p10)
}
  0xb7   :  { %s7703_s15 = scalar_lea.vmem %s230_s6, 64  ;;  %p7708_p12 = scmp.lt.s32.totalorder %s230_s6, %s230_s6 }
  0xb8   :  { %p7704_p11 = scmp.ne.s32.totalorder %s230_s6, %s7703_s15  ;;  %p7709_p13 = scmp.lt.s32.totalorder %s7703_s15, %s7703_s15 }
  0xba   :  { %p7710_p0 = por %p7709_p13, %p7708_p12 }
  0xbc   :  { %p7711_p1 = pnand %p7710_p0, %p7704_p11 }
  0xbe   :  { %7714 = shalt.err (!%p7711_p1)
}
  0xbf   :  { %232 = dma.hbm_to_vmem [thread:$0]  %s8714_s17, 64, %s230_s6, [#allocation30]  }
  0xc0   :  { %s7715_s0 = scalar_lea.hbm %s8716_s19, 64 }
  0xc1   :  { %p7716_p2 = scmp.ne.s32.totalorder %s8716_s19, %s7715_s0  ;;  %p7719_p3 = scmp.lt.u32.totalorder %s7715_s0, %s8716_s19 }
  0xc3   :  { %p7721_p4 = pnand %p7719_p3, %p7716_p2 }
  0xc5   :  { %7724 = shalt.err (!%p7721_p4)
}
  0xc6   :  { %s7725_s28 = scalar_lea.vmem %s250_s5, 64  ;;  %p7730_p6 = scmp.lt.s32.totalorder %s250_s5, %s250_s5 }
  0xc7   :  { %p7726_p5 = scmp.ne.s32.totalorder %s250_s5, %s7725_s28  ;;  %p7731_p7 = scmp.lt.s32.totalorder %s7725_s28, %s7725_s28 }
  0xc9   :  { %p7732_p8 = por %p7731_p7, %p7730_p6 }
  0xcb   :  { %p7733_p9 = pnand %p7732_p8, %p7726_p5 }
  0xcd   :  { %7736 = shalt.err (!%p7733_p9)
}
  0xce   :  { %252 = dma.hbm_to_vmem [thread:$0]  %s8716_s19, 64, %s250_s5, [#allocation33]  }
  0xcf   :  { %s8083_s26 = smov [#allocation2]   ;;  %s8084_s30 = smov [#allocation7]  }
  0xd0   :  { %s49_s11 = sshll.u32 %s8083_s26, 4  ;;  %s68_s29 = sshll.u32 %s8084_s30, 4  ;;  %s50_s11 = int_to_ptr.vmem [resolvable:$true] %s49_s11  ;;  %s8345_s29 = int_to_ptr.vmem [resolvable:$true] %s68_s29 }
  0xd1   :  { %s8743_s9 = sld [smem:[#allocation54_spill]] }
  0xd7   :  { %s7737_s15 = scalar_lea.hbm %s8743_s9, 448 }
  0xd8   :  { %p7738_p10 = scmp.ne.s32.totalorder %s8743_s9, %s7737_s15  ;;  %p7741_p11 = scmp.lt.u32.totalorder %s7737_s15, %s8743_s9 }
  0xda   :  { %p7743_p12 = pnand %p7741_p11, %p7738_p10 }
  0xdc   :  { %7746 = shalt.err (!%p7743_p12)
}
  0xdd   :  { %s7747_s19 = scalar_lea.vmem %s50_s11, 448  ;;  %p7752_p0 = scmp.lt.s32.totalorder %s50_s11, %s50_s11 }
  0xde   :  { %p7748_p13 = scmp.ne.s32.totalorder %s50_s11, %s7747_s19  ;;  %p7753_p1 = scmp.lt.s32.totalorder %s7747_s19, %s7747_s19 }
  0xe0   :  { %p7754_p2 = por %p7753_p1, %p7752_p0 }
  0xe2   :  { %p7755_p3 = pnand %p7754_p2, %p7748_p13 }
  0xe4   :  { %7758 = shalt.err (!%p7755_p3)
}
  0xe5   :  { %52 = dma.hbm_to_vmem [thread:$0]  %s8743_s9, 448, %s50_s11, [#allocation3]  }
  0xe6   :  { %s8744_s27 = sld [smem:[#allocation56_spill]] }
  0xec   :  { %s7759_s3 = scalar_lea.hbm %s8744_s27, 28672 }
  0xed   :  { %p7760_p4 = scmp.ne.s32.totalorder %s8744_s27, %s7759_s3  ;;  %p7763_p5 = scmp.lt.u32.totalorder %s7759_s3, %s8744_s27 }
  0xef   :  { %p7765_p6 = pnand %p7763_p5, %p7760_p4 }
  0xf1   :  { %7768 = shalt.err (!%p7765_p6)
}
  0xf2   :  { %s7769_s30 = scalar_lea.vmem %s8345_s29, 28672  ;;  %p7774_p8 = scmp.lt.s32.totalorder %s8345_s29, %s8345_s29 }
  0xf3   :  { %p7770_p7 = scmp.ne.s32.totalorder %s8345_s29, %s7769_s30  ;;  %p7775_p9 = scmp.lt.s32.totalorder %s7769_s30, %s7769_s30 }
  0xf5   :  { %p7776_p10 = por %p7775_p9, %p7774_p8 }
  0xf7   :  { %p7777_p11 = pnand %p7776_p10, %p7770_p7 }
  0xf9   :  { %7780 = shalt.err (!%p7777_p11)
}
  0xfa   :  { %s8085_s11 = smov 256   ;;  %s8086_s24 = smov 16  }
  0xfb   :  { %74 = dma.hbm_to_vmem [thread:$0]  %s8744_s27, 28672, %s8345_s29, [#allocation6], %s8085_s11, %s8085_s11, %s8086_s24  }
  0xfc   :  { %s8087_s15 = smov [#allocation10]   ;;  %s8088_s25 = smov [#allocation13]  }
  0xfd   :  { %s91_s4 = sshll.u32 %s8087_s15, 4  ;;  %s110_s22 = sshll.u32 %s8088_s25, 4  ;;  %s92_s4 = int_to_ptr.vmem [resolvable:$true] %s91_s4  ;;  %s8379_s22 = int_to_ptr.vmem [resolvable:$true] %s110_s22 }
  0xfe   :  { %s8745_s5 = sld [smem:[#allocation58_spill]] }
 0x104   :  { %s7781_s0 = scalar_lea.hbm %s8745_s5, 64 }
 0x105   :  { %p7782_p12 = scmp.ne.s32.totalorder %s8745_s5, %s7781_s0  ;;  %p7785_p13 = scmp.lt.u32.totalorder %s7781_s0, %s8745_s5 }
 0x107   :  { %p7787_p0 = pnand %p7785_p13, %p7782_p12 }
 0x109   :  { %7790 = shalt.err (!%p7787_p0)
}
 0x10a   :  { %s7791_s29 = scalar_lea.vmem %s92_s4, 64  ;;  %p7796_p2 = scmp.lt.s32.totalorder %s92_s4, %s92_s4 }
 0x10b   :  { %p7792_p1 = scmp.ne.s32.totalorder %s92_s4, %s7791_s29  ;;  %p7797_p3 = scmp.lt.s32.totalorder %s7791_s29, %s7791_s29 }
 0x10d   :  { %p7798_p4 = por %p7797_p3, %p7796_p2 }
 0x10f   :  { %p7799_p5 = pnand %p7798_p4, %p7792_p1 }
 0x111   :  { %7802 = shalt.err (!%p7799_p5)
}
 0x112   :  { %94 = dma.hbm_to_vmem [thread:$0]  %s8745_s5, 64, %s92_s4, [#allocation9]  }
 0x113   :  { %s8746_s30 = sld [smem:[#allocation60_spill]] }
 0x119   :  { %s7803_s1 = scalar_lea.hbm %s8746_s30, 8192 }
 0x11a   :  { %p7804_p6 = scmp.ne.s32.totalorder %s8746_s30, %s7803_s1  ;;  %p7807_p7 = scmp.lt.u32.totalorder %s7803_s1, %s8746_s30 }
 0x11c   :  { %p7809_p8 = pnand %p7807_p7, %p7804_p6 }
 0x11e   :  { %7812 = shalt.err (!%p7809_p8)
}
 0x11f   :  { %s7813_s19 = scalar_lea.vmem %s8379_s22, 8192  ;;  %p7818_p10 = scmp.lt.s32.totalorder %s8379_s22, %s8379_s22 }
 0x120   :  { %p7814_p9 = scmp.ne.s32.totalorder %s8379_s22, %s7813_s19  ;;  %p7819_p11 = scmp.lt.s32.totalorder %s7813_s19, %s7813_s19 }
 0x122   :  { %p7820_p12 = por %p7819_p11, %p7818_p10 }
 0x124   :  { %p7821_p13 = pnand %p7820_p12, %p7814_p9 }
 0x126   :  { %7824 = shalt.err (!%p7821_p13)
}
 0x127   :  { %s8089_s4 = smov 128   ;;  %s8090_s5 = smov 8  }
 0x128   :  { %116 = dma.hbm_to_vmem [thread:$0]  %s8746_s30, 8192, %s8379_s22, [#allocation12], %s8089_s4, %s8089_s4, %s8090_s5  }
 0x129   :  { %s8091_s13 = smov [#allocation16]   ;;  %s8092_s28 = smov [#allocation19]  }
 0x12a   :  { %s133_s3 = sshll.u32 %s8091_s13, 4  ;;  %s152_s29 = sshll.u32 %s8092_s28, 4  ;;  %s134_s3 = int_to_ptr.vmem [resolvable:$true] %s133_s3  ;;  %s8413_s29 = int_to_ptr.vmem [resolvable:$true] %s152_s29 }
 0x12b   :  { %s7825_s6 = scalar_lea.hbm %s8705_s8, 32 }
 0x12c   :  { %p7826_p0 = scmp.ne.s32.totalorder %s8705_s8, %s7825_s6  ;;  %p7829_p1 = scmp.lt.u32.totalorder %s7825_s6, %s8705_s8 }
 0x12e   :  { %p7831_p2 = pnand %p7829_p1, %p7826_p0 }
 0x130   :  { %7834 = shalt.err (!%p7831_p2)
}
 0x131   :  { %s7835_s22 = scalar_lea.vmem %s134_s3, 32  ;;  %p7840_p4 = scmp.lt.s32.totalorder %s134_s3, %s134_s3 }
 0x132   :  { %p7836_p3 = scmp.ne.s32.totalorder %s134_s3, %s7835_s22  ;;  %p7841_p5 = scmp.lt.s32.totalorder %s7835_s22, %s7835_s22 }
 0x134   :  { %p7842_p6 = por %p7841_p5, %p7840_p4 }
 0x136   :  { %p7843_p7 = pnand %p7842_p6, %p7836_p3 }
 0x138   :  { %7846 = shalt.err (!%p7843_p7)
}
 0x139   :  { %136 = dma.hbm_to_vmem [thread:$0]  %s8705_s8, 32, %s134_s3, [#allocation15]  }
 0x13a   :  { %s7847_s0 = scalar_lea.hbm %s8707_s10, 4096 }
 0x13b   :  { %p7848_p8 = scmp.ne.s32.totalorder %s8707_s10, %s7847_s0  ;;  %p7851_p9 = scmp.lt.u32.totalorder %s7847_s0, %s8707_s10 }
 0x13d   :  { %p7853_p10 = pnand %p7851_p9, %p7848_p8 }
 0x13f   :  { %7856 = shalt.err (!%p7853_p10)
}
 0x140   :  { %s7857_s17 = scalar_lea.vmem %s8413_s29, 4096  ;;  %p7862_p12 = scmp.lt.s32.totalorder %s8413_s29, %s8413_s29 }
 0x141   :  { %p7858_p11 = scmp.ne.s32.totalorder %s8413_s29, %s7857_s17  ;;  %p7863_p13 = scmp.lt.s32.totalorder %s7857_s17, %s7857_s17 }
 0x143   :  { %p7864_p0 = por %p7863_p13, %p7862_p12 }
 0x145   :  { %p7865_p1 = pnand %p7864_p0, %p7858_p11 }
 0x147   :  { %7868 = shalt.err (!%p7865_p1)
}
 0x148   :  { %158 = dma.hbm_to_vmem [thread:$0]  %s8707_s10, 4096, %s8413_s29, [#allocation18], %s8089_s4, %s8089_s4, %s8090_s5  }
 0x149   :  { %s8093_s6 = smov [#allocation22]   ;;  %s8094_s1 = smov [#allocation25]  }
 0x14a   :  { %s174_s26 = sshll.u32 %s8093_s6, 4  ;;  %s197_s9 = sshll.u32 %s8094_s1, 4  ;;  %s175_s26 = int_to_ptr.vmem [resolvable:$true] %s174_s26  ;;  %s198_s9 = int_to_ptr.vmem [resolvable:$true] %s197_s9 }
 0x14b   :  { %s7869_s30 = scalar_lea.hbm %s8709_s12, 2048 }
 0x14c   :  { %p7870_p2 = scmp.ne.s32.totalorder %s8709_s12, %s7869_s30  ;;  %p7873_p3 = scmp.lt.u32.totalorder %s7869_s30, %s8709_s12 }
 0x14e   :  { %p7875_p4 = pnand %p7873_p3, %p7870_p2 }
 0x150   :  { %7878 = shalt.err (!%p7875_p4)
}
 0x151   :  { %s7879_s10 = scalar_lea.vmem %s175_s26, 2048  ;;  %p7884_p6 = scmp.lt.s32.totalorder %s175_s26, %s175_s26 }
 0x152   :  { %p7880_p5 = scmp.ne.s32.totalorder %s175_s26, %s7879_s10  ;;  %p7885_p7 = scmp.lt.s32.totalorder %s7879_s10, %s7879_s10 }
 0x154   :  { %p7886_p8 = por %p7885_p7, %p7884_p6 }
 0x156   :  { %p7887_p9 = pnand %p7886_p8, %p7880_p5 }
 0x158   :  { %7890 = shalt.err (!%p7887_p9)
}
 0x159   :  { %180 = dma.hbm_to_vmem [thread:$0]  %s8709_s12, 2048, %s175_s26, [#allocation21], %s8089_s4, %s8089_s4, %s8090_s5  }
 0x15a   :  { %s7891_s27 = scalar_lea.hbm %s8711_s14, 32 }
 0x15b   :  { %p7892_p10 = scmp.ne.s32.totalorder %s8711_s14, %s7891_s27  ;;  %p7895_p11 = scmp.lt.u32.totalorder %s7891_s27, %s8711_s14 }
 0x15d   :  { %p7897_p12 = pnand %p7895_p11, %p7892_p10 }
 0x15f   :  { %7900 = shalt.err (!%p7897_p12)
}
 0x160   :  { %s7901_s1 = scalar_lea.vmem %s198_s9, 32  ;;  %p7906_p0 = scmp.lt.s32.totalorder %s198_s9, %s198_s9 }
 0x161   :  { %p7902_p13 = scmp.ne.s32.totalorder %s198_s9, %s7901_s1  ;;  %p7907_p1 = scmp.lt.s32.totalorder %s7901_s1, %s7901_s1 }
 0x163   :  { %p7908_p2 = por %p7907_p1, %p7906_p0 }
 0x165   :  { %p7909_p3 = pnand %p7908_p2, %p7902_p13 }
 0x167   :  { %7912 = shalt.err (!%p7909_p3)
}
 0x168   :  { %200 = dma.hbm_to_vmem [thread:$0]  %s8711_s14, 32, %s198_s9, [#allocation24]  }
 0x169   :  { %s8095_s5 = smov [#allocation28]   ;;  %s8096_s15 = smov [#allocation31]  }
 0x16a   :  { %s216_s26 = sshll.u32 %s8095_s5, 4  ;;  %s239_s22 = sshll.u32 %s8096_s15, 4  ;;  %s217_s26 = int_to_ptr.vmem [resolvable:$true] %s216_s26  ;;  %s240_s22 = int_to_ptr.vmem [resolvable:$true] %s239_s22 }
 0x16b   :  { %s7913_s2 = scalar_lea.hbm %s8713_s16, 8192 }
 0x16c   :  { %p7914_p4 = scmp.ne.s32.totalorder %s8713_s16, %s7913_s2  ;;  %p7917_p5 = scmp.lt.u32.totalorder %s7913_s2, %s8713_s16 }
 0x16e   :  { %p7919_p6 = pnand %p7917_p5, %p7914_p4 }
 0x170   :  { %7922 = shalt.err (!%p7919_p6)
}
 0x171   :  { %s7923_s14 = scalar_lea.vmem %s217_s26, 8192  ;;  %p7928_p8 = scmp.lt.s32.totalorder %s217_s26, %s217_s26 }
 0x172   :  { %p7924_p7 = scmp.ne.s32.totalorder %s217_s26, %s7923_s14  ;;  %p7929_p9 = scmp.lt.s32.totalorder %s7923_s14, %s7923_s14 }
 0x174   :  { %p7930_p10 = por %p7929_p9, %p7928_p8 }
 0x176   :  { %p7931_p11 = pnand %p7930_p10, %p7924_p7 }
 0x178   :  { %7934 = shalt.err (!%p7931_p11)
}
 0x179   :  { %222 = dma.hbm_to_vmem [thread:$0]  %s8713_s16, 8192, %s217_s26, [#allocation27], %s8085_s11, %s8085_s11, %s8086_s24  }
 0x17a   :  { %s7935_s27 = scalar_lea.hbm %s8715_s18, 64 }
 0x17b   :  { %p7936_p12 = scmp.ne.s32.totalorder %s8715_s18, %s7935_s27  ;;  %p7939_p13 = scmp.lt.u32.totalorder %s7935_s27, %s8715_s18 }
 0x17d   :  { %p7941_p0 = pnand %p7939_p13, %p7936_p12 }
 0x17f   :  { %7944 = shalt.err (!%p7941_p0)
}
 0x180   :  { %s7945_s1 = scalar_lea.vmem %s240_s22, 64  ;;  %p7950_p2 = scmp.lt.s32.totalorder %s240_s22, %s240_s22 }
 0x181   :  { %p7946_p1 = scmp.ne.s32.totalorder %s240_s22, %s7945_s1  ;;  %p7951_p3 = scmp.lt.s32.totalorder %s7945_s1, %s7945_s1 }
 0x183   :  { %p7952_p4 = por %p7951_p3, %p7950_p2 }
 0x185   :  { %p7953_p5 = pnand %p7952_p4, %p7946_p1 }
 0x187   :  { %7956 = shalt.err (!%p7953_p5)
}
 0x188   :  { %242 = dma.hbm_to_vmem [thread:$0]  %s8715_s18, 64, %s240_s22, [#allocation30]  }
 0x189   :  { %s8097_s24 = smov [#allocation34]   ;;  %s7957_s26 = scalar_lea.hbm %s8717_s20, 28672 }
 0x18a   :  { %s258_s12 = sshll.u32 %s8097_s24, 4  ;;  %p7958_p6 = scmp.ne.s32.totalorder %s8717_s20, %s7957_s26  ;;  %s259_s12 = int_to_ptr.vmem [resolvable:$true] %s258_s12 }
 0x18b   :  { %p7961_p7 = scmp.lt.u32.totalorder %s7957_s26, %s8717_s20 }
 0x18d   :  { %p7963_p8 = pnand %p7961_p7, %p7958_p6 }
 0x18f   :  { %7966 = shalt.err (!%p7963_p8)
}
 0x190   :  { %s7967_s19 = scalar_lea.vmem %s259_s12, 28672  ;;  %p7972_p10 = scmp.lt.s32.totalorder %s259_s12, %s259_s12 }
 0x191   :  { %p7968_p9 = scmp.ne.s32.totalorder %s259_s12, %s7967_s19  ;;  %p7973_p11 = scmp.lt.s32.totalorder %s7967_s19, %s7967_s19 }
 0x193   :  { %p7974_p12 = por %p7973_p11, %p7972_p10 }
 0x195   :  { %p7975_p13 = pnand %p7974_p12, %p7968_p9 }
 0x197   :  { %7978 = shalt.err (!%p7975_p13)
}
 0x198   :  { %s8098_s18 = smov 448   ;;  %s8099_s22 = smov 28  }
 0x199   :  { %264 = dma.hbm_to_vmem [thread:$0]  %s8717_s20, 28672, %s259_s12, [#allocation33], %s8098_s18, %s8098_s18, %s8099_s22  }
 0x19a   :  { %s8100_s29 = smov [#allocation35]   ;;  %s7979_s13 = scalar_lea.hbm %s8718_s21, 112 }
 0x19b   :  { %s271_s14 = sshll.u32 %s8100_s29, 4  ;;  %p7980_p0 = scmp.ne.s32.totalorder %s8718_s21, %s7979_s13  ;;  %s272_s14 = int_to_ptr.vmem [resolvable:$true] %s271_s14 }
 0x19c   :  { %p7983_p1 = scmp.lt.u32.totalorder %s7979_s13, %s8718_s21 }
 0x19e   :  { %p7985_p2 = pnand %p7983_p1, %p7980_p0 }
 0x1a0   :  { %7988 = shalt.err (!%p7985_p2)
}
 0x1a1   :  { %s7989_s3 = scalar_lea.vmem %s272_s14, 112  ;;  %s7993_s20 = scalar_lea.vmem %s272_s14, 128 }
 0x1a2   :  { %p7990_p3 = scmp.ne.s32.totalorder %s272_s14, %s7989_s3  ;;  %p7994_p4 = scmp.lt.s32.totalorder %s272_s14, %s272_s14 }
 0x1a3   :  { %p7995_p5 = scmp.lt.s32.totalorder %s7993_s20, %s7989_s3 }
 0x1a5   :  { %p7996_p6 = por %p7995_p5, %p7994_p4 }
 0x1a7   :  { %p7997_p7 = pnand %p7996_p6, %p7990_p3 }
 0x1a9   :  { %8000 = shalt.err (!%p7997_p7)
}
 0x1aa   :  { %274 = dma.hbm_to_vmem [thread:$0]  %s8718_s21, 112, %s272_s14, [#allocation36]  }
 0x1ab   :  { %8045 = dma.done.wait [#allocation3], 448  }
 0x1ac   :  { %8046 = vsyncadd [#allocation3], 4294966848 }
 0x1ad   :  { %8047 = dma.done.wait [#allocation6], 28800  }
 0x1ae   :  { %8048 = vsyncadd [#allocation6], 4294938496 }
 0x1af   :  { %8049 = dma.done.wait [#allocation9], 128  }
 0x1b0   :  { %8050 = vsyncadd [#allocation9], 4294967168 }
 0x1b1   :  { %8051 = dma.done.wait [#allocation12], 8256  }
 0x1b2   :  { %8052 = vsyncadd [#allocation12], 4294959040 }
 0x1b3   :  { %8053 = dma.done.wait [#allocation15], 64  }
 0x1b4   :  { %8054 = vsyncadd [#allocation15], 4294967232 }
 0x1b5   :  { %8055 = dma.done.wait [#allocation18], 4128  }
 0x1b6   :  { %8056 = vsyncadd [#allocation18], 4294963168 }
 0x1b7   :  { %8057 = dma.done.wait [#allocation21], 2080  }
 0x1b8   :  { %8058 = vsyncadd [#allocation21], 4294965216 }
 0x1b9   :  { %8059 = dma.done.wait [#allocation24], 64  }
 0x1ba   :  { %8060 = vsyncadd [#allocation24], 4294967232 }
 0x1bb   :  { %8061 = dma.done.wait [#allocation27], 8224  }
 0x1bc   :  { %8062 = vsyncadd [#allocation27], 4294959072 }
 0x1bd   :  { %8063 = dma.done.wait [#allocation30], 128  }
 0x1be   :  { %8064 = vsyncadd [#allocation30], 4294967168 }
 0x1bf   :  { %8065 = dma.done.wait [#allocation33], 28736  }
 0x1c0   :  { %8066 = vsyncadd [#allocation33], 4294938560 }
 0x1c1   :  { %8067 = dma.done.wait [#allocation36], 112  }
 0x1c2   :  { %8068 = vsyncadd [#allocation36], 4294967184  ;;  %v6536_v0 = vld [vmem:[#allocation7 + $0x4] ss:$16 sps:$4 sm:$0xff]   ;;  %v6538_v1 = vld [vmem:[#allocation7 + $0xc] ss:$16 sps:$4 sm:$0xff]  }
 0x1c3   :  { %1742 = vmatprep.subr.bf16.mxu0 %v6536_v0  ;;  %v6540_v2 = vld [vmem:[#allocation7] ss:$16 sps:$4 sm:$0xff]   ;;  %v6541_v3 = vld [vmem:[#allocation7 + $0x8] ss:$16 sps:$4 sm:$0xff]   ;;  %1906 = vmatprep.subr.bf16.mxu1 %v6538_v1  ;;  %v6542_v4 = vld [vmem:[#allocation7 + $0x24] ss:$16 sps:$4 sm:$0xff]  }
 0x1c4   :  { %1743 = vmatpush1.bf16.msra.mxu0 %v6540_v2  ;;  %1907 = vmatpush1.bf16.msra.mxu1 %v6541_v3  ;;  %v6544_v5 = vld [vmem:[#allocation7 + $0x2c] ss:$16 sps:$4 sm:$0xff]   ;;  %v6546_v6 = vld [vmem:[#allocation7 + $0x20] ss:$16 sps:$4 sm:$0xff]   ;;  %v6547_v7 = vld [vmem:[#allocation7 + $0x28] ss:$16 sps:$4 sm:$0xff]  }
 0x1c5   :  { %1744 = vmatprep.subr.bf16.mxu0 %v6542_v4  ;;  %1908 = vmatprep.subr.bf16.mxu1 %v6544_v5  ;;  %v6548_v8 = vld [vmem:[#allocation7 + $0x44] ss:$16 sps:$4 sm:$0xff]   ;;  %v6550_v9 = vld [vmem:[#allocation7 + $0x4c] ss:$16 sps:$4 sm:$0xff]   ;;  %v6552_v10 = vld [vmem:[#allocation7 + $0x40] ss:$16 sps:$4 sm:$0xff]  }
 0x1c6   :  { %v6553_v11 = vld [vmem:[#allocation7 + $0x48] ss:$16 sps:$4 sm:$0xff]   ;;  %v6554_v12 = vld [vmem:[#allocation7 + $0x64] ss:$16 sps:$4 sm:$0xff]   ;;  %v6556_v13 = vld [vmem:[#allocation7 + $0x6c] ss:$16 sps:$4 sm:$0xff]  }
 0x1c7   :  { %v6558_v14 = vld [vmem:[#allocation7 + $0x60] ss:$16 sps:$4 sm:$0xff]   ;;  %v6559_v15 = vld [vmem:[#allocation7 + $0x68] ss:$16 sps:$4 sm:$0xff]   ;;  %v6560_v16 = vld [vmem:[#allocation7 + $0x84] ss:$16 sps:$4 sm:$0xff]  }
 0x1c8   :  { %1745 = vmatpush1.bf16.msra.mxu0 %v6546_v6  ;;  %1909 = vmatpush1.bf16.msra.mxu1 %v6547_v7  ;;  %v6562_v17 = vld [vmem:[#allocation7 + $0x8c] ss:$16 sps:$4 sm:$0xff]   ;;  %v6564_v18 = vld [vmem:[#allocation7 + $0x80] ss:$16 sps:$4 sm:$0xff]   ;;  %v6565_v19 = vld [vmem:[#allocation7 + $0x88] ss:$16 sps:$4 sm:$0xff]  }
 0x1c9   :  { %1746 = vmatprep.subr.bf16.mxu0 %v6548_v8  ;;  %1910 = vmatprep.subr.bf16.mxu1 %v6550_v9  ;;  %v6566_v20 = vld [vmem:[#allocation7 + $0xa4] ss:$16 sps:$4 sm:$0xff]   ;;  %v6568_v21 = vld [vmem:[#allocation7 + $0xac] ss:$16 sps:$4 sm:$0xff]   ;;  %v6570_v22 = vld [vmem:[#allocation7 + $0xa0] ss:$16 sps:$4 sm:$0xff]  }
 0x1ca   :  { %v6571_v23 = vld [vmem:[#allocation7 + $0xa8] ss:$16 sps:$4 sm:$0xff]   ;;  %v6572_v24 = vld [vmem:[#allocation7 + $0xc4] ss:$16 sps:$4 sm:$0xff]   ;;  %v6574_v25 = vld [vmem:[#allocation7 + $0xcc] ss:$16 sps:$4 sm:$0xff]  }
 0x1cb   :  { %v6576_v26 = vld [vmem:[#allocation7 + $0xc0] ss:$16 sps:$4 sm:$0xff]   ;;  %v6577_v27 = vld [vmem:[#allocation7 + $0xc8] ss:$16 sps:$4 sm:$0xff]   ;;  %v6578_v28 = vld [vmem:[#allocation7 + $0xe4] ss:$16 sps:$4 sm:$0xff]  }
 0x1cc   :  { %1747 = vmatpush1.bf16.msra.mxu0 %v6552_v10  ;;  %1911 = vmatpush1.bf16.msra.mxu1 %v6553_v11  ;;  %v6580_v29 = vld [vmem:[#allocation7 + $0xec] ss:$16 sps:$4 sm:$0xff]   ;;  %v6582_v30 = vld [vmem:[#allocation7 + $0xe0] ss:$16 sps:$4 sm:$0xff]   ;;  %v6583_v31 = vld [vmem:[#allocation7 + $0xe8] ss:$16 sps:$4 sm:$0xff]  }
 0x1cd   :  { %1748 = vmatprep.subr.bf16.mxu0 %v6554_v12  ;;  %1912 = vmatprep.subr.bf16.mxu1 %v6556_v13  ;;  %v6584_v32 = vld [vmem:[#allocation7 + $0x104] ss:$16 sps:$4 sm:$0xff]   ;;  %v6586_v33 = vld [vmem:[#allocation7 + $0x10c] ss:$16 sps:$4 sm:$0xff]   ;;  %v6588_v34 = vld [vmem:[#allocation7 + $0x100] ss:$16 sps:$4 sm:$0xff]  }
 0x1ce   :  { %v6589_v35 = vld [vmem:[#allocation7 + $0x108] ss:$16 sps:$4 sm:$0xff]   ;;  %v6590_v36 = vld [vmem:[#allocation7 + $0x124] ss:$16 sps:$4 sm:$0xff]   ;;  %v6592_v37 = vld [vmem:[#allocation7 + $0x12c] ss:$16 sps:$4 sm:$0xff]  }
 0x1cf   :  { %v6594_v38 = vld [vmem:[#allocation7 + $0x120] ss:$16 sps:$4 sm:$0xff]   ;;  %v6595_v39 = vld [vmem:[#allocation7 + $0x128] ss:$16 sps:$4 sm:$0xff]   ;;  %v6596_v40 = vld [vmem:[#allocation7 + $0x144] ss:$16 sps:$4 sm:$0xff]  }
 0x1d0   :  { %1749 = vmatpush1.bf16.msra.mxu0 %v6558_v14  ;;  %1913 = vmatpush1.bf16.msra.mxu1 %v6559_v15  ;;  %v6598_v41 = vld [vmem:[#allocation7 + $0x14c] ss:$16 sps:$4 sm:$0xff]   ;;  %v6600_v42 = vld [vmem:[#allocation7 + $0x140] ss:$16 sps:$4 sm:$0xff]   ;;  %v6601_v43 = vld [vmem:[#allocation7 + $0x148] ss:$16 sps:$4 sm:$0xff]  }
 0x1d1   :  { %1750 = vmatprep.subr.bf16.mxu0 %v6560_v16  ;;  %1914 = vmatprep.subr.bf16.mxu1 %v6562_v17  ;;  %v6602_v44 = vld [vmem:[#allocation7 + $0x164] ss:$16 sps:$4 sm:$0xff]   ;;  %v6604_v45 = vld [vmem:[#allocation7 + $0x16c] ss:$16 sps:$4 sm:$0xff]   ;;  %v6606_v47 = vld [vmem:[#allocation7 + $0x160] ss:$16 sps:$4 sm:$0xff]  }
 0x1d2   :  { %v347_v46 = vld [vmem:[#allocation2] sm:$0xff]  ;;  %v6607_v49 = vld [vmem:[#allocation7 + $0x168] ss:$16 sps:$4 sm:$0xff]   ;;  %v6608_v50 = vld [vmem:[#allocation7 + $0x184] ss:$16 sps:$4 sm:$0xff]   ;;  %s8103_s21 = smov [#allocation38]  }
 0x1d3   :  { %v5763_v48 = vcombine.high %v347_v46, %v347_v46  ;;  %v6610_v51 = vld [vmem:[#allocation7 + $0x18c] ss:$16 sps:$4 sm:$0xff]   ;;  %v6612_v52 = vld [vmem:[#allocation7 + $0x180] ss:$16 sps:$4 sm:$0xff]   ;;  %v6613_v53 = vld [vmem:[#allocation7 + $0x188] ss:$16 sps:$4 sm:$0xff]   ;;  %v5762_v4 = vcombine.low %v347_v46, %v347_v46 }
 0x1d4   :  { %1751 = vmatpush1.bf16.msra.mxu0 %v6564_v18  ;;  %1915 = vmatpush1.bf16.msra.mxu1 %v6565_v19  ;;  %v6614_v54 = vld [vmem:[#allocation7 + $0x1a4] ss:$16 sps:$4 sm:$0xff]   ;;  %v6616_v55 = vld [vmem:[#allocation7 + $0x1ac] ss:$16 sps:$4 sm:$0xff]   ;;  %v6618_v56 = vld [vmem:[#allocation7 + $0x1a0] ss:$16 sps:$4 sm:$0xff]  }
 0x1d5   :  { %1752 = vmatprep.subr.bf16.mxu0 %v6566_v20  ;;  %1916 = vmatprep.subr.bf16.mxu1 %v6568_v21  ;;  %v6619_v57 = vld [vmem:[#allocation7 + $0x1a8] ss:$16 sps:$4 sm:$0xff]   ;;  %v6620_v58 = vld [vmem:[#allocation7 + $0x1c4] ss:$16 sps:$4 sm:$0xff]   ;;  %v6622_v59 = vld [vmem:[#allocation7 + $0x1cc] ss:$16 sps:$4 sm:$0xff]  }
 0x1d6   :  { %1774 = vmatprep.mubr.bf16.mxu0 %v5763_v48  ;;  %1938 = vmatprep.mubr.bf16.mxu1 %v5763_v48  ;;  %v6624_v60 = vld [vmem:[#allocation7 + $0x1c0] ss:$16 sps:$4 sm:$0xff]   ;;  %v6625_v61 = vld [vmem:[#allocation7 + $0x1c8] ss:$16 sps:$4 sm:$0xff]   ;;  %v6626_v62 = vld [vmem:[#allocation7 + $0x1e4] ss:$16 sps:$4 sm:$0xff]  }
 0x1d7   :  { %v6628_v63 = vld [vmem:[#allocation7 + $0x1ec] ss:$16 sps:$4 sm:$0xff]   ;;  %v6630_v0 = vld [vmem:[#allocation7 + $0x1e0] ss:$16 sps:$4 sm:$0xff]   ;;  %v6631_v1 = vld [vmem:[#allocation7 + $0x1e8] ss:$16 sps:$4 sm:$0xff]  }
 0x1d8   :  { %1753 = vmatpush1.bf16.msra.mxu0 %v6570_v22  ;;  %1917 = vmatpush1.bf16.msra.mxu1 %v6571_v23  ;;  %v6636_v2 = vld [vmem:[#allocation7 + $0x204] ss:$16 sps:$4 sm:$0xff]   ;;  %v6639_v3 = vld [vmem:[#allocation7 + $0x20c] ss:$16 sps:$4 sm:$0xff]   ;;  %v6634_v5 = vld [vmem:[#allocation7 + $0x200] ss:$16 sps:$4 sm:$0xff]  }
 0x1d9   :  { %1754 = vmatprep.subr.bf16.mxu0 %v6572_v24  ;;  %1918 = vmatprep.subr.bf16.mxu1 %v6574_v25  ;;  %v6637_v6 = vld [vmem:[#allocation7 + $0x208] ss:$16 sps:$4 sm:$0xff]   ;;  %v6642_v7 = vld [vmem:[#allocation7 + $0x224] ss:$16 sps:$4 sm:$0xff]   ;;  %v6645_v8 = vld [vmem:[#allocation7 + $0x22c] ss:$16 sps:$4 sm:$0xff]  }
 0x1da   :  { %v6640_v9 = vld [vmem:[#allocation7 + $0x220] ss:$16 sps:$4 sm:$0xff]   ;;  %v6643_v10 = vld [vmem:[#allocation7 + $0x228] ss:$16 sps:$4 sm:$0xff]   ;;  %v6648_v11 = vld [vmem:[#allocation7 + $0x244] ss:$16 sps:$4 sm:$0xff]  }
 0x1db   :  { %v6651_v12 = vld [vmem:[#allocation7 + $0x24c] ss:$16 sps:$4 sm:$0xff]   ;;  %v6646_v13 = vld [vmem:[#allocation7 + $0x240] ss:$16 sps:$4 sm:$0xff]   ;;  %v6649_v14 = vld [vmem:[#allocation7 + $0x248] ss:$16 sps:$4 sm:$0xff]  }
 0x1dc   :  { %1755 = vmatpush1.bf16.msra.mxu0 %v6576_v26  ;;  %1919 = vmatpush1.bf16.msra.mxu1 %v6577_v27  ;;  %v6654_v15 = vld [vmem:[#allocation7 + $0x264] ss:$16 sps:$4 sm:$0xff]   ;;  %v6657_v16 = vld [vmem:[#allocation7 + $0x26c] ss:$16 sps:$4 sm:$0xff]   ;;  %v6652_v17 = vld [vmem:[#allocation7 + $0x260] ss:$16 sps:$4 sm:$0xff]  }
 0x1dd   :  { %1756 = vmatprep.subr.bf16.mxu0 %v6578_v28  ;;  %1920 = vmatprep.subr.bf16.mxu1 %v6580_v29  ;;  %v6655_v18 = vld [vmem:[#allocation7 + $0x268] ss:$16 sps:$4 sm:$0xff]   ;;  %v6660_v19 = vld [vmem:[#allocation7 + $0x284] ss:$16 sps:$4 sm:$0xff]   ;;  %v6663_v20 = vld [vmem:[#allocation7 + $0x28c] ss:$16 sps:$4 sm:$0xff]  }
 0x1de   :  { %v6658_v21 = vld [vmem:[#allocation7 + $0x280] ss:$16 sps:$4 sm:$0xff]   ;;  %v6661_v22 = vld [vmem:[#allocation7 + $0x288] ss:$16 sps:$4 sm:$0xff]   ;;  %v6666_v23 = vld [vmem:[#allocation7 + $0x2a4] ss:$16 sps:$4 sm:$0xff]  }
 0x1df   :  { %v6669_v24 = vld [vmem:[#allocation7 + $0x2ac] ss:$16 sps:$4 sm:$0xff]   ;;  %v6664_v25 = vld [vmem:[#allocation7 + $0x2a0] ss:$16 sps:$4 sm:$0xff]   ;;  %v6667_v26 = vld [vmem:[#allocation7 + $0x2a8] ss:$16 sps:$4 sm:$0xff]  }
 0x1e0   :  { %1757 = vmatpush1.bf16.msra.mxu0 %v6582_v30  ;;  %1921 = vmatpush1.bf16.msra.mxu1 %v6583_v31  ;;  %v6672_v27 = vld [vmem:[#allocation7 + $0x2c4] ss:$16 sps:$4 sm:$0xff]   ;;  %v6675_v28 = vld [vmem:[#allocation7 + $0x2cc] ss:$16 sps:$4 sm:$0xff]   ;;  %v6670_v31 = vld [vmem:[#allocation7 + $0x2c0] ss:$16 sps:$4 sm:$0xff]  }
 0x1e1   :  { %1758 = vmatprep.subr.bf16.mxu0 %v6584_v32  ;;  %1922 = vmatprep.subr.bf16.mxu1 %v6586_v33  ;;  %v8525_v29 = vld [vmem:[#allocation2 + $0x8] sm:$0xff]  ;;  %v6699_v46 = vld [vmem:[#allocation7 + $0x34c] ss:$16 sps:$4 sm:$0xff]   ;;  %s5737_s16 = sshll.u32 %s8103_s21, 4  ;;  %s5738_s16 = int_to_ptr.vmem [resolvable:$true] %s5737_s16 }
 0x1e2   :  { %v5765_v30 = vcombine.high %v8525_v29, %v8525_v29  ;;  %v6673_v32 = vld [vmem:[#allocation7 + $0x2c8] ss:$16 sps:$4 sm:$0xff]   ;;  %v6678_v33 = vld [vmem:[#allocation7 + $0x2e4] ss:$16 sps:$4 sm:$0xff]   ;;  %s8001_s11 = scalar_lea.vmem %s5738_s16, 256  ;;  %p8006_p9 = scmp.lt.s32.totalorder %s5738_s16, %s5738_s16 }
 0x1e3   :  { %v6697_v48 = vld [vmem:[#allocation7 + $0x348] ss:$16 sps:$4 sm:$0xff]   ;;  %p8002_p8 = scmp.ne.s32.totalorder %s5738_s16, %s8001_s11  ;;  %p8007_p10 = scmp.lt.s32.totalorder %s8001_s11, %s8001_s11 }
 0x1e4   :  { %1759 = vmatpush1.bf16.msra.mxu0 %v6588_v34  ;;  %1923 = vmatpush1.bf16.msra.mxu1 %v6589_v35  ;;  %v6681_v34 = vld [vmem:[#allocation7 + $0x2ec] ss:$16 sps:$4 sm:$0xff]   ;;  %v6676_v35 = vld [vmem:[#allocation7 + $0x2e0] ss:$16 sps:$4 sm:$0xff]  }
 0x1e5   :  { %1760 = vmatprep.subr.bf16.mxu0 %v6590_v36  ;;  %1924 = vmatprep.subr.bf16.mxu1 %v6592_v37  ;;  %v6679_v36 = vld [vmem:[#allocation7 + $0x2e8] ss:$16 sps:$4 sm:$0xff]   ;;  %v6684_v37 = vld [vmem:[#allocation7 + $0x304] ss:$16 sps:$4 sm:$0xff]   ;;  %p8008_p11 = por %p8007_p10, %p8006_p9 }
 0x1e7   :  { %p8009_p12 = pnand %p8008_p11, %p8002_p8 }
 0x1e8   :  { %1761 = vmatpush1.bf16.msra.mxu0 %v6594_v38  ;;  %1925 = vmatpush1.bf16.msra.mxu1 %v6595_v39  ;;  %v6687_v38 = vld [vmem:[#allocation7 + $0x30c] ss:$16 sps:$4 sm:$0xff]   ;;  %v6682_v39 = vld [vmem:[#allocation7 + $0x300] ss:$16 sps:$4 sm:$0xff]  }
 0x1e9   :  { %1762 = vmatprep.subr.bf16.mxu0 %v6596_v40  ;;  %1926 = vmatprep.subr.bf16.mxu1 %v6598_v41  ;;  %v6685_v40 = vld [vmem:[#allocation7 + $0x308] ss:$16 sps:$4 sm:$0xff]   ;;  %v6690_v41 = vld [vmem:[#allocation7 + $0x324] ss:$16 sps:$4 sm:$0xff]  }
 0x1ec   :  { %1763 = vmatpush1.bf16.msra.mxu0 %v6600_v42  ;;  %1927 = vmatpush1.bf16.msra.mxu1 %v6601_v43  ;;  %v6693_v42 = vld [vmem:[#allocation7 + $0x32c] ss:$16 sps:$4 sm:$0xff]   ;;  %v6688_v43 = vld [vmem:[#allocation7 + $0x320] ss:$16 sps:$4 sm:$0xff]  }
 0x1ed   :  { %1764 = vmatprep.subr.bf16.mxu0 %v6602_v44  ;;  %1928 = vmatprep.subr.bf16.mxu1 %v6604_v45  ;;  %v6691_v44 = vld [vmem:[#allocation7 + $0x328] ss:$16 sps:$4 sm:$0xff]   ;;  %v6696_v45 = vld [vmem:[#allocation7 + $0x344] ss:$16 sps:$4 sm:$0xff]  }
 0x1f0   :  { %1765 = vmatpush1.bf16.msra.mxu0 %v6606_v47  ;;  %1929 = vmatpush1.bf16.msra.mxu1 %v6607_v49  ;;  %v6694_v47 = vld [vmem:[#allocation7 + $0x340] ss:$16 sps:$4 sm:$0xff]   ;;  %v6702_v49 = vld [vmem:[#allocation7 + $0x364] ss:$16 sps:$4 sm:$0xff]  }
 0x1f1   :  { %1766 = vmatprep.subr.bf16.mxu0 %v6608_v50  ;;  %1930 = vmatprep.subr.bf16.mxu1 %v6610_v51  ;;  %v6705_v50 = vld [vmem:[#allocation7 + $0x36c] ss:$16 sps:$4 sm:$0xff]   ;;  %v6700_v51 = vld [vmem:[#allocation7 + $0x360] ss:$16 sps:$4 sm:$0xff]  }
 0x1f4   :  { %1767 = vmatpush1.bf16.msra.mxu0 %v6612_v52  ;;  %1931 = vmatpush1.bf16.msra.mxu1 %v6613_v53  ;;  %v6703_v52 = vld [vmem:[#allocation7 + $0x368] ss:$16 sps:$4 sm:$0xff]   ;;  %v6708_v53 = vld [vmem:[#allocation7 + $0x384] ss:$16 sps:$4 sm:$0xff]  }
 0x1f5   :  { %1768 = vmatprep.subr.bf16.mxu0 %v6614_v54  ;;  %1932 = vmatprep.subr.bf16.mxu1 %v6616_v55  ;;  %v6711_v54 = vld [vmem:[#allocation7 + $0x38c] ss:$16 sps:$4 sm:$0xff]   ;;  %v6706_v55 = vld [vmem:[#allocation7 + $0x380] ss:$16 sps:$4 sm:$0xff]  }
 0x1f8   :  { %1769 = vmatpush1.bf16.msra.mxu0 %v6618_v56  ;;  %1933 = vmatpush1.bf16.msra.mxu1 %v6619_v57  ;;  %v6709_v56 = vld [vmem:[#allocation7 + $0x388] ss:$16 sps:$4 sm:$0xff]   ;;  %v6714_v57 = vld [vmem:[#allocation7 + $0x3a4] ss:$16 sps:$4 sm:$0xff]  }
 0x1f9   :  { %1770 = vmatprep.subr.bf16.mxu0 %v6620_v58  ;;  %1934 = vmatprep.subr.bf16.mxu1 %v6622_v59  ;;  %v6717_v58 = vld [vmem:[#allocation7 + $0x3ac] ss:$16 sps:$4 sm:$0xff]   ;;  %v6712_v59 = vld [vmem:[#allocation7 + $0x3a0] ss:$16 sps:$4 sm:$0xff]  }
 0x1fc   :  { %1771 = vmatpush1.bf16.msra.mxu0 %v6624_v60  ;;  %1935 = vmatpush1.bf16.msra.mxu1 %v6625_v61  ;;  %v6715_v60 = vld [vmem:[#allocation7 + $0x3a8] ss:$16 sps:$4 sm:$0xff]   ;;  %v6720_v61 = vld [vmem:[#allocation7 + $0x3c4] ss:$16 sps:$4 sm:$0xff]  }
 0x1fd   :  { %1772 = vmatprep.subr.bf16.mxu0 %v6626_v62  ;;  %1936 = vmatprep.subr.bf16.mxu1 %v6628_v63  ;;  %v6723_v62 = vld [vmem:[#allocation7 + $0x3cc] ss:$16 sps:$4 sm:$0xff]   ;;  %v6718_v63 = vld [vmem:[#allocation7 + $0x3c0] ss:$16 sps:$4 sm:$0xff]  }
 0x200   :  { %1773 = vmatpush1.bf16.msra.mxu0 %v6630_v0  ;;  %1937 = vmatpush1.bf16.msra.mxu1 %v6631_v1  ;;  %v6721_v0 = vld [vmem:[#allocation7 + $0x3c8] ss:$16 sps:$4 sm:$0xff]   ;;  %v6726_v1 = vld [vmem:[#allocation7 + $0x3e4] ss:$16 sps:$4 sm:$0xff]  }
 0x201   :  { %1783 = vmatprep.subr.bf16.mxu0 %v6636_v2  ;;  %1947 = vmatprep.subr.bf16.mxu1 %v6639_v3  ;;  %v6729_v2 = vld [vmem:[#allocation7 + $0x3ec] ss:$16 sps:$4 sm:$0xff]   ;;  %v6724_v3 = vld [vmem:[#allocation7 + $0x3e0] ss:$16 sps:$4 sm:$0xff]  }
 0x203   :  { %1775 = vmatmul.mubr.bf16.vlgmr.msra.gmra.mrb[0].mxu0 %v5762_v4  ;;  %1939 = vmatmul.mubr.bf16.vlgmr.msra.gmra.mrb[0].mxu1 %v5762_v4  ;;  %v6727_v4 = vld [vmem:[#allocation7 + $0x3e8] ss:$16 sps:$4 sm:$0xff]  }
 0x204   :  { %1784 = vmatpush1.bf16.msra.mxu0 %v6634_v5  ;;  %1948 = vmatpush1.bf16.msra.mxu1 %v6637_v6  ;;  %v6734_v5 = vld [vmem:[#allocation7 + $0x404] ss:$16 sps:$4 sm:$0xff]   ;;  %v6737_v6 = vld [vmem:[#allocation7 + $0x40c] ss:$16 sps:$4 sm:$0xff]  }
 0x205   :  { %1785 = vmatprep.subr.bf16.mxu0 %v6642_v7  ;;  %1949 = vmatprep.subr.bf16.mxu1 %v6645_v8  ;;  %v5764_v7 = vcombine.low %v8525_v29, %v8525_v29  ;;  %v6732_v8 = vld [vmem:[#allocation7 + $0x400] ss:$16 sps:$4 sm:$0xff]   ;;  %v6767_v29 = vld [vmem:[#allocation7 + $0x4ac] ss:$16 sps:$4 sm:$0xff]  }
 0x206   :  { %1815 = vmatprep.mubr.bf16.mxu0 %v5765_v30  ;;  %1979 = vmatprep.mubr.bf16.mxu1 %v5765_v30  ;;  %v6762_v30 = vld [vmem:[#allocation7 + $0x4a0] ss:$16 sps:$4 sm:$0xff]  }
 0x208   :  { %1786 = vmatpush1.bf16.msra.mxu0 %v6640_v9  ;;  %1950 = vmatpush1.bf16.msra.mxu1 %v6643_v10  ;;  %v6735_v9 = vld [vmem:[#allocation7 + $0x408] ss:$16 sps:$4 sm:$0xff]   ;;  %v6740_v10 = vld [vmem:[#allocation7 + $0x424] ss:$16 sps:$4 sm:$0xff]  }
 0x209   :  { %1787 = vmatprep.subr.bf16.mxu0 %v6648_v11  ;;  %1951 = vmatprep.subr.bf16.mxu1 %v6651_v12  ;;  %v8531_v11 = vld [vmem:[#allocation2 + $0x10] sm:$0xff] }
 0x20a   :  { %v6743_v12 = vld [vmem:[#allocation7 + $0x42c] ss:$16 sps:$4 sm:$0xff]  }
 0x20c   :  { %1788 = vmatpush1.bf16.msra.mxu0 %v6646_v13  ;;  %1952 = vmatpush1.bf16.msra.mxu1 %v6649_v14  ;;  %v5767_v13 = vcombine.high %v8531_v11, %v8531_v11  ;;  %v6738_v14 = vld [vmem:[#allocation7 + $0x420] ss:$16 sps:$4 sm:$0xff]  }
 0x20d   :  { %1789 = vmatprep.subr.bf16.mxu0 %v6654_v15  ;;  %1953 = vmatprep.subr.bf16.mxu1 %v6657_v16  ;;  %v6741_v15 = vld [vmem:[#allocation7 + $0x428] ss:$16 sps:$4 sm:$0xff]   ;;  %v6746_v16 = vld [vmem:[#allocation7 + $0x444] ss:$16 sps:$4 sm:$0xff]  }
 0x210   :  { %1790 = vmatpush1.bf16.msra.mxu0 %v6652_v17  ;;  %1954 = vmatpush1.bf16.msra.mxu1 %v6655_v18  ;;  %v6749_v17 = vld [vmem:[#allocation7 + $0x44c] ss:$16 sps:$4 sm:$0xff]   ;;  %v6744_v18 = vld [vmem:[#allocation7 + $0x440] ss:$16 sps:$4 sm:$0xff]  }
 0x211   :  { %1791 = vmatprep.subr.bf16.mxu0 %v6660_v19  ;;  %1955 = vmatprep.subr.bf16.mxu1 %v6663_v20  ;;  %v6747_v19 = vld [vmem:[#allocation7 + $0x448] ss:$16 sps:$4 sm:$0xff]   ;;  %v6752_v20 = vld [vmem:[#allocation7 + $0x464] ss:$16 sps:$4 sm:$0xff]  }
 0x214   :  { %1792 = vmatpush1.bf16.msra.mxu0 %v6658_v21  ;;  %1956 = vmatpush1.bf16.msra.mxu1 %v6661_v22  ;;  %v6755_v21 = vld [vmem:[#allocation7 + $0x46c] ss:$16 sps:$4 sm:$0xff]   ;;  %v6750_v22 = vld [vmem:[#allocation7 + $0x460] ss:$16 sps:$4 sm:$0xff]  }
 0x215   :  { %1793 = vmatprep.subr.bf16.mxu0 %v6666_v23  ;;  %1957 = vmatprep.subr.bf16.mxu1 %v6669_v24  ;;  %v6753_v23 = vld [vmem:[#allocation7 + $0x468] ss:$16 sps:$4 sm:$0xff]   ;;  %v6758_v24 = vld [vmem:[#allocation7 + $0x484] ss:$16 sps:$4 sm:$0xff]  }
 0x218   :  { %1794 = vmatpush1.bf16.msra.mxu0 %v6664_v25  ;;  %1958 = vmatpush1.bf16.msra.mxu1 %v6667_v26  ;;  %v6761_v25 = vld [vmem:[#allocation7 + $0x48c] ss:$16 sps:$4 sm:$0xff]   ;;  %v6756_v26 = vld [vmem:[#allocation7 + $0x480] ss:$16 sps:$4 sm:$0xff]  }
 0x219   :  { %1795 = vmatprep.subr.bf16.mxu0 %v6672_v27  ;;  %1959 = vmatprep.subr.bf16.mxu1 %v6675_v28  ;;  %v6759_v27 = vld [vmem:[#allocation7 + $0x488] ss:$16 sps:$4 sm:$0xff]   ;;  %v6764_v28 = vld [vmem:[#allocation7 + $0x4a4] ss:$16 sps:$4 sm:$0xff]  }
 0x21c   :  { %1796 = vmatpush1.bf16.msra.mxu0 %v6670_v31  ;;  %1960 = vmatpush1.bf16.msra.mxu1 %v6673_v32  ;;  %v6765_v31 = vld [vmem:[#allocation7 + $0x4a8] ss:$16 sps:$4 sm:$0xff]   ;;  %v6770_v32 = vld [vmem:[#allocation7 + $0x4c4] ss:$16 sps:$4 sm:$0xff]  }
 0x21d   :  { %1797 = vmatprep.subr.bf16.mxu0 %v6678_v33  ;;  %1961 = vmatprep.subr.bf16.mxu1 %v6681_v34  ;;  %v6773_v33 = vld [vmem:[#allocation7 + $0x4cc] ss:$16 sps:$4 sm:$0xff]   ;;  %v6768_v34 = vld [vmem:[#allocation7 + $0x4c0] ss:$16 sps:$4 sm:$0xff]  }
 0x220   :  { %1798 = vmatpush1.bf16.msra.mxu0 %v6676_v35  ;;  %1962 = vmatpush1.bf16.msra.mxu1 %v6679_v36  ;;  %v6771_v35 = vld [vmem:[#allocation7 + $0x4c8] ss:$16 sps:$4 sm:$0xff]   ;;  %v6776_v36 = vld [vmem:[#allocation7 + $0x4e4] ss:$16 sps:$4 sm:$0xff]  }
 0x221   :  { %1799 = vmatprep.subr.bf16.mxu0 %v6684_v37  ;;  %1963 = vmatprep.subr.bf16.mxu1 %v6687_v38  ;;  %v6779_v37 = vld [vmem:[#allocation7 + $0x4ec] ss:$16 sps:$4 sm:$0xff]   ;;  %v6774_v38 = vld [vmem:[#allocation7 + $0x4e0] ss:$16 sps:$4 sm:$0xff]  }
 0x224   :  { %1800 = vmatpush1.bf16.msra.mxu0 %v6682_v39  ;;  %1964 = vmatpush1.bf16.msra.mxu1 %v6685_v40  ;;  %v6777_v39 = vld [vmem:[#allocation7 + $0x4e8] ss:$16 sps:$4 sm:$0xff]   ;;  %v6782_v40 = vld [vmem:[#allocation7 + $0x504] ss:$16 sps:$4 sm:$0xff]  }
 0x225   :  { %1801 = vmatprep.subr.bf16.mxu0 %v6690_v41  ;;  %1965 = vmatprep.subr.bf16.mxu1 %v6693_v42  ;;  %v6785_v41 = vld [vmem:[#allocation7 + $0x50c] ss:$16 sps:$4 sm:$0xff]   ;;  %v6780_v42 = vld [vmem:[#allocation7 + $0x500] ss:$16 sps:$4 sm:$0xff]  }
 0x228   :  { %1802 = vmatpush1.bf16.msra.mxu0 %v6688_v43  ;;  %1966 = vmatpush1.bf16.msra.mxu1 %v6691_v44  ;;  %v6783_v43 = vld [vmem:[#allocation7 + $0x508] ss:$16 sps:$4 sm:$0xff]   ;;  %v6788_v44 = vld [vmem:[#allocation7 + $0x524] ss:$16 sps:$4 sm:$0xff]  }
 0x229   :  { %1803 = vmatprep.subr.bf16.mxu0 %v6696_v45  ;;  %1967 = vmatprep.subr.bf16.mxu1 %v6699_v46  ;;  %v6791_v45 = vld [vmem:[#allocation7 + $0x52c] ss:$16 sps:$4 sm:$0xff]   ;;  %v6786_v46 = vld [vmem:[#allocation7 + $0x520] ss:$16 sps:$4 sm:$0xff]  }
 0x22c   :  { %1804 = vmatpush1.bf16.msra.mxu0 %v6694_v47  ;;  %1968 = vmatpush1.bf16.msra.mxu1 %v6697_v48  ;;  %v6789_v47 = vld [vmem:[#allocation7 + $0x528] ss:$16 sps:$4 sm:$0xff]   ;;  %v6794_v48 = vld [vmem:[#allocation7 + $0x544] ss:$16 sps:$4 sm:$0xff]  }
 0x22d   :  { %1805 = vmatprep.subr.bf16.mxu0 %v6702_v49  ;;  %1969 = vmatprep.subr.bf16.mxu1 %v6705_v50  ;;  %v6797_v49 = vld [vmem:[#allocation7 + $0x54c] ss:$16 sps:$4 sm:$0xff]   ;;  %v6792_v50 = vld [vmem:[#allocation7 + $0x540] ss:$16 sps:$4 sm:$0xff]  }
 0x230   :  { %1806 = vmatpush1.bf16.msra.mxu0 %v6700_v51  ;;  %1970 = vmatpush1.bf16.msra.mxu1 %v6703_v52  ;;  %v6795_v51 = vld [vmem:[#allocation7 + $0x548] ss:$16 sps:$4 sm:$0xff]   ;;  %v6800_v52 = vld [vmem:[#allocation7 + $0x564] ss:$16 sps:$4 sm:$0xff]  }
 0x231   :  { %1807 = vmatprep.subr.bf16.mxu0 %v6708_v53  ;;  %1971 = vmatprep.subr.bf16.mxu1 %v6711_v54  ;;  %v6803_v53 = vld [vmem:[#allocation7 + $0x56c] ss:$16 sps:$4 sm:$0xff]   ;;  %v6798_v54 = vld [vmem:[#allocation7 + $0x560] ss:$16 sps:$4 sm:$0xff]  }
 0x234   :  { %1808 = vmatpush1.bf16.msra.mxu0 %v6706_v55  ;;  %1972 = vmatpush1.bf16.msra.mxu1 %v6709_v56  ;;  %v6801_v55 = vld [vmem:[#allocation7 + $0x568] ss:$16 sps:$4 sm:$0xff]   ;;  %v6806_v56 = vld [vmem:[#allocation7 + $0x584] ss:$16 sps:$4 sm:$0xff]  }
 0x235   :  { %1809 = vmatprep.subr.bf16.mxu0 %v6714_v57  ;;  %1973 = vmatprep.subr.bf16.mxu1 %v6717_v58  ;;  %v6809_v57 = vld [vmem:[#allocation7 + $0x58c] ss:$16 sps:$4 sm:$0xff]   ;;  %v6804_v58 = vld [vmem:[#allocation7 + $0x580] ss:$16 sps:$4 sm:$0xff]  }
 0x238   :  { %1810 = vmatpush1.bf16.msra.mxu0 %v6712_v59  ;;  %1974 = vmatpush1.bf16.msra.mxu1 %v6715_v60  ;;  %v6807_v59 = vld [vmem:[#allocation7 + $0x588] ss:$16 sps:$4 sm:$0xff]   ;;  %v6812_v60 = vld [vmem:[#allocation7 + $0x5a4] ss:$16 sps:$4 sm:$0xff]  }
 0x239   :  { %1811 = vmatprep.subr.bf16.mxu0 %v6720_v61  ;;  %1975 = vmatprep.subr.bf16.mxu1 %v6723_v62  ;;  %v6815_v61 = vld [vmem:[#allocation7 + $0x5ac] ss:$16 sps:$4 sm:$0xff]   ;;  %v6810_v62 = vld [vmem:[#allocation7 + $0x5a0] ss:$16 sps:$4 sm:$0xff]  }
 0x23c   :  { %1812 = vmatpush1.bf16.msra.mxu0 %v6718_v63  ;;  %1976 = vmatpush1.bf16.msra.mxu1 %v6721_v0  ;;  %v6813_v63 = vld [vmem:[#allocation7 + $0x5a8] ss:$16 sps:$4 sm:$0xff]   ;;  %v6818_v0 = vld [vmem:[#allocation7 + $0x5c4] ss:$16 sps:$4 sm:$0xff]  }
 0x23d   :  { %1813 = vmatprep.subr.bf16.mxu0 %v6726_v1  ;;  %1977 = vmatprep.subr.bf16.mxu1 %v6729_v2  ;;  %v6821_v1 = vld [vmem:[#allocation7 + $0x5cc] ss:$16 sps:$4 sm:$0xff]   ;;  %v6816_v2 = vld [vmem:[#allocation7 + $0x5c0] ss:$16 sps:$4 sm:$0xff]  }
 0x240   :  { %1814 = vmatpush1.bf16.msra.mxu0 %v6724_v3  ;;  %1978 = vmatpush1.bf16.msra.mxu1 %v6727_v4  ;;  %v6819_v3 = vld [vmem:[#allocation7 + $0x5c8] ss:$16 sps:$4 sm:$0xff]   ;;  %v6824_v4 = vld [vmem:[#allocation7 + $0x5e4] ss:$16 sps:$4 sm:$0xff]  }
 0x241   :  { %1824 = vmatprep.subr.bf16.mxu0 %v6734_v5  ;;  %1988 = vmatprep.subr.bf16.mxu1 %v6737_v6  ;;  %v6827_v5 = vld [vmem:[#allocation7 + $0x5ec] ss:$16 sps:$4 sm:$0xff]   ;;  %v6822_v6 = vld [vmem:[#allocation7 + $0x5e0] ss:$16 sps:$4 sm:$0xff]  }
 0x243   :  { %1816 = vmatmul.mubr.bf16.vlgmr.msra.gmra.mrb[0].mxu0 %v5764_v7  ;;  %1980 = vmatmul.mubr.bf16.vlgmr.msra.gmra.mrb[0].mxu1 %v5764_v7  ;;  %v6825_v7 = vld [vmem:[#allocation7 + $0x5e8] ss:$16 sps:$4 sm:$0xff]  }
 0x244   :  { %1825 = vmatpush1.bf16.msra.mxu0 %v6732_v8  ;;  %1989 = vmatpush1.bf16.msra.mxu1 %v6735_v9  ;;  %v6832_v8 = vld [vmem:[#allocation7 + $0x604] ss:$16 sps:$4 sm:$0xff]   ;;  %v6835_v9 = vld [vmem:[#allocation7 + $0x60c] ss:$16 sps:$4 sm:$0xff]  }
 0x245   :  { %1826 = vmatprep.subr.bf16.mxu0 %v6740_v10  ;;  %1990 = vmatprep.subr.bf16.mxu1 %v6743_v12  ;;  %v6830_v10 = vld [vmem:[#allocation7 + $0x600] ss:$16 sps:$4 sm:$0xff]   ;;  %v6833_v12 = vld [vmem:[#allocation7 + $0x608] ss:$16 sps:$4 sm:$0xff]  }
 0x246   :  { %1856 = vmatprep.mubr.bf16.mxu0 %v5767_v13  ;;  %2020 = vmatprep.mubr.bf16.mxu1 %v5767_v13  ;;  %v5766_v13 = vcombine.low %v8531_v11, %v8531_v11  ;;  %v6850_v11 = vld [vmem:[#allocation7 + $0x664] ss:$16 sps:$4 sm:$0xff]  }
 0x248   :  { %1827 = vmatpush1.bf16.msra.mxu0 %v6738_v14  ;;  %1991 = vmatpush1.bf16.msra.mxu1 %v6741_v15  ;;  %v6838_v14 = vld [vmem:[#allocation7 + $0x624] ss:$16 sps:$4 sm:$0xff]   ;;  %v6841_v15 = vld [vmem:[#allocation7 + $0x62c] ss:$16 sps:$4 sm:$0xff]  }
 0x249   :  { %1828 = vmatprep.subr.bf16.mxu0 %v6746_v16  ;;  %1992 = vmatprep.subr.bf16.mxu1 %v6749_v17  ;;  %v6836_v16 = vld [vmem:[#allocation7 + $0x620] ss:$16 sps:$4 sm:$0xff]   ;;  %v6839_v17 = vld [vmem:[#allocation7 + $0x628] ss:$16 sps:$4 sm:$0xff]  }
 0x24c   :  { %1829 = vmatpush1.bf16.msra.mxu0 %v6744_v18  ;;  %1993 = vmatpush1.bf16.msra.mxu1 %v6747_v19  ;;  %v6844_v18 = vld [vmem:[#allocation7 + $0x644] ss:$16 sps:$4 sm:$0xff]   ;;  %v6847_v19 = vld [vmem:[#allocation7 + $0x64c] ss:$16 sps:$4 sm:$0xff]  }
 0x24d   :  { %1830 = vmatprep.subr.bf16.mxu0 %v6752_v20  ;;  %1994 = vmatprep.subr.bf16.mxu1 %v6755_v21  ;;  %v6842_v20 = vld [vmem:[#allocation7 + $0x640] ss:$16 sps:$4 sm:$0xff]   ;;  %v6845_v21 = vld [vmem:[#allocation7 + $0x648] ss:$16 sps:$4 sm:$0xff]  }
 0x250   :  { %1831 = vmatpush1.bf16.msra.mxu0 %v6750_v22  ;;  %1995 = vmatpush1.bf16.msra.mxu1 %v6753_v23  ;;  %v8101_v22 = vmov 0   ;;  %v6853_v23 = vld [vmem:[#allocation7 + $0x66c] ss:$16 sps:$4 sm:$0xff]  }
 0x251   :  { %1832 = vmatprep.subr.bf16.mxu0 %v6758_v24  ;;  %1996 = vmatprep.subr.bf16.mxu1 %v6761_v25  ;;  %v6848_v24 = vld [vmem:[#allocation7 + $0x660] ss:$16 sps:$4 sm:$0xff]   ;;  %v6851_v25 = vld [vmem:[#allocation7 + $0x668] ss:$16 sps:$4 sm:$0xff]  }
 0x254   :  { %1833 = vmatpush1.bf16.msra.mxu0 %v6756_v26  ;;  %1997 = vmatpush1.bf16.msra.mxu1 %v6759_v27  ;;  %v6856_v26 = vld [vmem:[#allocation7 + $0x684] ss:$16 sps:$4 sm:$0xff]   ;;  %v6859_v27 = vld [vmem:[#allocation7 + $0x68c] ss:$16 sps:$4 sm:$0xff]  }
 0x255   :  { %1834 = vmatprep.subr.bf16.mxu0 %v6764_v28  ;;  %1998 = vmatprep.subr.bf16.mxu1 %v6767_v29  ;;  %v6854_v28 = vld [vmem:[#allocation7 + $0x680] ss:$16 sps:$4 sm:$0xff]   ;;  %v6857_v29 = vld [vmem:[#allocation7 + $0x688] ss:$16 sps:$4 sm:$0xff]  }
 0x258   :  { %1835 = vmatpush1.bf16.msra.mxu0 %v6762_v30  ;;  %1999 = vmatpush1.bf16.msra.mxu1 %v6765_v31  ;;  %v6862_v30 = vld [vmem:[#allocation7 + $0x6a4] ss:$16 sps:$4 sm:$0xff]   ;;  %v6865_v31 = vld [vmem:[#allocation7 + $0x6ac] ss:$16 sps:$4 sm:$0xff]  }
 0x259   :  { %1836 = vmatprep.subr.bf16.mxu0 %v6770_v32  ;;  %2000 = vmatprep.subr.bf16.mxu1 %v6773_v33  ;;  %v6860_v32 = vld [vmem:[#allocation7 + $0x6a0] ss:$16 sps:$4 sm:$0xff]   ;;  %v6863_v33 = vld [vmem:[#allocation7 + $0x6a8] ss:$16 sps:$4 sm:$0xff]  }
 0x25c   :  { %1837 = vmatpush1.bf16.msra.mxu0 %v6768_v34  ;;  %2001 = vmatpush1.bf16.msra.mxu1 %v6771_v35  ;;  %v6868_v34 = vld [vmem:[#allocation7 + $0x6c4] ss:$16 sps:$4 sm:$0xff]   ;;  %v6871_v35 = vld [vmem:[#allocation7 + $0x6cc] ss:$16 sps:$4 sm:$0xff]  }
 0x25d   :  { %1838 = vmatprep.subr.bf16.mxu0 %v6776_v36  ;;  %2002 = vmatprep.subr.bf16.mxu1 %v6779_v37  ;;  %v6866_v36 = vld [vmem:[#allocation7 + $0x6c0] ss:$16 sps:$4 sm:$0xff]   ;;  %v6869_v37 = vld [vmem:[#allocation7 + $0x6c8] ss:$16 sps:$4 sm:$0xff]  }
 0x260   :  { %1839 = vmatpush1.bf16.msra.mxu0 %v6774_v38  ;;  %2003 = vmatpush1.bf16.msra.mxu1 %v6777_v39  ;;  %v6874_v38 = vld [vmem:[#allocation7 + $0x6e4] ss:$16 sps:$4 sm:$0xff]   ;;  %v6877_v39 = vld [vmem:[#allocation7 + $0x6ec] ss:$16 sps:$4 sm:$0xff]  }
 0x261   :  { %1840 = vmatprep.subr.bf16.mxu0 %v6782_v40  ;;  %2004 = vmatprep.subr.bf16.mxu1 %v6785_v41  ;;  %v6872_v40 = vld [vmem:[#allocation7 + $0x6e0] ss:$16 sps:$4 sm:$0xff]   ;;  %v6875_v41 = vld [vmem:[#allocation7 + $0x6e8] ss:$16 sps:$4 sm:$0xff]  }
 0x264   :  { %1841 = vmatpush1.bf16.msra.mxu0 %v6780_v42  ;;  %2005 = vmatpush1.bf16.msra.mxu1 %v6783_v43  ;;  %v6881_v42 = vld [vmem:[#allocation13 + $0x4] ss:$8 sps:$4 sm:$0xff]   ;;  %v6878_v43 = vld [vmem:[#allocation2 + $0x18] ss:$0 sps:$4 sm:$0xff]  }
 0x265   :  { %1842 = vmatprep.subr.bf16.mxu0 %v6788_v44  ;;  %2006 = vmatprep.subr.bf16.mxu1 %v6791_v45  ;;  %v6879_v44 = vld [vmem:[#allocation13] ss:$8 sps:$4 sm:$0xff]   ;;  %v6884_v45 = vld [vmem:[#allocation13 + $0x14] ss:$8 sps:$4 sm:$0xff]  }
 0x268   :  { %1843 = vmatpush1.bf16.msra.mxu0 %v6786_v46  ;;  %2007 = vmatpush1.bf16.msra.mxu1 %v6789_v47  ;;  %v6882_v46 = vld [vmem:[#allocation13 + $0x10] ss:$8 sps:$4 sm:$0xff]   ;;  %v6887_v47 = vld [vmem:[#allocation13 + $0x24] ss:$8 sps:$4 sm:$0xff]  }
 0x269   :  { %1844 = vmatprep.subr.bf16.mxu0 %v6794_v48  ;;  %2008 = vmatprep.subr.bf16.mxu1 %v6797_v49  ;;  %v6885_v48 = vld [vmem:[#allocation13 + $0x20] ss:$8 sps:$4 sm:$0xff]   ;;  %v6890_v49 = vld [vmem:[#allocation13 + $0x34] ss:$8 sps:$4 sm:$0xff]  }
 0x26c   :  { %1845 = vmatpush1.bf16.msra.mxu0 %v6792_v50  ;;  %2009 = vmatpush1.bf16.msra.mxu1 %v6795_v51  ;;  %v6888_v50 = vld [vmem:[#allocation13 + $0x30] ss:$8 sps:$4 sm:$0xff]   ;;  %v6893_v51 = vld [vmem:[#allocation13 + $0x44] ss:$8 sps:$4 sm:$0xff]  }
 0x26d   :  { %1846 = vmatprep.subr.bf16.mxu0 %v6800_v52  ;;  %2010 = vmatprep.subr.bf16.mxu1 %v6803_v53  ;;  %v6891_v52 = vld [vmem:[#allocation13 + $0x40] ss:$8 sps:$4 sm:$0xff]   ;;  %v6896_v53 = vld [vmem:[#allocation13 + $0x54] ss:$8 sps:$4 sm:$0xff]  }
 0x270   :  { %1847 = vmatpush1.bf16.msra.mxu0 %v6798_v54  ;;  %2011 = vmatpush1.bf16.msra.mxu1 %v6801_v55  ;;  %v6894_v54 = vld [vmem:[#allocation13 + $0x50] ss:$8 sps:$4 sm:$0xff]   ;;  %v6899_v55 = vld [vmem:[#allocation13 + $0x64] ss:$8 sps:$4 sm:$0xff]  }
 0x271   :  { %1848 = vmatprep.subr.bf16.mxu0 %v6806_v56  ;;  %2012 = vmatprep.subr.bf16.mxu1 %v6809_v57  ;;  %v6897_v56 = vld [vmem:[#allocation13 + $0x60] ss:$8 sps:$4 sm:$0xff]   ;;  %v6902_v57 = vld [vmem:[#allocation13 + $0x74] ss:$8 sps:$4 sm:$0xff]  }
 0x274   :  { %1849 = vmatpush1.bf16.msra.mxu0 %v6804_v58  ;;  %2013 = vmatpush1.bf16.msra.mxu1 %v6807_v59  ;;  %v6900_v58 = vld [vmem:[#allocation13 + $0x70] ss:$8 sps:$4 sm:$0xff]   ;;  %v6905_v59 = vld [vmem:[#allocation13 + $0x84] ss:$8 sps:$4 sm:$0xff]  }
 0x275   :  { %1850 = vmatprep.subr.bf16.mxu0 %v6812_v60  ;;  %2014 = vmatprep.subr.bf16.mxu1 %v6815_v61  ;;  %v6903_v60 = vld [vmem:[#allocation13 + $0x80] ss:$8 sps:$4 sm:$0xff]   ;;  %v6908_v61 = vld [vmem:[#allocation13 + $0x94] ss:$8 sps:$4 sm:$0xff]  }
 0x278   :  { %1851 = vmatpush1.bf16.msra.mxu0 %v6810_v62  ;;  %2015 = vmatpush1.bf16.msra.mxu1 %v6813_v63  ;;  %v6906_v62 = vld [vmem:[#allocation13 + $0x90] ss:$8 sps:$4 sm:$0xff]   ;;  %v6911_v63 = vld [vmem:[#allocation13 + $0xa4] ss:$8 sps:$4 sm:$0xff]  }
 0x279   :  { %1852 = vmatprep.subr.bf16.mxu0 %v6818_v0  ;;  %2016 = vmatprep.subr.bf16.mxu1 %v6821_v1  ;;  %v6909_v0 = vld [vmem:[#allocation13 + $0xa0] ss:$8 sps:$4 sm:$0xff]   ;;  %v6914_v1 = vld [vmem:[#allocation13 + $0xb4] ss:$8 sps:$4 sm:$0xff]  }
 0x27c   :  { %1853 = vmatpush1.bf16.msra.mxu0 %v6816_v2  ;;  %2017 = vmatpush1.bf16.msra.mxu1 %v6819_v3  ;;  %v6912_v2 = vld [vmem:[#allocation13 + $0xb0] ss:$8 sps:$4 sm:$0xff]   ;;  %v6917_v3 = vld [vmem:[#allocation13 + $0xc4] ss:$8 sps:$4 sm:$0xff]  }
 0x27d   :  { %1854 = vmatprep.subr.bf16.mxu0 %v6824_v4  ;;  %2018 = vmatprep.subr.bf16.mxu1 %v6827_v5  ;;  %v6915_v4 = vld [vmem:[#allocation13 + $0xc0] ss:$8 sps:$4 sm:$0xff]   ;;  %v6920_v5 = vld [vmem:[#allocation13 + $0xd4] ss:$8 sps:$4 sm:$0xff]  }
 0x280   :  { %1855 = vmatpush1.bf16.msra.mxu0 %v6822_v6  ;;  %2019 = vmatpush1.bf16.msra.mxu1 %v6825_v7  ;;  %v6918_v6 = vld [vmem:[#allocation13 + $0xd0] ss:$8 sps:$4 sm:$0xff]   ;;  %v6923_v7 = vld [vmem:[#allocation13 + $0xe4] ss:$8 sps:$4 sm:$0xff]  }
 0x281   :  { %1865 = vmatprep.subr.bf16.mxu0 %v6832_v8  ;;  %2029 = vmatprep.subr.bf16.mxu1 %v6835_v9  ;;  %v6921_v8 = vld [vmem:[#allocation13 + $0xe0] ss:$8 sps:$4 sm:$0xff]   ;;  %v6926_v9 = vld [vmem:[#allocation13 + $0xf4] ss:$8 sps:$4 sm:$0xff]  }
 0x283   :  { %1857 = vmatmul.mubr.bf16.vlgmr.msra.gmra.mrb[0].mxu0 %v5766_v13  ;;  %2021 = vmatmul.mubr.bf16.vlgmr.msra.gmra.mrb[0].mxu1 %v5766_v13  ;;  %v342_v13 = vlaneseq }
 0x284   :  { %1866 = vmatpush1.bf16.msra.mxu0 %v6830_v10  ;;  %2030 = vmatpush1.bf16.msra.mxu1 %v6833_v12  ;;  %v6924_v10 = vld [vmem:[#allocation13 + $0xf0] ss:$8 sps:$4 sm:$0xff]   ;;  %v6929_v12 = vld [vmem:[#allocation13 + $0x104] ss:$8 sps:$4 sm:$0xff]  }
 0x285   :  { %1867 = vmatprep.subr.bf16.mxu0 %v6838_v14  ;;  %2031 = vmatprep.subr.bf16.mxu1 %v6841_v15  ;;  %v8539_v14 = vshrl.u32 %v342_v13, 7 }
 0x286   :  { %1897 = vmatprep.mubr.bf16.mxu0 %v8101_v22  ;;  %2061 = vmatprep.mubr.bf16.mxu1 %v8101_v22 }
 0x287   :  { %v8542_v15 = vsub.s32 0, %v8539_v14  ;;  %vm344_vm0 = vcmp.lt.s32.totalorder %v8539_v14, 6 }
 0x288   :  { %1868 = vmatpush1.bf16.msra.mxu0 %v6836_v16  ;;  %2032 = vmatpush1.bf16.msra.mxu1 %v6839_v17  ;;  %v8545_v16 = vsub.s32 2, %v8539_v14  ;;  %v575_v17 = vld [vmem:[#allocation8] sm:$0xf] }
 0x289   :  { %1869 = vmatprep.subr.bf16.mxu0 %v6844_v18  ;;  %2033 = vmatprep.subr.bf16.mxu1 %v6847_v19  ;;  %v8548_v18 = vsub.s32 1, %v8539_v14  ;;  %v8551_v19 = vsub.s32 3, %v8539_v14 }
 0x28c   :  { %1870 = vmatpush1.bf16.msra.mxu0 %v6842_v20  ;;  %2034 = vmatpush1.bf16.msra.mxu1 %v6845_v21  ;;  %v580_v20 = vrot.slane %v575_v17, %v8542_v15  ;;  %v588_v21 = vrot.slane %v575_v17, %v8545_v16 }
 0x28d   :  { %1871 = vmatprep.subr.bf16.mxu0 %v6850_v11  ;;  %2035 = vmatprep.subr.bf16.mxu1 %v6853_v23  ;;  %v584_v11 = vrot.slane %v575_v17, %v8548_v18  ;;  %v592_v23 = vrot.slane %v575_v17, %v8551_v19 }
 0x290   :  { %1872 = vmatpush1.bf16.msra.mxu0 %v6848_v24  ;;  %2036 = vmatpush1.bf16.msra.mxu1 %v6851_v25  ;;  %v8102_v24 = vmov 0.0  }
 0x291   :  { %1873 = vmatprep.subr.bf16.mxu0 %v6856_v26  ;;  %2037 = vmatprep.subr.bf16.mxu1 %v6859_v27  ;;  %v8558_v25 = vsel %vm344_vm0, 1.0, %v8102_v24 }
 0x294   :  { %1874 = vmatpush1.bf16.msra.mxu0 %v6854_v28  ;;  %2038 = vmatpush1.bf16.msra.mxu1 %v6857_v29 }
 0x295   :  { %1875 = vmatprep.subr.bf16.mxu0 %v6862_v30  ;;  %2039 = vmatprep.subr.bf16.mxu1 %v6865_v31 }
 0x298   :  { %1876 = vmatpush1.bf16.msra.mxu0 %v6860_v32  ;;  %2040 = vmatpush1.bf16.msra.mxu1 %v6863_v33 }
 0x299   :  { %1877 = vmatprep.subr.bf16.mxu0 %v6868_v34  ;;  %2041 = vmatprep.subr.bf16.mxu1 %v6871_v35 }
 0x29c   :  { %1878 = vmatpush1.bf16.msra.mxu0 %v6866_v36  ;;  %2042 = vmatpush1.bf16.msra.mxu1 %v6869_v37 }
 0x29d   :  { %1879 = vmatprep.subr.bf16.mxu0 %v6874_v38  ;;  %2043 = vmatprep.subr.bf16.mxu1 %v6877_v39 }
 0x2a0   :  { %1880 = vmatpush1.bf16.msra.mxu0 %v6872_v40  ;;  %2044 = vmatpush1.bf16.msra.mxu1 %v6875_v41 }
 0x2a1   :  { %2610 = vmatprep.subr.bf16.mxu0 %v6881_v42 }
 0x2a3   :  { %1898 = vmatmul.mubr.bf16.vlgmr.msra.gmra.mrb[0].mxu0 %v6878_v43  ;;  %2062 = vmatmul.mubr.bf16.vlgmr.msra.gmra.mrb[0].mxu1 %v6878_v43 }
 0x2a4   :  { %2611 = vmatpush1.bf16.msra.mxu0 %v6879_v44 }
 0x2a5   :  { %2612 = vmatprep.subr.bf16.mxu0 %v6884_v45 }
 0x2a8   :  { %2613 = vmatpush1.bf16.msra.mxu0 %v6882_v46 }
 0x2a9   :  { %2614 = vmatprep.subr.bf16.mxu0 %v6887_v47 }
 0x2ac   :  { %2615 = vmatpush1.bf16.msra.mxu0 %v6885_v48 }
 0x2ad   :  { %2616 = vmatprep.subr.bf16.mxu0 %v6890_v49 }
 0x2b0   :  { %2617 = vmatpush1.bf16.msra.mxu0 %v6888_v50 }
 0x2b1   :  { %2618 = vmatprep.subr.bf16.mxu0 %v6893_v51 }
 0x2b4   :  { %2619 = vmatpush1.bf16.msra.mxu0 %v6891_v52 }
 0x2b5   :  { %2620 = vmatprep.subr.bf16.mxu0 %v6896_v53 }
 0x2b8   :  { %2621 = vmatpush1.bf16.msra.mxu0 %v6894_v54 }
 0x2b9   :  { %2622 = vmatprep.subr.bf16.mxu0 %v6899_v55 }
 0x2bc   :  { %2623 = vmatpush1.bf16.msra.mxu0 %v6897_v56 }
 0x2bd   :  { %2624 = vmatprep.subr.bf16.mxu0 %v6902_v57 }
 0x2c0   :  { %2625 = vmatpush1.bf16.msra.mxu0 %v6900_v58 }
 0x2c1   :  { %2626 = vmatprep.subr.bf16.mxu0 %v6905_v59 }
 0x2c4   :  { %2627 = vmatpush1.bf16.msra.mxu0 %v6903_v60 }
 0x2c5   :  { %2628 = vmatprep.subr.bf16.mxu0 %v6908_v61 }
 0x2c8   :  { %2629 = vmatpush1.bf16.msra.mxu0 %v6906_v62 }
 0x2c9   :  { %2630 = vmatprep.subr.bf16.mxu0 %v6911_v63 }
 0x2cc   :  { %2631 = vmatpush1.bf16.msra.mxu0 %v6909_v0 }
 0x2cd   :  { %2632 = vmatprep.subr.bf16.mxu0 %v6914_v1 }
 0x2d0   :  { %2633 = vmatpush1.bf16.msra.mxu0 %v6912_v2 }
 0x2d1   :  { %2634 = vmatprep.subr.bf16.mxu0 %v6917_v3 }
 0x2d4   :  { %2635 = vmatpush1.bf16.msra.mxu0 %v6915_v4 }
 0x2d5   :  { %2636 = vmatprep.subr.bf16.mxu0 %v6920_v5 }
 0x2d8   :  { %2637 = vmatpush1.bf16.msra.mxu0 %v6918_v6 }
 0x2d9   :  { %2638 = vmatprep.subr.bf16.mxu0 %v6923_v7 }
 0x2dc   :  { %2639 = vmatpush1.bf16.msra.mxu0 %v6921_v8 }
 0x2dd   :  { %2640 = vmatprep.subr.bf16.mxu0 %v6926_v9 }
 0x2e0   :  { %2641 = vmatpush1.bf16.msra.mxu0 %v6924_v10 }
 0x2e1   :  { %2651 = vmatprep.subr.bf16.mxu0 %v6929_v12 }
 0x376   :  { %v1899_v26 = vpop.f32.mrb[0].mxu0  ;;  %v2063_v27 = vpop.f32.mrb[0].mxu1 }
 0x377   :  { %v6452_v28 = vadd.f32 %v1899_v26, %v580_v20  ;;  %v6454_v29 = vadd.f32 %v2063_v27, %v588_v21  ;;  %v1901_v30 = vpop.f32.mrb[1].mxu0  ;;  %v2065_v31 = vpop.f32.mrb[1].mxu1 }
 0x378   :  { %v6453_v32 = vadd.f32 %v1901_v30, %v584_v11  ;;  %v6455_v33 = vadd.f32 %v2065_v31, %v592_v23  ;;  %v1903_v34 = vpop.f32.mrb[2].mxu0  ;;  %v2067_v35 = vpop.f32.mrb[2].mxu1 }
 0x379   :  { %v2070_v36 = vmul.f32 %v6452_v28, %v8558_v25  ;;  %v2072_v37 = vmul.f32 %v6454_v29, %v8558_v25  ;;  %v1904_v38 = vpop.f32.mrb[3].mxu0  ;;  %v2068_v39 = vpop.f32.mrb[3].mxu1 }
 0x37a   :  { %v2071_v40 = vmul.f32 %v6453_v32, %v8558_v25  ;;  %v2073_v41 = vmul.f32 %v6455_v33, %v8558_v25 }
 0x37b   :  { %v2074_v42 = vrot.slane %v2070_v36, 4  ;;  %v2086_v43 = vrot.slane %v2072_v37, 4 }
 0x37c   :  { %v2080_v44 = vrot.slane %v2071_v40, 4  ;;  %v2092_v45 = vrot.slane %v2073_v41, 4 }
 0x37d   :  { %v2075_v46 = vadd.f32 %v2074_v42, %v2070_v36  ;;  %v2087_v47 = vadd.f32 %v2086_v43, %v2072_v37 }
 0x37e   :  { %v2081_v48 = vadd.f32 %v2080_v44, %v2071_v40  ;;  %v2093_v49 = vadd.f32 %v2092_v45, %v2073_v41 }
 0x37f   :  { %v2076_v50 = vrot.slane %v2075_v46, 2  ;;  %v2088_v51 = vrot.slane %v2087_v47, 2 }
 0x380   :  { %v2082_v52 = vrot.slane %v2081_v48, 2  ;;  %v2094_v53 = vrot.slane %v2093_v49, 2 }
 0x381   :  { %v2077_v54 = vadd.f32 %v2076_v50, %v2075_v46  ;;  %v2089_v55 = vadd.f32 %v2088_v51, %v2087_v47 }
 0x382   :  { %v2083_v56 = vadd.f32 %v2082_v52, %v2081_v48  ;;  %v2095_v57 = vadd.f32 %v2094_v53, %v2093_v49 }
 0x383   :  { %v2078_v58 = vrot.slane %v2077_v54, 1  ;;  %v2090_v59 = vrot.slane %v2089_v55, 1 }
 0x384   :  { %v2084_v60 = vrot.slane %v2083_v56, 1  ;;  %v2096_v61 = vrot.slane %v2095_v57, 1 }
 0x385   :  { %v2079_v62 = vadd.f32 %v2078_v58, %v2077_v54  ;;  %v2091_v63 = vadd.f32 %v2090_v59, %v2089_v55  ;;  %v2180_v58 = vld [vmem:[#allocation11] sm:$0xf] }
 0x386   :  { %v2085_v0 = vadd.f32 %v2084_v60, %v2083_v56  ;;  %v2097_v1 = vadd.f32 %v2096_v61, %v2095_v57  ;;  %v2154_v57 = vld [vmem:[#allocation10] sm:$0xf] }
 0x387   :  { %v2098_v2 = vmul.f32 0.16666667, %v2079_v62  ;;  %v2100_v3 = vmul.f32 0.16666667, %v2091_v63  ;;  %v2159_v59 = vrot.slane %v2154_v57, %v8542_v15  ;;  %v2167_v61 = vrot.slane %v2154_v57, %v8545_v16 }
 0x388   :  { %v2099_v4 = vmul.f32 0.16666667, %v2085_v0  ;;  %v2101_v5 = vmul.f32 0.16666667, %v2097_v1  ;;  %v2163_v0 = vrot.slane %v2154_v57, %v8548_v18  ;;  %v2185_v1 = vrot.slane %v2180_v58, %v8542_v15 }
 0x389   :  { %v2102_v6 = vsub.f32 %v6452_v28, %v2098_v2  ;;  %v2104_v7 = vsub.f32 %v6454_v29, %v2100_v3 }
 0x38a   :  { %v2103_v8 = vsub.f32 %v6453_v32, %v2099_v4  ;;  %v8564_v9 = vsub.f32 %v6455_v33, %v2101_v5  ;;  %v2171_v4 = vrot.slane %v2154_v57, %v8551_v19  ;;  %v2193_v5 = vrot.slane %v2180_v58, %v8545_v16  ;;  %v6968_v57 = vld [vmem:[#allocation13 + $0x1d4] ss:$8 sps:$4 sm:$0xff]  }
 0x38b   :  { %v2106_v10 = vmul.f32 %v8558_v25, %v2102_v6  ;;  %v2108_v12 = vmul.f32 %v8558_v25, %v2104_v7 }
 0x38c   :  { %v2107_v13 = vmul.f32 %v8558_v25, %v2103_v8  ;;  %v2109_v17 = vmul.f32 %v8558_v25, %v8564_v9 }
 0x38d   :  { %v2110_v20 = vmul.f32 %v2106_v10, %v2106_v10  ;;  %v2112_v21 = vmul.f32 %v2108_v12, %v2108_v12 }
 0x38e   :  { %v2111_v11 = vmul.f32 %v2107_v13, %v2107_v13  ;;  %v2113_v23 = vmul.f32 %v2109_v17, %v2109_v17  ;;  %v2189_v17 = vrot.slane %v2180_v58, %v8548_v18 }
 0x38f   :  { %v2114_v24 = vrot.slane %v2110_v20, 4  ;;  %v2126_v26 = vrot.slane %v2112_v21, 4 }
 0x390   :  { %v2120_v27 = vrot.slane %v2111_v11, 4  ;;  %v2132_v28 = vrot.slane %v2113_v23, 4 }
 0x391   :  { %v2115_v29 = vadd.f32 %v2114_v24, %v2110_v20  ;;  %v2127_v30 = vadd.f32 %v2126_v26, %v2112_v21 }
 0x392   :  { %v2121_v31 = vadd.f32 %v2120_v27, %v2111_v11  ;;  %v2133_v32 = vadd.f32 %v2132_v28, %v2113_v23 }
 0x393   :  { %v2116_v33 = vrot.slane %v2115_v29, 2  ;;  %v2128_v34 = vrot.slane %v2127_v30, 2 }
 0x394   :  { %v2122_v35 = vrot.slane %v2121_v31, 2  ;;  %v2134_v36 = vrot.slane %v2133_v32, 2 }
 0x395   :  { %v2117_v37 = vadd.f32 %v2116_v33, %v2115_v29  ;;  %v2129_v38 = vadd.f32 %v2128_v34, %v2127_v30  ;;  %v6932_v33 = vld [vmem:[#allocation13 + $0x114] ss:$8 sps:$4 sm:$0xff]  }
 0x396   :  { %v2123_v39 = vadd.f32 %v2122_v35, %v2121_v31  ;;  %v2135_v40 = vadd.f32 %v2134_v36, %v2133_v32  ;;  %v6927_v32 = vld [vmem:[#allocation13 + $0x100] ss:$8 sps:$4 sm:$0xff]   ;;  %v6935_v35 = vld [vmem:[#allocation13 + $0x124] ss:$8 sps:$4 sm:$0xff]  }
 0x397   :  { %v2118_v41 = vrot.slane %v2117_v37, 1  ;;  %v2130_v42 = vrot.slane %v2129_v38, 1  ;;  %v6933_v36 = vld [vmem:[#allocation13 + $0x120] ss:$8 sps:$4 sm:$0xff]  }
 0x398   :  { %v2124_v43 = vrot.slane %v2123_v39, 1  ;;  %v2136_v44 = vrot.slane %v2135_v40, 1 }
 0x399   :  { %v2119_v45 = vadd.f32 %v2118_v41, %v2117_v37  ;;  %v2131_v46 = vadd.f32 %v2130_v42, %v2129_v38  ;;  %v6938_v37 = vld [vmem:[#allocation13 + $0x134] ss:$8 sps:$4 sm:$0xff]   ;;  %v6936_v38 = vld [vmem:[#allocation13 + $0x130] ss:$8 sps:$4 sm:$0xff]  }
 0x39a   :  { %v2125_v47 = vadd.f32 %v2124_v43, %v2123_v39  ;;  %v2137_v48 = vadd.f32 %v2136_v44, %v2135_v40  ;;  %v6941_v39 = vld [vmem:[#allocation13 + $0x144] ss:$8 sps:$4 sm:$0xff]   ;;  %v6939_v40 = vld [vmem:[#allocation13 + $0x140] ss:$8 sps:$4 sm:$0xff]   ;;  %v6944_v41 = vld [vmem:[#allocation13 + $0x154] ss:$8 sps:$4 sm:$0xff]  }
 0x39b   :  { %v2138_v49 = vmul.f32 0.16666667, %v2119_v45  ;;  %v2140_v50 = vmul.f32 0.16666667, %v2131_v46  ;;  %v6942_v42 = vld [vmem:[#allocation13 + $0x150] ss:$8 sps:$4 sm:$0xff]  }
 0x39c   :  { %v2139_v51 = vmul.f32 0.16666667, %v2125_v47  ;;  %v2141_v52 = vmul.f32 0.16666667, %v2137_v48  ;;  %v6947_v43 = vld [vmem:[#allocation13 + $0x164] ss:$8 sps:$4 sm:$0xff]  }
 0x39d   :  { %v2142_v53 = vadd.f32 1e-05, %v2138_v49  ;;  %v2144_v54 = vadd.f32 1e-05, %v2140_v50  ;;  %v6945_v44 = vld [vmem:[#allocation13 + $0x160] ss:$8 sps:$4 sm:$0xff]  }
 0x39e   :  { %v2143_v55 = vadd.f32 1e-05, %v2139_v51  ;;  %v2145_v56 = vadd.f32 1e-05, %v2141_v52  ;;  %v6950_v45 = vld [vmem:[#allocation13 + $0x174] ss:$8 sps:$4 sm:$0xff]  }
 0x39f   :  { %7463 = vrsqrt.f32 %v2142_v53  ;;  %v6948_v46 = vld [vmem:[#allocation13 + $0x170] ss:$8 sps:$4 sm:$0xff]   ;;  %v6953_v47 = vld [vmem:[#allocation13 + $0x184] ss:$8 sps:$4 sm:$0xff]   ;;  %v6951_v48 = vld [vmem:[#allocation13 + $0x180] ss:$8 sps:$4 sm:$0xff]  }
 0x3a0   :  { %7465 = vrsqrt.f32 %v2144_v54  ;;  %v6956_v49 = vld [vmem:[#allocation13 + $0x194] ss:$8 sps:$4 sm:$0xff]   ;;  %v6954_v50 = vld [vmem:[#allocation13 + $0x190] ss:$8 sps:$4 sm:$0xff]   ;;  %v6959_v51 = vld [vmem:[#allocation13 + $0x1a4] ss:$8 sps:$4 sm:$0xff]  }
 0x3a1   :  { %7467 = vrsqrt.f32 %v2143_v55  ;;  %v6957_v52 = vld [vmem:[#allocation13 + $0x1a0] ss:$8 sps:$4 sm:$0xff]   ;;  %v6962_v53 = vld [vmem:[#allocation13 + $0x1b4] ss:$8 sps:$4 sm:$0xff]   ;;  %v6960_v54 = vld [vmem:[#allocation13 + $0x1b0] ss:$8 sps:$4 sm:$0xff]  }
 0x3a2   :  { %7469 = vrsqrt.f32 %v2145_v56  ;;  %v6965_v55 = vld [vmem:[#allocation13 + $0x1c4] ss:$8 sps:$4 sm:$0xff]   ;;  %v6963_v56 = vld [vmem:[#allocation13 + $0x1c0] ss:$8 sps:$4 sm:$0xff]  }
 0x3a9   :  { %v7464_v60 = vpop.eup %7463 }
 0x3aa   :  { %v7466_v62 = vpop.eup %7465  ;;  %v2150_v63 = vmul.f32 %v7464_v60, %v2102_v6  ;;  %v2197_v6 = vrot.slane %v2180_v58, %v8551_v19  ;;  %v6966_v58 = vld [vmem:[#allocation13 + $0x1d0] ss:$8 sps:$4 sm:$0xff]   ;;  %v6969_v60 = vld [vmem:[#allocation13 + $0x1e0] ss:$8 sps:$4 sm:$0xff]  }
 0x3ab   :  { %v7468_v2 = vpop.eup %7467  ;;  %v2152_v3 = vmul.f32 %v7466_v62, %v2104_v7  ;;  %v6972_v62 = vld [vmem:[#allocation13 + $0x1f0] ss:$8 sps:$4 sm:$0xff]  }
 0x3ac   :  { %v7470_v10 = vpop.eup %7469  ;;  %v2176_v12 = vmul.f32 %v2159_v59, %v2150_v63  ;;  %v2151_v13 = vmul.f32 %v7468_v2, %v2103_v8  ;;  %v6971_v59 = vld [vmem:[#allocation13 + $0x1e4] ss:$8 sps:$4 sm:$0xff]  }
 0x3ad   :  { %v2178_v20 = vmul.f32 %v2167_v61, %v2152_v3  ;;  %v2153_v21 = vmul.f32 %v7470_v10, %v8564_v9  ;;  %v6930_v9 = vld [vmem:[#allocation13 + $0x110] ss:$8 sps:$4 sm:$0xff]   ;;  %v6974_v61 = vld [vmem:[#allocation13 + $0x1f4] ss:$8 sps:$4 sm:$0xff]  }
 0x3ae   :  { %v2177_v11 = vmul.f32 %v2163_v0, %v2151_v13  ;;  %v2202_v23 = vadd.f32 %v2185_v1, %v2176_v12  ;;  %v6977_v1 = vld [vmem:[#allocation19 + $0x4] ss:$8 sps:$4 sm:$0xff]   ;;  %v6975_v2 = vld [vmem:[#allocation19] ss:$8 sps:$4 sm:$0xff]   ;;  %v6980_v3 = vld [vmem:[#allocation19 + $0x14] ss:$8 sps:$4 sm:$0xff]  }
 0x3af   :  { %v2179_v24 = vmul.f32 %v2171_v4, %v2153_v21  ;;  %v8580_v26 = vadd.f32 %v2193_v5, %v2178_v20  ;;  %2970 = vmatprep.subr.bf16.mxu1 %v6977_v1  ;;  %v6978_v4 = vld [vmem:[#allocation19 + $0x10] ss:$8 sps:$4 sm:$0xff]   ;;  %v6983_v5 = vld [vmem:[#allocation19 + $0x24] ss:$8 sps:$4 sm:$0xff]   ;;  %v6981_v10 = vld [vmem:[#allocation19 + $0x20] ss:$8 sps:$4 sm:$0xff]  }
 0x3b0   :  { %v2203_v7 = vadd.f32 %v2189_v17, %v2177_v11  ;;  %v2206_v27 = vmax.f32 %v2202_v23, 0.0  ;;  %2971 = vmatpush1.bf16.msra.mxu1 %v6975_v2  ;;  %v6986_v12 = vld [vmem:[#allocation19 + $0x34] ss:$8 sps:$4 sm:$0xff]   ;;  %v6984_v13 = vld [vmem:[#allocation19 + $0x30] ss:$8 sps:$4 sm:$0xff]  }
 0x3b1   :  { %v2205_v28 = vadd.f32 %v2197_v6, %v2179_v24  ;;  %v2208_v63 = vmax.f32 %v8580_v26, 0.0  ;;  %2972 = vmatprep.subr.bf16.mxu1 %v6980_v3  ;;  %v6989_v17 = vld [vmem:[#allocation19 + $0x44] ss:$8 sps:$4 sm:$0xff]   ;;  %v6987_v20 = vld [vmem:[#allocation19 + $0x40] ss:$8 sps:$4 sm:$0xff]  }
 0x3b2   :  { %v2207_v29 = vmax.f32 %v2203_v7, 0.0  ;;  %v2210_v8 = vpack.c.bf16 %v2206_v27, %v2206_v27  ;;  %v6992_v21 = vld [vmem:[#allocation19 + $0x54] ss:$8 sps:$4 sm:$0xff]   ;;  %v6990_v6 = vld [vmem:[#allocation19 + $0x50] ss:$8 sps:$4 sm:$0xff]  }
 0x3b3   :  { %v2209_v30 = vmax.f32 %v2205_v28, 0.0  ;;  %v2212_v0 = vpack.c.bf16 %v2208_v63, %v2208_v63  ;;  %v6995_v11 = vld [vmem:[#allocation19 + $0x64] ss:$8 sps:$4 sm:$0xff]   ;;  %v6993_v23 = vld [vmem:[#allocation19 + $0x60] ss:$8 sps:$4 sm:$0xff]  }
 0x3b4   :  { %v2211_v31 = vpack.c.bf16 %v2207_v29, %v2207_v29  ;;  %2973 = vmatpush1.bf16.msra.mxu1 %v6978_v4  ;;  %v6998_v24 = vld [vmem:[#allocation19 + $0x74] ss:$8 sps:$4 sm:$0xff]   ;;  %v6996_v26 = vld [vmem:[#allocation19 + $0x70] ss:$8 sps:$4 sm:$0xff]   ;;  %v7001_v7 = vld [vmem:[#allocation19 + $0x84] ss:$8 sps:$4 sm:$0xff]  }
 0x3b5   :  { %v2213_v34 = vpack.c.bf16 %v2209_v30, %v2209_v30  ;;  %2974 = vmatprep.subr.bf16.mxu1 %v6983_v5  ;;  %v6999_v27 = vld [vmem:[#allocation19 + $0x80] ss:$8 sps:$4 sm:$0xff]   ;;  %v7004_v28 = vld [vmem:[#allocation19 + $0x94] ss:$8 sps:$4 sm:$0xff]   ;;  %v7002_v29 = vld [vmem:[#allocation19 + $0x90] ss:$8 sps:$4 sm:$0xff]  }
 0x3b6   :  { %2642 = vmatprep.mubr.bf16.mxu0 %v2211_v31  ;;  %v7007_v30 = vld [vmem:[#allocation19 + $0xa4] ss:$8 sps:$4 sm:$0xff]   ;;  %v7005_v31 = vld [vmem:[#allocation19 + $0xa0] ss:$8 sps:$4 sm:$0xff]  }
 0x3b7   :  { %2643 = vmatmul.mubr.bf16.vlgmr.msra.gmra.mrb[4].mxu0 %v2210_v8  ;;  %v7008_v8 = vld [vmem:[#allocation19 + $0xb0] ss:$8 sps:$4 sm:$0xff]  }
 0x3b8   :  { %2652 = vmatpush1.bf16.msra.mxu0 %v6927_v32  ;;  %2683 = vmatprep.mubr.bf16.mxu0 %v2213_v34  ;;  %v7010_v32 = vld [vmem:[#allocation19 + $0xb4] ss:$8 sps:$4 sm:$0xff]   ;;  %v7011_v34 = vld [vmem:[#allocation19 + $0xc0] ss:$8 sps:$4 sm:$0xff]  }
 0x3b9   :  { %2653 = vmatprep.subr.bf16.mxu0 %v6932_v33  ;;  %2975 = vmatpush1.bf16.msra.mxu1 %v6981_v10  ;;  %v7013_v33 = vld [vmem:[#allocation19 + $0xc4] ss:$8 sps:$4 sm:$0xff]  }
 0x3ba   :  { %2976 = vmatprep.subr.bf16.mxu1 %v6986_v12 }
 0x3bc   :  { %2654 = vmatpush1.bf16.msra.mxu0 %v6930_v9  ;;  %v7016_v9 = vld [vmem:[#allocation19 + $0xd4] ss:$8 sps:$4 sm:$0xff]  }
 0x3bd   :  { %2655 = vmatprep.subr.bf16.mxu0 %v6935_v35  ;;  %2977 = vmatpush1.bf16.msra.mxu1 %v6984_v13  ;;  %v7014_v35 = vld [vmem:[#allocation19 + $0xd0] ss:$8 sps:$4 sm:$0xff]  }
 0x3be   :  { %2978 = vmatprep.subr.bf16.mxu1 %v6989_v17 }
 0x3c0   :  { %2656 = vmatpush1.bf16.msra.mxu0 %v6933_v36  ;;  %v7019_v36 = vld [vmem:[#allocation19 + $0xe4] ss:$8 sps:$4 sm:$0xff]  }
 0x3c1   :  { %2657 = vmatprep.subr.bf16.mxu0 %v6938_v37  ;;  %2979 = vmatpush1.bf16.msra.mxu1 %v6987_v20  ;;  %v7017_v37 = vld [vmem:[#allocation19 + $0xe0] ss:$8 sps:$4 sm:$0xff]  }
 0x3c2   :  { %2980 = vmatprep.subr.bf16.mxu1 %v6992_v21 }
 0x3c4   :  { %2658 = vmatpush1.bf16.msra.mxu0 %v6936_v38  ;;  %v7022_v38 = vld [vmem:[#allocation19 + $0xf4] ss:$8 sps:$4 sm:$0xff]  }
 0x3c5   :  { %2659 = vmatprep.subr.bf16.mxu0 %v6941_v39  ;;  %2981 = vmatpush1.bf16.msra.mxu1 %v6990_v6  ;;  %v7020_v39 = vld [vmem:[#allocation19 + $0xf0] ss:$8 sps:$4 sm:$0xff]  }
 0x3c6   :  { %2982 = vmatprep.subr.bf16.mxu1 %v6995_v11 }
 0x3c8   :  { %2660 = vmatpush1.bf16.msra.mxu0 %v6939_v40  ;;  %v7025_v40 = vld [vmem:[#allocation22 + $0x4] ss:$8 sps:$4 sm:$0xff]  }
 0x3c9   :  { %2661 = vmatprep.subr.bf16.mxu0 %v6944_v41  ;;  %2983 = vmatpush1.bf16.msra.mxu1 %v6993_v23  ;;  %v2278_v41 = vld [vmem:[#allocation14] sm:$0x3] }
 0x3ca   :  { %2984 = vmatprep.subr.bf16.mxu1 %v6998_v24 }
 0x3cc   :  { %2662 = vmatpush1.bf16.msra.mxu0 %v6942_v42  ;;  %v2283_v42 = vrot.slane %v2278_v41, %v8542_v15 }
 0x3cd   :  { %2663 = vmatprep.subr.bf16.mxu0 %v6947_v43  ;;  %2985 = vmatpush1.bf16.msra.mxu1 %v6996_v26  ;;  %v2287_v43 = vrot.slane %v2278_v41, %v8548_v18 }
 0x3ce   :  { %2986 = vmatprep.subr.bf16.mxu1 %v7001_v7 }
 0x3d0   :  { %2664 = vmatpush1.bf16.msra.mxu0 %v6945_v44 }
 0x3d1   :  { %2665 = vmatprep.subr.bf16.mxu0 %v6950_v45  ;;  %2987 = vmatpush1.bf16.msra.mxu1 %v6999_v27 }
 0x3d2   :  { %2988 = vmatprep.subr.bf16.mxu1 %v7004_v28 }
 0x3d4   :  { %2666 = vmatpush1.bf16.msra.mxu0 %v6948_v46 }
 0x3d5   :  { %2667 = vmatprep.subr.bf16.mxu0 %v6953_v47  ;;  %2989 = vmatpush1.bf16.msra.mxu1 %v7002_v29 }
 0x3d6   :  { %2990 = vmatprep.subr.bf16.mxu1 %v7007_v30 }
 0x3d8   :  { %2668 = vmatpush1.bf16.msra.mxu0 %v6951_v48 }
 0x3d9   :  { %2669 = vmatprep.subr.bf16.mxu0 %v6956_v49  ;;  %2991 = vmatpush1.bf16.msra.mxu1 %v7005_v31 }
 0x3da   :  { %2992 = vmatprep.subr.bf16.mxu1 %v7010_v32 }
 0x3dc   :  { %2670 = vmatpush1.bf16.msra.mxu0 %v6954_v50 }
 0x3dd   :  { %2671 = vmatprep.subr.bf16.mxu0 %v6959_v51  ;;  %2993 = vmatpush1.bf16.msra.mxu1 %v7008_v8  ;;  %v2734_v8 = vld [vmem:[#allocation16] sm:$0x3] }
 0x3de   :  { %2994 = vmatprep.subr.bf16.mxu1 %v7013_v33  ;;  %v2748_v33 = vld [vmem:[#allocation17] sm:$0x3] }
 0x3e0   :  { %2672 = vmatpush1.bf16.msra.mxu0 %v6957_v52 }
 0x3e1   :  { %2673 = vmatprep.subr.bf16.mxu0 %v6962_v53  ;;  %2995 = vmatpush1.bf16.msra.mxu1 %v7011_v34  ;;  %v2739_v34 = vrot.slane %v2734_v8, %v8542_v15 }
 0x3e2   :  { %2996 = vmatprep.subr.bf16.mxu1 %v7016_v9 }
 0x3e4   :  { %2674 = vmatpush1.bf16.msra.mxu0 %v6960_v54 }
 0x3e5   :  { %2675 = vmatprep.subr.bf16.mxu0 %v6965_v55  ;;  %2997 = vmatpush1.bf16.msra.mxu1 %v7014_v35  ;;  %v2743_v35 = vrot.slane %v2734_v8, %v8548_v18  ;;  %v7064_v8 = vld [vmem:[#allocation28 + $0x4c] ss:$16 sps:$4 sm:$0xff]  }
 0x3e6   :  { %2998 = vmatprep.subr.bf16.mxu1 %v7019_v36 }
 0x3e8   :  { %2676 = vmatpush1.bf16.msra.mxu0 %v6963_v56 }
 0x3e9   :  { %2677 = vmatprep.subr.bf16.mxu0 %v6968_v57  ;;  %2999 = vmatpush1.bf16.msra.mxu1 %v7017_v37 }
 0x3ea   :  { %3000 = vmatprep.subr.bf16.mxu1 %v7022_v38  ;;  %v2753_v38 = vrot.slane %v2748_v33, %v8542_v15 }
 0x3ec   :  { %2678 = vmatpush1.bf16.msra.mxu0 %v6966_v58 }
 0x3ed   :  { %2679 = vmatprep.subr.bf16.mxu0 %v6971_v59  ;;  %3001 = vmatpush1.bf16.msra.mxu1 %v7020_v39 }
 0x3ee   :  { %3128 = vmatprep.subr.bf16.mxu1 %v7025_v40  ;;  %v2757_v40 = vrot.slane %v2748_v33, %v8548_v18  ;;  %v7059_v33 = vld [vmem:[#allocation28 + $0x40] ss:$16 sps:$4 sm:$0xff]  }
 0x3f0   :  { %2680 = vmatpush1.bf16.msra.mxu0 %v6969_v60 }
 0x3f1   :  { %2681 = vmatprep.subr.bf16.mxu0 %v6974_v61 }
 0x3f4   :  { %2682 = vmatpush1.bf16.msra.mxu0 %v6972_v62 }
 0x3f7   :  { %2684 = vmatmul.mubr.bf16.vlgmr.msra.gmra.mrb[4].mxu0 %v2212_v0 }
 0x4ca   :  { %v2685_v44 = vpop.f32.mrb[4].mxu0 }
 0x4cb   :  { %v6456_v45 = vadd.f32 %v2685_v44, %v2283_v42  ;;  %v2687_v46 = vpop.f32.mrb[5].mxu0 }
 0x4cc   :  { %v6457_v47 = vadd.f32 %v2687_v46, %v2287_v43  ;;  %v2689_v48 = vpop.f32.mrb[6].mxu0 }
 0x4cd   :  { %v2692_v49 = vmul.f32 %v6456_v45, %v8558_v25  ;;  %v2690_v50 = vpop.f32.mrb[7].mxu0  ;;  %v7023_v48 = vld [vmem:[#allocation22] ss:$8 sps:$4 sm:$0xff]  }
 0x4ce   :  { %v2693_v51 = vmul.f32 %v6457_v47, %v8558_v25  ;;  %v7028_v50 = vld [vmem:[#allocation22 + $0x14] ss:$8 sps:$4 sm:$0xff]  }
 0x4cf   :  { %v2694_v52 = vrot.slane %v2692_v49, 4 }
 0x4d0   :  { %v2700_v53 = vrot.slane %v2693_v51, 4 }
 0x4d1   :  { %v2695_v54 = vadd.f32 %v2694_v52, %v2692_v49  ;;  %v7031_v52 = vld [vmem:[#allocation22 + $0x24] ss:$8 sps:$4 sm:$0xff]  }
 0x4d2   :  { %v2701_v55 = vadd.f32 %v2700_v53, %v2693_v51  ;;  %v7026_v51 = vld [vmem:[#allocation22 + $0x10] ss:$8 sps:$4 sm:$0xff]   ;;  %v7029_v53 = vld [vmem:[#allocation22 + $0x20] ss:$8 sps:$4 sm:$0xff]  }
 0x4d3   :  { %v2696_v56 = vrot.slane %v2695_v54, 2 }
 0x4d4   :  { %v2702_v57 = vrot.slane %v2701_v55, 2 }
 0x4d5   :  { %v2697_v58 = vadd.f32 %v2696_v56, %v2695_v54  ;;  %v7034_v54 = vld [vmem:[#allocation22 + $0x34] ss:$8 sps:$4 sm:$0xff]   ;;  %v7037_v56 = vld [vmem:[#allocation22 + $0x44] ss:$8 sps:$4 sm:$0xff]  }
 0x4d6   :  { %v2703_v59 = vadd.f32 %v2702_v57, %v2701_v55  ;;  %v7032_v55 = vld [vmem:[#allocation22 + $0x30] ss:$8 sps:$4 sm:$0xff]   ;;  %v7035_v57 = vld [vmem:[#allocation22 + $0x40] ss:$8 sps:$4 sm:$0xff]  }
 0x4d7   :  { %v2698_v60 = vrot.slane %v2697_v58, 1 }
 0x4d8   :  { %v2704_v61 = vrot.slane %v2703_v59, 1 }
 0x4d9   :  { %v2699_v62 = vadd.f32 %v2698_v60, %v2697_v58  ;;  %v7040_v58 = vld [vmem:[#allocation22 + $0x54] ss:$8 sps:$4 sm:$0xff]   ;;  %v7043_v60 = vld [vmem:[#allocation22 + $0x64] ss:$8 sps:$4 sm:$0xff]  }
 0x4da   :  { %v2705_v63 = vadd.f32 %v2704_v61, %v2703_v59  ;;  %v7038_v59 = vld [vmem:[#allocation22 + $0x50] ss:$8 sps:$4 sm:$0xff]   ;;  %v7046_v61 = vld [vmem:[#allocation22 + $0x74] ss:$8 sps:$4 sm:$0xff]  }
 0x4db   :  { %v2706_v0 = vmul.f32 0.16666667, %v2699_v62  ;;  %v7044_v62 = vld [vmem:[#allocation22 + $0x70] ss:$8 sps:$4 sm:$0xff]  }
 0x4dc   :  { %v2707_v1 = vmul.f32 0.16666667, %v2705_v63  ;;  %v2798_v63 = vld [vmem:[#allocation20] sm:$0x3] }
 0x4dd   :  { %v2708_v2 = vsub.f32 %v6456_v45, %v2706_v0  ;;  %v2803_v0 = vrot.slane %v2798_v63, %v8542_v15 }
 0x4de   :  { %v2709_v3 = vsub.f32 %v6457_v47, %v2707_v1  ;;  %v2807_v1 = vrot.slane %v2798_v63, %v8548_v18  ;;  %v7107_v63 = vld [vmem:[#allocation28 + $0x140] ss:$16 sps:$4 sm:$0xff]  }
 0x4df   :  { %v2710_v4 = vmul.f32 %v8558_v25, %v2708_v2 }
 0x4e0   :  { %v2711_v5 = vmul.f32 %v8558_v25, %v2709_v3 }
 0x4e1   :  { %v2712_v10 = vmul.f32 %v2710_v4, %v2710_v4 }
 0x4e2   :  { %v2713_v12 = vmul.f32 %v2711_v5, %v2711_v5 }
 0x4e3   :  { %v2714_v13 = vrot.slane %v2712_v10, 4 }
 0x4e4   :  { %v2720_v17 = vrot.slane %v2713_v12, 4 }
 0x4e5   :  { %v2715_v20 = vadd.f32 %v2714_v13, %v2712_v10 }
 0x4e6   :  { %v2721_v21 = vadd.f32 %v2720_v17, %v2713_v12 }
 0x4e7   :  { %v2716_v6 = vrot.slane %v2715_v20, 2 }
 0x4e8   :  { %v2722_v11 = vrot.slane %v2721_v21, 2 }
 0x4e9   :  { %v2717_v23 = vadd.f32 %v2716_v6, %v2715_v20  ;;  %v3013_v20 = vld [vmem:[#allocation5] sm:$0xff] }
 0x4ea   :  { %v2723_v24 = vadd.f32 %v2722_v11, %v2721_v21 }
 0x4eb   :  { %v2718_v26 = vrot.slane %v2717_v23, 1 }
 0x4ec   :  { %v2724_v7 = vrot.slane %v2723_v24, 1 }
 0x4ed   :  { %v2719_v27 = vadd.f32 %v2718_v26, %v2717_v23  ;;  %v7052_v26 = vld [vmem:[#allocation28 + $0xc] ss:$16 sps:$4 sm:$0xff]  }
 0x4ee   :  { %v2725_v28 = vadd.f32 %v2724_v7, %v2723_v24  ;;  %v7049_v24 = vld [vmem:[#allocation28 + $0x4] ss:$16 sps:$4 sm:$0xff]   ;;  %v7047_v7 = vld [vmem:[#allocation28] ss:$16 sps:$4 sm:$0xff]   ;;  %3690 = vmatprep.subr.bf16.mxu0 %v7052_v26  ;;  %v7134_v26 = vld [vmem:[#allocation28 + $0x1c8] ss:$16 sps:$4 sm:$0xff]  }
 0x4ef   :  { %v2726_v29 = vmul.f32 0.16666667, %v2719_v27  ;;  %v7050_v27 = vld [vmem:[#allocation28 + $0x8] ss:$16 sps:$4 sm:$0xff]  }
 0x4f0   :  { %v2727_v30 = vmul.f32 0.16666667, %v2725_v28  ;;  %3691 = vmatpush1.bf16.msra.mxu0 %v7050_v27  ;;  %v7055_v28 = vld [vmem:[#allocation28 + $0x24] ss:$16 sps:$4 sm:$0xff]   ;;  %v7142_v27 = vld [vmem:[#allocation28 + $0x1ec] ss:$16 sps:$4 sm:$0xff]  }
 0x4f1   :  { %v2728_v31 = vadd.f32 1e-05, %v2726_v29  ;;  %v7058_v29 = vld [vmem:[#allocation28 + $0x2c] ss:$16 sps:$4 sm:$0xff]  }
 0x4f2   :  { %v2729_v32 = vadd.f32 1e-05, %v2727_v30  ;;  %v7053_v30 = vld [vmem:[#allocation28 + $0x20] ss:$16 sps:$4 sm:$0xff]   ;;  %3692 = vmatprep.subr.bf16.mxu0 %v7058_v29  ;;  %v7140_v29 = vld [vmem:[#allocation28 + $0x1e8] ss:$16 sps:$4 sm:$0xff]  }
 0x4f3   :  { %7471 = vrsqrt.f32 %v2728_v31  ;;  %v7056_v31 = vld [vmem:[#allocation28 + $0x28] ss:$16 sps:$4 sm:$0xff]  }
 0x4f4   :  { %7473 = vrsqrt.f32 %v2729_v32  ;;  %3693 = vmatpush1.bf16.msra.mxu0 %v7056_v31  ;;  %v7061_v32 = vld [vmem:[#allocation28 + $0x44] ss:$16 sps:$4 sm:$0xff]  }
 0x4f5   :  { %3694 = vmatprep.subr.bf16.mxu0 %v7064_v8  ;;  %v7148_v31 = vld [vmem:[#allocation34 + $0xc] ss:$28 sps:$4 sm:$0xff]  }
 0x4fd   :  { %v7472_v9 = vpop.eup %7471 }
 0x4fe   :  { %v7474_v36 = vpop.eup %7473  ;;  %v2732_v37 = vmul.f32 %v7472_v9, %v2708_v2  ;;  %v7067_v9 = vld [vmem:[#allocation28 + $0x64] ss:$16 sps:$4 sm:$0xff]  }
 0x4ff   :  { %v2733_v39 = vmul.f32 %v7474_v36, %v2709_v3  ;;  %v7065_v36 = vld [vmem:[#allocation28 + $0x60] ss:$16 sps:$4 sm:$0xff]  }
 0x500   :  { %v2746_v41 = vmul.f32 %v2739_v34, %v2732_v37  ;;  %v7062_v34 = vld [vmem:[#allocation28 + $0x48] ss:$16 sps:$4 sm:$0xff]  }
 0x501   :  { %v2747_v42 = vmul.f32 %v2743_v35, %v2733_v39  ;;  %3695 = vmatpush1.bf16.msra.mxu0 %v7062_v34  ;;  %v7070_v35 = vld [vmem:[#allocation28 + $0x6c] ss:$16 sps:$4 sm:$0xff]   ;;  %v7068_v37 = vld [vmem:[#allocation28 + $0x68] ss:$16 sps:$4 sm:$0xff]  }
 0x502   :  { %v2760_v43 = vadd.f32 %v2753_v38, %v2746_v41  ;;  %3696 = vmatprep.subr.bf16.mxu0 %v7070_v35  ;;  %v7073_v38 = vld [vmem:[#allocation28 + $0x84] ss:$16 sps:$4 sm:$0xff]   ;;  %v7076_v39 = vld [vmem:[#allocation28 + $0x8c] ss:$16 sps:$4 sm:$0xff]   ;;  %v7074_v41 = vld [vmem:[#allocation28 + $0x88] ss:$16 sps:$4 sm:$0xff]  }
 0x503   :  { %v2761_v44 = vadd.f32 %v2757_v40, %v2747_v42  ;;  %v7071_v40 = vld [vmem:[#allocation28 + $0x80] ss:$16 sps:$4 sm:$0xff]   ;;  %v7079_v42 = vld [vmem:[#allocation28 + $0xa4] ss:$16 sps:$4 sm:$0xff]  }
 0x504   :  { %v2762_v45 = vmax.f32 %v2760_v43, 0.0  ;;  %v7082_v43 = vld [vmem:[#allocation28 + $0xac] ss:$16 sps:$4 sm:$0xff]  }
 0x505   :  { %v2763_v46 = vmax.f32 %v2761_v44, 0.0  ;;  %3697 = vmatpush1.bf16.msra.mxu0 %v7068_v37  ;;  %v7077_v44 = vld [vmem:[#allocation28 + $0xa0] ss:$16 sps:$4 sm:$0xff]  }
 0x506   :  { %v2764_v49 = vpack.c.bf16 %v2762_v45, %v2762_v45  ;;  %3698 = vmatprep.subr.bf16.mxu0 %v7076_v39  ;;  %v7080_v45 = vld [vmem:[#allocation28 + $0xa8] ss:$16 sps:$4 sm:$0xff]  }
 0x507   :  { %v2765_v47 = vpack.c.bf16 %v2763_v46, %v2763_v46  ;;  %v7085_v46 = vld [vmem:[#allocation28 + $0xc4] ss:$16 sps:$4 sm:$0xff]  }
 0x509   :  { %3002 = vmatprep.mubr.bf16.mxu1 %v2765_v47  ;;  %3699 = vmatpush1.bf16.msra.mxu0 %v7074_v41  ;;  %v7088_v47 = vld [vmem:[#allocation28 + $0xcc] ss:$16 sps:$4 sm:$0xff]  }
 0x50a   :  { %3003 = vmatmul.mubr.bf16.vlgmr.msra.gmra.mrb[4].mxu1 %v2764_v49  ;;  %3700 = vmatprep.subr.bf16.mxu0 %v7082_v43  ;;  %v7086_v49 = vld [vmem:[#allocation28 + $0xc8] ss:$16 sps:$4 sm:$0xff]  }
 0x50b   :  { %3129 = vmatpush1.bf16.msra.mxu1 %v7023_v48  ;;  %3160 = vmatprep.mubr.bf16.mxu1 %v8101_v22  ;;  %v7041_v22 = vld [vmem:[#allocation22 + $0x60] ss:$8 sps:$4 sm:$0xff]  }
 0x50c   :  { %3130 = vmatprep.subr.bf16.mxu1 %v7028_v50  ;;  %v7083_v48 = vld [vmem:[#allocation28 + $0xc0] ss:$16 sps:$4 sm:$0xff]   ;;  %v7091_v50 = vld [vmem:[#allocation28 + $0xe4] ss:$16 sps:$4 sm:$0xff]  }
 0x50d   :  { %3701 = vmatpush1.bf16.msra.mxu0 %v7080_v45 }
 0x50e   :  { %3702 = vmatprep.subr.bf16.mxu0 %v7088_v47 }
 0x50f   :  { %3131 = vmatpush1.bf16.msra.mxu1 %v7026_v51  ;;  %v7094_v51 = vld [vmem:[#allocation28 + $0xec] ss:$16 sps:$4 sm:$0xff]  }
 0x510   :  { %3132 = vmatprep.subr.bf16.mxu1 %v7031_v52  ;;  %v7089_v52 = vld [vmem:[#allocation28 + $0xe0] ss:$16 sps:$4 sm:$0xff]  }
 0x511   :  { %3703 = vmatpush1.bf16.msra.mxu0 %v7086_v49 }
 0x512   :  { %3704 = vmatprep.subr.bf16.mxu0 %v7094_v51 }
 0x513   :  { %3133 = vmatpush1.bf16.msra.mxu1 %v7029_v53  ;;  %v7092_v53 = vld [vmem:[#allocation28 + $0xe8] ss:$16 sps:$4 sm:$0xff]  }
 0x514   :  { %3134 = vmatprep.subr.bf16.mxu1 %v7034_v54  ;;  %v7097_v54 = vld [vmem:[#allocation28 + $0x104] ss:$16 sps:$4 sm:$0xff]  }
 0x515   :  { %3705 = vmatpush1.bf16.msra.mxu0 %v7092_v53 }
 0x517   :  { %3135 = vmatpush1.bf16.msra.mxu1 %v7032_v55  ;;  %v7100_v55 = vld [vmem:[#allocation28 + $0x10c] ss:$16 sps:$4 sm:$0xff]  }
 0x518   :  { %3136 = vmatprep.subr.bf16.mxu1 %v7037_v56  ;;  %v7095_v56 = vld [vmem:[#allocation28 + $0x100] ss:$16 sps:$4 sm:$0xff]   ;;  %3706 = vmatprep.subr.bf16.mxu0 %v7100_v55 }
 0x51b   :  { %3137 = vmatpush1.bf16.msra.mxu1 %v7035_v57  ;;  %v7098_v57 = vld [vmem:[#allocation28 + $0x108] ss:$16 sps:$4 sm:$0xff]  }
 0x51c   :  { %3138 = vmatprep.subr.bf16.mxu1 %v7040_v58  ;;  %3707 = vmatpush1.bf16.msra.mxu0 %v7098_v57  ;;  %v7103_v58 = vld [vmem:[#allocation28 + $0x124] ss:$16 sps:$4 sm:$0xff]  }
 0x51f   :  { %3139 = vmatpush1.bf16.msra.mxu1 %v7038_v59  ;;  %v7106_v59 = vld [vmem:[#allocation28 + $0x12c] ss:$16 sps:$4 sm:$0xff]  }
 0x520   :  { %3140 = vmatprep.subr.bf16.mxu1 %v7043_v60  ;;  %v7101_v60 = vld [vmem:[#allocation28 + $0x120] ss:$16 sps:$4 sm:$0xff]   ;;  %3708 = vmatprep.subr.bf16.mxu0 %v7106_v59 }
 0x523   :  { %3141 = vmatpush1.bf16.msra.mxu1 %v7041_v22  ;;  %v7104_v22 = vld [vmem:[#allocation28 + $0x128] ss:$16 sps:$4 sm:$0xff]  }
 0x524   :  { %3142 = vmatprep.subr.bf16.mxu1 %v7046_v61  ;;  %3709 = vmatpush1.bf16.msra.mxu0 %v7104_v22  ;;  %v7109_v61 = vld [vmem:[#allocation28 + $0x144] ss:$16 sps:$4 sm:$0xff]  }
 0x527   :  { %3143 = vmatpush1.bf16.msra.mxu1 %v7044_v62  ;;  %v7112_v62 = vld [vmem:[#allocation28 + $0x14c] ss:$16 sps:$4 sm:$0xff]  }
 0x528   :  { %3649 = vmatprep.subr.bf16.mxu1 %v7049_v24  ;;  %3710 = vmatprep.subr.bf16.mxu0 %v7112_v62  ;;  %v7131_v24 = vld [vmem:[#allocation28 + $0x1c0] ss:$16 sps:$4 sm:$0xff]  }
 0x5dd   :  { %v3004_v2 = vpop.f32.mrb[4].mxu1 }
 0x5de   :  { %v3005_v3 = vadd.f32 %v3004_v2, %v2803_v0  ;;  %v3006_v4 = vpop.f32.mrb[5].mxu1  ;;  %v7110_v0 = vld [vmem:[#allocation28 + $0x148] ss:$16 sps:$4 sm:$0xff]   ;;  %v7118_v2 = vld [vmem:[#allocation28 + $0x16c] ss:$16 sps:$4 sm:$0xff]  }
 0x5df   :  { %v3007_v5 = vadd.f32 %v3006_v4, %v2807_v1  ;;  %v3008_v10 = vpop.f32.mrb[6].mxu1  ;;  %3711 = vmatpush1.bf16.msra.mxu0 %v7110_v0  ;;  %v7115_v1 = vld [vmem:[#allocation28 + $0x164] ss:$16 sps:$4 sm:$0xff]   ;;  %v7116_v4 = vld [vmem:[#allocation28 + $0x168] ss:$16 sps:$4 sm:$0xff]  }
 0x5e0   :  { %3011 = vst [vmem:[#allocation38] sm:$0xff] %v3005_v3  ;;  %v3009_v12 = vpop.f32.mrb[7].mxu1  ;;  %3712 = vmatprep.subr.bf16.mxu0 %v7118_v2  ;;  %v7124_v10 = vld [vmem:[#allocation28 + $0x18c] ss:$16 sps:$4 sm:$0xff]  }
 0x5e1   :  { %3012 = vst [vmem:[#allocation38 + $0x8] sm:$0xff] %v3007_v5  ;;  %v3014_v13 = vmul.f32 0.5, %v3007_v5  ;;  %v7121_v5 = vld [vmem:[#allocation28 + $0x184] ss:$16 sps:$4 sm:$0xff]   ;;  %v7119_v12 = vld [vmem:[#allocation28 + $0x180] ss:$16 sps:$4 sm:$0xff]  }
 0x5e3   :  { %v3015_v17 = vmul.f32 1.442695, %v3014_v13  ;;  %3713 = vmatpush1.bf16.msra.mxu0 %v7116_v4  ;;  %v7122_v13 = vld [vmem:[#allocation28 + $0x188] ss:$16 sps:$4 sm:$0xff]  }
 0x5e4   :  { %3714 = vmatprep.subr.bf16.mxu0 %v7124_v10 }
 0x5e5   :  { %7475 = vpow2.f32 %v3015_v17  ;;  %v7127_v17 = vld [vmem:[#allocation28 + $0x1a4] ss:$16 sps:$4 sm:$0xff]  }
 0x5e7   :  { %3715 = vmatpush1.bf16.msra.mxu0 %v7122_v13 }
 0x5ef   :  { %v7476_v21 = vpop.eup %7475 }
 0x5f0   :  { %v3017_v6 = vmul.f32 %v7476_v21, %v3013_v20  ;;  %v7130_v20 = vld [vmem:[#allocation28 + $0x1ac] ss:$16 sps:$4 sm:$0xff]   ;;  %v7125_v21 = vld [vmem:[#allocation28 + $0x1a0] ss:$16 sps:$4 sm:$0xff]  }
 0x5f1   :  { %3716 = vmatprep.subr.bf16.mxu0 %v7130_v20 }
 0x5f2   :  { %v3018_v11 = vadd.f32 %v3017_v6, %v3005_v3  ;;  %v7113_v3 = vld [vmem:[#allocation28 + $0x160] ss:$16 sps:$4 sm:$0xff]   ;;  %v7128_v6 = vld [vmem:[#allocation28 + $0x1a8] ss:$16 sps:$4 sm:$0xff]  }
 0x5f3   :  { %3717 = vmatpush1.bf16.msra.mxu0 %v7128_v6  ;;  %v3211_v6 = vld [vmem:[#allocation25] sm:$0x3] }
 0x5f4   :  { %v3019_v23 = vpack.c.bf16 %v3018_v11, %v3018_v11  ;;  %v7133_v11 = vld [vmem:[#allocation28 + $0x1c4] ss:$16 sps:$4 sm:$0xff]  }
 0x5f6   :  { %3161 = vmatmul.mubr.bf16.vlgmr.msra.gmra.mrb[8].mxu1 %v3019_v23  ;;  %v7136_v23 = vld [vmem:[#allocation28 + $0x1cc] ss:$16 sps:$4 sm:$0xff]  }
 0x5f7   :  { %3650 = vmatpush1.bf16.msra.mxu1 %v7047_v7  ;;  %3718 = vmatprep.subr.bf16.mxu0 %v7136_v23  ;;  %v7139_v7 = vld [vmem:[#allocation28 + $0x1e4] ss:$16 sps:$4 sm:$0xff]   ;;  %v3216_v23 = vrot.slane %v3211_v6, %v8542_v15 }
 0x5f8   :  { %3651 = vmatprep.subr.bf16.mxu1 %v7055_v28  ;;  %3719 = vmatpush1.bf16.msra.mxu0 %v7134_v26  ;;  %v7137_v28 = vld [vmem:[#allocation28 + $0x1e0] ss:$16 sps:$4 sm:$0xff]   ;;  %v3220_v26 = vrot.slane %v3211_v6, %v8548_v18  ;;  %v7203_v6 = vld [vmem:[#allocation34 + $0x230] ss:$28 sps:$4 sm:$0xff]  }
 0x5f9   :  { %3720 = vmatprep.subr.bf16.mxu0 %v7142_v27 }
 0x5fb   :  { %3652 = vmatpush1.bf16.msra.mxu1 %v7053_v30  ;;  %v7145_v30 = vld [vmem:[#allocation34 + $0x4] ss:$28 sps:$4 sm:$0xff]  }
 0x5fc   :  { %3653 = vmatprep.subr.bf16.mxu1 %v7061_v32  ;;  %3721 = vmatpush1.bf16.msra.mxu0 %v7140_v29  ;;  %v3036_v32 = vld [vmem:[#allocation23] sm:$0x3] }
 0x5fd   :  { %5402 = vmatprep.subr.bf16.mxu0 %v7148_v31  ;;  %v3041_v8 = vrot.slane %v3036_v32, %v8542_v15 }
 0x5ff   :  { %3654 = vmatpush1.bf16.msra.mxu1 %v7059_v33  ;;  %v3045_v33 = vrot.slane %v3036_v32, %v8548_v18 }
 0x600   :  { %3655 = vmatprep.subr.bf16.mxu1 %v7067_v9 }
 0x603   :  { %3656 = vmatpush1.bf16.msra.mxu1 %v7065_v36 }
 0x604   :  { %3657 = vmatprep.subr.bf16.mxu1 %v7073_v38 }
 0x607   :  { %3658 = vmatpush1.bf16.msra.mxu1 %v7071_v40 }
 0x608   :  { %3659 = vmatprep.subr.bf16.mxu1 %v7079_v42 }
 0x60b   :  { %3660 = vmatpush1.bf16.msra.mxu1 %v7077_v44 }
 0x60c   :  { %3661 = vmatprep.subr.bf16.mxu1 %v7085_v46 }
 0x60f   :  { %3662 = vmatpush1.bf16.msra.mxu1 %v7083_v48 }
 0x610   :  { %3663 = vmatprep.subr.bf16.mxu1 %v7091_v50 }
 0x613   :  { %3664 = vmatpush1.bf16.msra.mxu1 %v7089_v52 }
 0x614   :  { %3665 = vmatprep.subr.bf16.mxu1 %v7097_v54 }
 0x617   :  { %3666 = vmatpush1.bf16.msra.mxu1 %v7095_v56 }
 0x618   :  { %3667 = vmatprep.subr.bf16.mxu1 %v7103_v58 }
 0x61b   :  { %3668 = vmatpush1.bf16.msra.mxu1 %v7101_v60 }
 0x61c   :  { %3669 = vmatprep.subr.bf16.mxu1 %v7109_v61 }
 0x61f   :  { %3670 = vmatpush1.bf16.msra.mxu1 %v7107_v63 }
 0x620   :  { %3671 = vmatprep.subr.bf16.mxu1 %v7115_v1 }
 0x623   :  { %3672 = vmatpush1.bf16.msra.mxu1 %v7113_v3 }
 0x624   :  { %3673 = vmatprep.subr.bf16.mxu1 %v7121_v5 }
 0x627   :  { %3674 = vmatpush1.bf16.msra.mxu1 %v7119_v12 }
 0x628   :  { %3675 = vmatprep.subr.bf16.mxu1 %v7127_v17 }
 0x62b   :  { %3676 = vmatpush1.bf16.msra.mxu1 %v7125_v21 }
 0x62c   :  { %3677 = vmatprep.subr.bf16.mxu1 %v7133_v11  ;;  %v3225_v11 = vld [vmem:[#allocation26] sm:$0x3] }
 0x62f   :  { %3678 = vmatpush1.bf16.msra.mxu1 %v7131_v24 }
 0x630   :  { %3679 = vmatprep.subr.bf16.mxu1 %v7139_v7 }
 0x633   :  { %3680 = vmatpush1.bf16.msra.mxu1 %v7137_v28  ;;  %v3230_v28 = vrot.slane %v3225_v11, %v8542_v15 }
 0x634   :  { %5320 = vmatprep.subr.bf16.mxu1 %v7145_v30  ;;  %v3234_v30 = vrot.slane %v3225_v11, %v8548_v18  ;;  %v7206_v11 = vld [vmem:[#allocation34 + $0x238] ss:$28 sps:$4 sm:$0xff]  }
 0x6c9   :  { %v3162_v34 = vpop.f32.mrb[8].mxu1 }
 0x6ca   :  { %v3163_v9 = vadd.f32 %v3162_v34, %v3041_v8  ;;  %v3164_v35 = vpop.f32.mrb[9].mxu1 }
 0x6cb   :  { %v3165_v36 = vadd.f32 %v3164_v35, %v3045_v33  ;;  %v3166_v37 = vpop.f32.mrb[10].mxu1 }
 0x6cc   :  { %v3169_v38 = vmul.f32 %v8558_v25, %v3163_v9  ;;  %v3167_v39 = vpop.f32.mrb[11].mxu1  ;;  %v7146_v37 = vld [vmem:[#allocation34 + $0x8] ss:$28 sps:$4 sm:$0xff]  }
 0x6cd   :  { %v3170_v40 = vmul.f32 %v8558_v25, %v3165_v36  ;;  %v7151_v39 = vld [vmem:[#allocation34 + $0x3c] ss:$28 sps:$4 sm:$0xff]  }
 0x6ce   :  { %v3171_v41 = vrot.slane %v3169_v38, 4 }
 0x6cf   :  { %v3177_v42 = vrot.slane %v3170_v40, 4 }
 0x6d0   :  { %v3172_v43 = vadd.f32 %v3171_v41, %v3169_v38  ;;  %v7149_v41 = vld [vmem:[#allocation34 + $0x38] ss:$28 sps:$4 sm:$0xff]  }
 0x6d1   :  { %v3178_v44 = vadd.f32 %v3177_v42, %v3170_v40  ;;  %v7154_v40 = vld [vmem:[#allocation34 + $0x44] ss:$28 sps:$4 sm:$0xff]  }
 0x6d2   :  { %v3173_v45 = vrot.slane %v3172_v43, 2  ;;  %v7152_v42 = vld [vmem:[#allocation34 + $0x40] ss:$28 sps:$4 sm:$0xff]  }
 0x6d3   :  { %v3179_v46 = vrot.slane %v3178_v44, 2 }
 0x6d4   :  { %v3174_v47 = vadd.f32 %v3173_v45, %v3172_v43  ;;  %v7157_v43 = vld [vmem:[#allocation34 + $0x74] ss:$28 sps:$4 sm:$0xff]  }
 0x6d5   :  { %v3180_v48 = vadd.f32 %v3179_v46, %v3178_v44  ;;  %v7160_v44 = vld [vmem:[#allocation34 + $0x7c] ss:$28 sps:$4 sm:$0xff]   ;;  %v7155_v45 = vld [vmem:[#allocation34 + $0x70] ss:$28 sps:$4 sm:$0xff]  }
 0x6d6   :  { %v3175_v49 = vrot.slane %v3174_v47, 1  ;;  %v7158_v46 = vld [vmem:[#allocation34 + $0x78] ss:$28 sps:$4 sm:$0xff]  }
 0x6d7   :  { %v3181_v50 = vrot.slane %v3180_v48, 1 }
 0x6d8   :  { %v3176_v51 = vadd.f32 %v3175_v49, %v3174_v47  ;;  %v7163_v47 = vld [vmem:[#allocation34 + $0xac] ss:$28 sps:$4 sm:$0xff]  }
 0x6d9   :  { %v3182_v52 = vadd.f32 %v3181_v50, %v3180_v48  ;;  %v7166_v48 = vld [vmem:[#allocation34 + $0xb4] ss:$28 sps:$4 sm:$0xff]   ;;  %v7161_v49 = vld [vmem:[#allocation34 + $0xa8] ss:$28 sps:$4 sm:$0xff]  }
 0x6da   :  { %v3183_v53 = vmul.f32 0.16666667, %v3176_v51  ;;  %v7164_v50 = vld [vmem:[#allocation34 + $0xb0] ss:$28 sps:$4 sm:$0xff]   ;;  %v7169_v51 = vld [vmem:[#allocation34 + $0xe4] ss:$28 sps:$4 sm:$0xff]  }
 0x6db   :  { %v3184_v54 = vmul.f32 0.16666667, %v3182_v52  ;;  %v7172_v52 = vld [vmem:[#allocation34 + $0xec] ss:$28 sps:$4 sm:$0xff]  }
 0x6dc   :  { %v3185_v55 = vsub.f32 %v3163_v9, %v3183_v53  ;;  %v7167_v53 = vld [vmem:[#allocation34 + $0xe0] ss:$28 sps:$4 sm:$0xff]  }
 0x6dd   :  { %v3186_v56 = vsub.f32 %v3165_v36, %v3184_v54  ;;  %v7143_v36 = vld [vmem:[#allocation34] ss:$28 sps:$4 sm:$0xff]   ;;  %v7170_v54 = vld [vmem:[#allocation34 + $0xe8] ss:$28 sps:$4 sm:$0xff]  }
 0x6de   :  { %v3187_v57 = vmul.f32 %v8558_v25, %v3185_v55 }
 0x6df   :  { %v3188_v58 = vmul.f32 %v8558_v25, %v3186_v56 }
 0x6e0   :  { %v3189_v59 = vmul.f32 %v3187_v57, %v3187_v57  ;;  %v7173_v57 = vld [vmem:[#allocation34 + $0x118] ss:$28 sps:$4 sm:$0xff]  }
 0x6e1   :  { %v3190_v60 = vmul.f32 %v3188_v58, %v3188_v58  ;;  %v7176_v58 = vld [vmem:[#allocation34 + $0x120] ss:$28 sps:$4 sm:$0xff]  }
 0x6e2   :  { %v3191_v22 = vrot.slane %v3189_v59, 4 }
 0x6e3   :  { %v3197_v61 = vrot.slane %v3190_v60, 4 }
 0x6e4   :  { %v3192_v62 = vadd.f32 %v3191_v22, %v3189_v59  ;;  %v7181_v59 = vld [vmem:[#allocation34 + $0x154] ss:$28 sps:$4 sm:$0xff]  }
 0x6e5   :  { %v3198_v63 = vadd.f32 %v3197_v61, %v3190_v60  ;;  %v7184_v60 = vld [vmem:[#allocation34 + $0x15c] ss:$28 sps:$4 sm:$0xff]   ;;  %v7179_v22 = vld [vmem:[#allocation34 + $0x150] ss:$28 sps:$4 sm:$0xff]  }
 0x6e6   :  { %v3193_v0 = vrot.slane %v3192_v62, 2  ;;  %v7182_v61 = vld [vmem:[#allocation34 + $0x158] ss:$28 sps:$4 sm:$0xff]  }
 0x6e7   :  { %v3199_v1 = vrot.slane %v3198_v63, 2 }
 0x6e8   :  { %v3194_v2 = vadd.f32 %v3193_v0, %v3192_v62  ;;  %v7187_v62 = vld [vmem:[#allocation34 + $0x18c] ss:$28 sps:$4 sm:$0xff]  }
 0x6e9   :  { %v3200_v3 = vadd.f32 %v3199_v1, %v3198_v63  ;;  %v7190_v63 = vld [vmem:[#allocation34 + $0x194] ss:$28 sps:$4 sm:$0xff]   ;;  %v7185_v0 = vld [vmem:[#allocation34 + $0x188] ss:$28 sps:$4 sm:$0xff]  }
 0x6ea   :  { %v3195_v4 = vrot.slane %v3194_v2, 1  ;;  %v7188_v1 = vld [vmem:[#allocation34 + $0x190] ss:$28 sps:$4 sm:$0xff]  }
 0x6eb   :  { %v3201_v5 = vrot.slane %v3200_v3, 1 }
 0x6ec   :  { %v3196_v10 = vadd.f32 %v3195_v4, %v3194_v2  ;;  %v7193_v2 = vld [vmem:[#allocation34 + $0x1c4] ss:$28 sps:$4 sm:$0xff]  }
 0x6ed   :  { %v3202_v12 = vadd.f32 %v3201_v5, %v3200_v3  ;;  %v7196_v3 = vld [vmem:[#allocation34 + $0x1cc] ss:$28 sps:$4 sm:$0xff]   ;;  %v7191_v4 = vld [vmem:[#allocation34 + $0x1c0] ss:$28 sps:$4 sm:$0xff]  }
 0x6ee   :  { %v3203_v13 = vmul.f32 0.16666667, %v3196_v10  ;;  %v7194_v5 = vld [vmem:[#allocation34 + $0x1c8] ss:$28 sps:$4 sm:$0xff]   ;;  %v7199_v10 = vld [vmem:[#allocation34 + $0x1fc] ss:$28 sps:$4 sm:$0xff]  }
 0x6ef   :  { %v3204_v17 = vmul.f32 0.16666667, %v3202_v12  ;;  %v7202_v12 = vld [vmem:[#allocation34 + $0x204] ss:$28 sps:$4 sm:$0xff]  }
 0x6f0   :  { %v3205_v20 = vadd.f32 1e-05, %v3203_v13  ;;  %v7197_v13 = vld [vmem:[#allocation34 + $0x1f8] ss:$28 sps:$4 sm:$0xff]  }
 0x6f1   :  { %v3206_v21 = vadd.f32 1e-05, %v3204_v17  ;;  %v7200_v17 = vld [vmem:[#allocation34 + $0x200] ss:$28 sps:$4 sm:$0xff]  }
 0x6f2   :  { %7477 = vrsqrt.f32 %v3205_v20  ;;  %v7205_v20 = vld [vmem:[#allocation34 + $0x234] ss:$28 sps:$4 sm:$0xff]  }
 0x6f3   :  { %7479 = vrsqrt.f32 %v3206_v21  ;;  %v7208_v21 = vld [vmem:[#allocation34 + $0x23c] ss:$28 sps:$4 sm:$0xff]  }
 0x6fc   :  { %v7478_v24 = vpop.eup %7477 }
 0x6fd   :  { %v7480_v7 = vpop.eup %7479  ;;  %v3209_v27 = vmul.f32 %v7478_v24, %v3185_v55  ;;  %v7175_v55 = vld [vmem:[#allocation34 + $0x11c] ss:$28 sps:$4 sm:$0xff]   ;;  %v7214_v24 = vld [vmem:[#allocation34 + $0x274] ss:$28 sps:$4 sm:$0xff]  }
 0x6fe   :  { %v3210_v29 = vmul.f32 %v7480_v7, %v3186_v56  ;;  %v7178_v56 = vld [vmem:[#allocation34 + $0x124] ss:$28 sps:$4 sm:$0xff]   ;;  %v7212_v7 = vld [vmem:[#allocation34 + $0x270] ss:$28 sps:$4 sm:$0xff]  }
 0x6ff   :  { %v3223_v31 = vmul.f32 %v3216_v23, %v3209_v27  ;;  %v7211_v23 = vld [vmem:[#allocation34 + $0x26c] ss:$28 sps:$4 sm:$0xff]   ;;  %v7217_v27 = vld [vmem:[#allocation34 + $0x2a4] ss:$28 sps:$4 sm:$0xff]  }
 0x700   :  { %v3224_v32 = vmul.f32 %v3220_v26, %v3210_v29  ;;  %v7209_v26 = vld [vmem:[#allocation34 + $0x268] ss:$28 sps:$4 sm:$0xff]   ;;  %v7215_v29 = vld [vmem:[#allocation34 + $0x2a0] ss:$28 sps:$4 sm:$0xff]  }
 0x701   :  { %v3237_v8 = vadd.f32 %v3230_v28, %v3223_v31  ;;  %v7220_v28 = vld [vmem:[#allocation34 + $0x2ac] ss:$28 sps:$4 sm:$0xff]   ;;  %v7223_v31 = vld [vmem:[#allocation34 + $0x2dc] ss:$28 sps:$4 sm:$0xff]  }
 0x702   :  { %v3238_v33 = vadd.f32 %v3234_v30, %v3224_v32  ;;  %v7218_v30 = vld [vmem:[#allocation34 + $0x2a8] ss:$28 sps:$4 sm:$0xff]  }
 0x703   :  { %v3239_v34 = vmax.f32 %v3237_v8, 0.0  ;;  %v7226_v32 = vld [vmem:[#allocation34 + $0x2e4] ss:$28 sps:$4 sm:$0xff]   ;;  %v7221_v8 = vld [vmem:[#allocation34 + $0x2d8] ss:$28 sps:$4 sm:$0xff]  }
 0x704   :  { %v3240_v9 = vmax.f32 %v3238_v33, 0.0  ;;  %v7224_v33 = vld [vmem:[#allocation34 + $0x2e0] ss:$28 sps:$4 sm:$0xff]  }
 0x705   :  { %v3241_v38 = vpack.c.bf16 %v3239_v34, %v3239_v34  ;;  %v7229_v34 = vld [vmem:[#allocation34 + $0x314] ss:$28 sps:$4 sm:$0xff]  }
 0x706   :  { %v3242_v35 = vpack.c.bf16 %v3240_v9, %v3240_v9  ;;  %v7232_v9 = vld [vmem:[#allocation34 + $0x31c] ss:$28 sps:$4 sm:$0xff]  }
 0x708   :  { %3681 = vmatprep.mubr.bf16.mxu1 %v3242_v35  ;;  %3722 = vmatprep.mubr.bf16.mxu0 %v3242_v35  ;;  %v7227_v35 = vld [vmem:[#allocation34 + $0x310] ss:$28 sps:$4 sm:$0xff]  }
 0x709   :  { %3682 = vmatmul.mubr.bf16.vlgmr.msra.gmra.mrb[12].mxu1 %v3241_v38  ;;  %3723 = vmatmul.mubr.bf16.vlgmr.msra.gmra.mrb[8].mxu0 %v3241_v38  ;;  %v7233_v38 = vld [vmem:[#allocation34 + $0x348] ss:$28 sps:$4 sm:$0xff]  }
 0x70a   :  { %5321 = vmatpush1.bf16.msra.mxu1 %v7143_v36  ;;  %5403 = vmatpush1.bf16.msra.mxu0 %v7146_v37  ;;  %v7230_v36 = vld [vmem:[#allocation34 + $0x318] ss:$28 sps:$4 sm:$0xff]   ;;  %v7235_v37 = vld [vmem:[#allocation34 + $0x34c] ss:$28 sps:$4 sm:$0xff]  }
 0x70b   :  { %5322 = vmatprep.subr.bf16.mxu1 %v7151_v39  ;;  %5404 = vmatprep.subr.bf16.mxu0 %v7154_v40  ;;  %v7236_v39 = vld [vmem:[#allocation34 + $0x350] ss:$28 sps:$4 sm:$0xff]  }
 0x70c   :  { %v7238_v40 = vld [vmem:[#allocation34 + $0x354] ss:$28 sps:$4 sm:$0xff]  }
 0x70e   :  { %5323 = vmatpush1.bf16.msra.mxu1 %v7149_v41  ;;  %5405 = vmatpush1.bf16.msra.mxu0 %v7152_v42  ;;  %v7241_v41 = vld [vmem:[#allocation34 + $0x384] ss:$28 sps:$4 sm:$0xff]   ;;  %v7244_v42 = vld [vmem:[#allocation34 + $0x38c] ss:$28 sps:$4 sm:$0xff]  }
 0x70f   :  { %5324 = vmatprep.subr.bf16.mxu1 %v7157_v43  ;;  %5406 = vmatprep.subr.bf16.mxu0 %v7160_v44  ;;  %v3307_v43 = vld [vmem:[#allocation29] sm:$0xf] }
 0x710   :  { %v3312_v44 = vrot.slane %v3307_v43, %v8542_v15 }
 0x712   :  { %5325 = vmatpush1.bf16.msra.mxu1 %v7155_v45  ;;  %5407 = vmatpush1.bf16.msra.mxu0 %v7158_v46  ;;  %v3320_v45 = vrot.slane %v3307_v43, %v8545_v16  ;;  %v3316_v46 = vrot.slane %v3307_v43, %v8548_v18 }
 0x713   :  { %5326 = vmatprep.subr.bf16.mxu1 %v7163_v47  ;;  %5408 = vmatprep.subr.bf16.mxu0 %v7166_v48  ;;  %v3324_v47 = vrot.slane %v3307_v43, %v8551_v19 }
 0x716   :  { %5327 = vmatpush1.bf16.msra.mxu1 %v7161_v49  ;;  %5409 = vmatpush1.bf16.msra.mxu0 %v7164_v50 }
 0x717   :  { %5328 = vmatprep.subr.bf16.mxu1 %v7169_v51  ;;  %5410 = vmatprep.subr.bf16.mxu0 %v7172_v52 }
 0x71a   :  { %5329 = vmatpush1.bf16.msra.mxu1 %v7167_v53  ;;  %5411 = vmatpush1.bf16.msra.mxu0 %v7170_v54 }
 0x71b   :  { %5330 = vmatprep.subr.bf16.mxu1 %v7175_v55  ;;  %5412 = vmatprep.subr.bf16.mxu0 %v7178_v56 }
 0x71e   :  { %5331 = vmatpush1.bf16.msra.mxu1 %v7173_v57  ;;  %5413 = vmatpush1.bf16.msra.mxu0 %v7176_v58 }
 0x71f   :  { %5332 = vmatprep.subr.bf16.mxu1 %v7181_v59  ;;  %5414 = vmatprep.subr.bf16.mxu0 %v7184_v60 }
 0x722   :  { %5333 = vmatpush1.bf16.msra.mxu1 %v7179_v22  ;;  %5415 = vmatpush1.bf16.msra.mxu0 %v7182_v61 }
 0x723   :  { %5334 = vmatprep.subr.bf16.mxu1 %v7187_v62  ;;  %5416 = vmatprep.subr.bf16.mxu0 %v7190_v63 }
 0x726   :  { %5335 = vmatpush1.bf16.msra.mxu1 %v7185_v0  ;;  %5417 = vmatpush1.bf16.msra.mxu0 %v7188_v1 }
 0x727   :  { %5336 = vmatprep.subr.bf16.mxu1 %v7193_v2  ;;  %5418 = vmatprep.subr.bf16.mxu0 %v7196_v3 }
 0x72a   :  { %5337 = vmatpush1.bf16.msra.mxu1 %v7191_v4  ;;  %5419 = vmatpush1.bf16.msra.mxu0 %v7194_v5 }
 0x72b   :  { %5338 = vmatprep.subr.bf16.mxu1 %v7199_v10  ;;  %5420 = vmatprep.subr.bf16.mxu0 %v7202_v12 }
 0x72e   :  { %5339 = vmatpush1.bf16.msra.mxu1 %v7197_v13  ;;  %5421 = vmatpush1.bf16.msra.mxu0 %v7200_v17 }
 0x72f   :  { %5340 = vmatprep.subr.bf16.mxu1 %v7205_v20  ;;  %5422 = vmatprep.subr.bf16.mxu0 %v7208_v21 }
 0x732   :  { %5341 = vmatpush1.bf16.msra.mxu1 %v7203_v6  ;;  %5423 = vmatpush1.bf16.msra.mxu0 %v7206_v11 }
 0x733   :  { %5342 = vmatprep.subr.bf16.mxu1 %v7211_v23  ;;  %5424 = vmatprep.subr.bf16.mxu0 %v7214_v24 }
 0x736   :  { %5343 = vmatpush1.bf16.msra.mxu1 %v7209_v26  ;;  %5425 = vmatpush1.bf16.msra.mxu0 %v7212_v7 }
 0x737   :  { %5344 = vmatprep.subr.bf16.mxu1 %v7217_v27  ;;  %5426 = vmatprep.subr.bf16.mxu0 %v7220_v28 }
 0x73a   :  { %5345 = vmatpush1.bf16.msra.mxu1 %v7215_v29  ;;  %5427 = vmatpush1.bf16.msra.mxu0 %v7218_v30 }
 0x73b   :  { %5346 = vmatprep.subr.bf16.mxu1 %v7223_v31  ;;  %5428 = vmatprep.subr.bf16.mxu0 %v7226_v32 }
 0x73e   :  { %5347 = vmatpush1.bf16.msra.mxu1 %v7221_v8  ;;  %5429 = vmatpush1.bf16.msra.mxu0 %v7224_v33 }
 0x73f   :  { %5348 = vmatprep.subr.bf16.mxu1 %v7229_v34  ;;  %5430 = vmatprep.subr.bf16.mxu0 %v7232_v9 }
 0x742   :  { %5349 = vmatpush1.bf16.msra.mxu1 %v7227_v35  ;;  %5431 = vmatpush1.bf16.msra.mxu0 %v7230_v36 }
 0x743   :  { %5350 = vmatprep.subr.bf16.mxu1 %v7235_v37  ;;  %5432 = vmatprep.subr.bf16.mxu0 %v7238_v40 }
 0x746   :  { %5351 = vmatpush1.bf16.msra.mxu1 %v7233_v38  ;;  %5433 = vmatpush1.bf16.msra.mxu0 %v7236_v39 }
 0x747   :  { %5361 = vmatprep.subr.bf16.mxu1 %v7241_v41  ;;  %5443 = vmatprep.subr.bf16.mxu0 %v7244_v42 }
 0x7dc   :  { %v3683_v48 = vpop.f32.mrb[12].mxu1  ;;  %v3724_v49 = vpop.f32.mrb[8].mxu0 }
 0x7dd   :  { %v3684_v50 = vadd.f32 %v3683_v48, %v3312_v44  ;;  %v3725_v51 = vadd.f32 %v3724_v49, %v3320_v45  ;;  %v3685_v52 = vpop.f32.mrb[13].mxu1  ;;  %v3726_v53 = vpop.f32.mrb[9].mxu0 }
 0x7de   :  { %v3686_v54 = vadd.f32 %v3685_v52, %v3316_v46  ;;  %v3727_v55 = vadd.f32 %v3726_v53, %v3324_v47  ;;  %v3687_v56 = vpop.f32.mrb[14].mxu1  ;;  %v3728_v57 = vpop.f32.mrb[10].mxu0 }
 0x7df   :  { %v3731_v58 = vmul.f32 %v8558_v25, %v3684_v50  ;;  %v3733_v59 = vmul.f32 %v8558_v25, %v3725_v51  ;;  %v3688_v60 = vpop.f32.mrb[15].mxu1  ;;  %v3729_v22 = vpop.f32.mrb[11].mxu0 }
 0x7e0   :  { %v3732_v61 = vmul.f32 %v8558_v25, %v3686_v54  ;;  %v3734_v62 = vmul.f32 %v8558_v25, %v3727_v55 }
 0x7e1   :  { %v3735_v63 = vrot.slane %v3731_v58, 4  ;;  %v3747_v0 = vrot.slane %v3733_v59, 4 }
 0x7e2   :  { %v3741_v1 = vrot.slane %v3732_v61, 4  ;;  %v3753_v2 = vrot.slane %v3734_v62, 4 }
 0x7e3   :  { %v3736_v3 = vadd.f32 %v3735_v63, %v3731_v58  ;;  %v3748_v4 = vadd.f32 %v3747_v0, %v3733_v59 }
 0x7e4   :  { %v3742_v5 = vadd.f32 %v3741_v1, %v3732_v61  ;;  %v3754_v10 = vadd.f32 %v3753_v2, %v3734_v62 }
 0x7e5   :  { %v3737_v12 = vrot.slane %v3736_v3, 2  ;;  %v3749_v13 = vrot.slane %v3748_v4, 2 }
 0x7e6   :  { %v3743_v17 = vrot.slane %v3742_v5, 2  ;;  %v3755_v20 = vrot.slane %v3754_v10, 2 }
 0x7e7   :  { %v3738_v21 = vadd.f32 %v3737_v12, %v3736_v3  ;;  %v3750_v6 = vadd.f32 %v3749_v13, %v3748_v4 }
 0x7e8   :  { %v3744_v11 = vadd.f32 %v3743_v17, %v3742_v5  ;;  %v3756_v23 = vadd.f32 %v3755_v20, %v3754_v10 }
 0x7e9   :  { %v3739_v24 = vrot.slane %v3738_v21, 1  ;;  %v3751_v26 = vrot.slane %v3750_v6, 1 }
 0x7ea   :  { %v3745_v7 = vrot.slane %v3744_v11, 1  ;;  %v3757_v27 = vrot.slane %v3756_v23, 1 }
 0x7eb   :  { %v3740_v28 = vadd.f32 %v3739_v24, %v3738_v21  ;;  %v3752_v29 = vadd.f32 %v3751_v26, %v3750_v6  ;;  %v3815_v6 = vld [vmem:[#allocation31] sm:$0xf] }
 0x7ec   :  { %v3746_v30 = vadd.f32 %v3745_v7, %v3744_v11  ;;  %v3758_v31 = vadd.f32 %v3757_v27, %v3756_v23  ;;  %v3841_v11 = vld [vmem:[#allocation32] sm:$0xf]  ;;  %v3820_v23 = vrot.slane %v3815_v6, %v8542_v15  ;;  %v3828_v26 = vrot.slane %v3815_v6, %v8545_v16 }
 0x7ed   :  { %v3759_v32 = vmul.f32 0.16666667, %v3740_v28  ;;  %v3761_v8 = vmul.f32 0.16666667, %v3752_v29  ;;  %v3824_v28 = vrot.slane %v3815_v6, %v8548_v18  ;;  %v3846_v29 = vrot.slane %v3841_v11, %v8542_v15 }
 0x7ee   :  { %v3760_v33 = vmul.f32 0.16666667, %v3746_v30  ;;  %v3762_v34 = vmul.f32 0.16666667, %v3758_v31 }
 0x7ef   :  { %v3763_v9 = vsub.f32 %v3684_v50, %v3759_v32  ;;  %v3765_v35 = vsub.f32 %v3725_v51, %v3761_v8  ;;  %v3832_v32 = vrot.slane %v3815_v6, %v8551_v19  ;;  %v3854_v8 = vrot.slane %v3841_v11, %v8545_v16  ;;  %v7286_v6 = vld [vmem:[#allocation34 + $0x514] ss:$28 sps:$4 sm:$0xff]  }
 0x7f0   :  { %v3764_v36 = vsub.f32 %v3686_v54, %v3760_v33  ;;  %v8614_v37 = vsub.f32 %v3727_v55, %v3762_v34 }
 0x7f1   :  { %v3767_v38 = vmul.f32 %v8558_v25, %v3763_v9  ;;  %v3769_v39 = vmul.f32 %v8558_v25, %v3765_v35 }
 0x7f2   :  { %v3768_v40 = vmul.f32 %v8558_v25, %v3764_v36  ;;  %v3770_v41 = vmul.f32 %v8558_v25, %v8614_v37 }
 0x7f3   :  { %v3771_v42 = vmul.f32 %v3767_v38, %v3767_v38  ;;  %v3773_v43 = vmul.f32 %v3769_v39, %v3769_v39  ;;  %v3850_v39 = vrot.slane %v3841_v11, %v8548_v18 }
 0x7f4   :  { %v3772_v44 = vmul.f32 %v3768_v40, %v3768_v40  ;;  %v3774_v45 = vmul.f32 %v3770_v41, %v3770_v41 }
 0x7f5   :  { %v3775_v46 = vrot.slane %v3771_v42, 4  ;;  %v3787_v47 = vrot.slane %v3773_v43, 4 }
 0x7f6   :  { %v3781_v48 = vrot.slane %v3772_v44, 4  ;;  %v3793_v49 = vrot.slane %v3774_v45, 4 }
 0x7f7   :  { %v3776_v50 = vadd.f32 %v3775_v46, %v3771_v42  ;;  %v3788_v51 = vadd.f32 %v3787_v47, %v3773_v43 }
 0x7f8   :  { %v3782_v52 = vadd.f32 %v3781_v48, %v3772_v44  ;;  %v3794_v53 = vadd.f32 %v3793_v49, %v3774_v45 }
 0x7f9   :  { %v3777_v54 = vrot.slane %v3776_v50, 2  ;;  %v3789_v55 = vrot.slane %v3788_v51, 2 }
 0x7fa   :  { %v3783_v56 = vrot.slane %v3782_v52, 2  ;;  %v3795_v57 = vrot.slane %v3794_v53, 2 }
 0x7fb   :  { %v3778_v58 = vadd.f32 %v3777_v54, %v3776_v50  ;;  %v3790_v59 = vadd.f32 %v3789_v55, %v3788_v51  ;;  %v7242_v51 = vld [vmem:[#allocation34 + $0x388] ss:$28 sps:$4 sm:$0xff]   ;;  %v7245_v55 = vld [vmem:[#allocation34 + $0x3b8] ss:$28 sps:$4 sm:$0xff]  }
 0x7fc   :  { %v3784_v60 = vadd.f32 %v3783_v56, %v3782_v52  ;;  %v3796_v25 = vadd.f32 %v3795_v57, %v3794_v53  ;;  %v7250_v53 = vld [vmem:[#allocation34 + $0x3c4] ss:$28 sps:$4 sm:$0xff]   ;;  %v7253_v57 = vld [vmem:[#allocation34 + $0x3f4] ss:$28 sps:$4 sm:$0xff]  }
 0x7fd   :  { %v3779_v22 = vrot.slane %v3778_v58, 1  ;;  %v3791_v61 = vrot.slane %v3790_v59, 1  ;;  %v7248_v56 = vld [vmem:[#allocation34 + $0x3c0] ss:$28 sps:$4 sm:$0xff]  }
 0x7fe   :  { %v3785_v62 = vrot.slane %v3784_v60, 1  ;;  %v3797_v63 = vrot.slane %v3796_v25, 1 }
 0x7ff   :  { %v3780_v0 = vadd.f32 %v3779_v22, %v3778_v58  ;;  %v3792_v1 = vadd.f32 %v3791_v61, %v3790_v59  ;;  %v7256_v58 = vld [vmem:[#allocation34 + $0x3fc] ss:$28 sps:$4 sm:$0xff]   ;;  %v7251_v59 = vld [vmem:[#allocation34 + $0x3f0] ss:$28 sps:$4 sm:$0xff]   ;;  %v7257_v61 = vld [vmem:[#allocation34 + $0x428] ss:$28 sps:$4 sm:$0xff]  }
 0x800   :  { %v3786_v2 = vadd.f32 %v3785_v62, %v3784_v60  ;;  %v3798_v3 = vadd.f32 %v3797_v63, %v3796_v25  ;;  %v7254_v60 = vld [vmem:[#allocation34 + $0x3f8] ss:$28 sps:$4 sm:$0xff]   ;;  %v7259_v25 = vld [vmem:[#allocation34 + $0x42c] ss:$28 sps:$4 sm:$0xff]   ;;  %v7265_v63 = vld [vmem:[#allocation34 + $0x464] ss:$28 sps:$4 sm:$0xff]  }
 0x801   :  { %v3799_v4 = vmul.f32 0.16666667, %v3780_v0  ;;  %v3801_v5 = vmul.f32 0.16666667, %v3792_v1  ;;  %v7262_v22 = vld [vmem:[#allocation34 + $0x434] ss:$28 sps:$4 sm:$0xff]  }
 0x802   :  { %v3800_v10 = vmul.f32 0.16666667, %v3786_v2  ;;  %v3802_v12 = vmul.f32 0.16666667, %v3798_v3  ;;  %v7260_v62 = vld [vmem:[#allocation34 + $0x430] ss:$28 sps:$4 sm:$0xff]  }
 0x803   :  { %v3803_v13 = vadd.f32 1e-05, %v3799_v4  ;;  %v3805_v17 = vadd.f32 1e-05, %v3801_v5  ;;  %v7268_v0 = vld [vmem:[#allocation34 + $0x46c] ss:$28 sps:$4 sm:$0xff]  }
 0x804   :  { %v3804_v20 = vadd.f32 1e-05, %v3800_v10  ;;  %v3806_v21 = vadd.f32 1e-05, %v3802_v12  ;;  %v7263_v1 = vld [vmem:[#allocation34 + $0x460] ss:$28 sps:$4 sm:$0xff]  }
 0x805   :  { %7481 = vrsqrt.f32 %v3803_v13  ;;  %v7266_v2 = vld [vmem:[#allocation34 + $0x468] ss:$28 sps:$4 sm:$0xff]   ;;  %v7271_v3 = vld [vmem:[#allocation34 + $0x49c] ss:$28 sps:$4 sm:$0xff]   ;;  %v7277_v12 = vld [vmem:[#allocation34 + $0x4d4] ss:$28 sps:$4 sm:$0xff]  }
 0x806   :  { %7483 = vrsqrt.f32 %v3805_v17  ;;  %v7274_v4 = vld [vmem:[#allocation34 + $0x4a4] ss:$28 sps:$4 sm:$0xff]   ;;  %v7269_v5 = vld [vmem:[#allocation34 + $0x498] ss:$28 sps:$4 sm:$0xff]   ;;  %v7275_v17 = vld [vmem:[#allocation34 + $0x4d0] ss:$28 sps:$4 sm:$0xff]  }
 0x807   :  { %7485 = vrsqrt.f32 %v3804_v20  ;;  %v7272_v10 = vld [vmem:[#allocation34 + $0x4a0] ss:$28 sps:$4 sm:$0xff]   ;;  %v7278_v20 = vld [vmem:[#allocation34 + $0x4d8] ss:$28 sps:$4 sm:$0xff]  }
 0x808   :  { %7487 = vrsqrt.f32 %v3806_v21  ;;  %v7280_v13 = vld [vmem:[#allocation34 + $0x4dc] ss:$28 sps:$4 sm:$0xff]   ;;  %v7283_v21 = vld [vmem:[#allocation34 + $0x50c] ss:$28 sps:$4 sm:$0xff]  }
 0x80f   :  { %v7482_v24 = vpop.eup %7481 }
 0x810   :  { %v7484_v7 = vpop.eup %7483  ;;  %v3811_v27 = vmul.f32 %v7482_v24, %v3763_v9  ;;  %v3858_v9 = vrot.slane %v3841_v11, %v8551_v19  ;;  %v7281_v11 = vld [vmem:[#allocation34 + $0x508] ss:$28 sps:$4 sm:$0xff]  }
 0x811   :  { %v7486_v30 = vpop.eup %7485  ;;  %v3813_v31 = vmul.f32 %v7484_v7, %v3765_v35  ;;  %v7289_v24 = vld [vmem:[#allocation34 + $0x544] ss:$28 sps:$4 sm:$0xff]  }
 0x812   :  { %v7488_v33 = vpop.eup %7487  ;;  %v3837_v34 = vmul.f32 %v3820_v23, %v3811_v27  ;;  %v3812_v38 = vmul.f32 %v7486_v30, %v3764_v36  ;;  %v7239_v36 = vld [vmem:[#allocation34 + $0x380] ss:$28 sps:$4 sm:$0xff]   ;;  %v7284_v23 = vld [vmem:[#allocation34 + $0x510] ss:$28 sps:$4 sm:$0xff]   ;;  %v7290_v27 = vld [vmem:[#allocation34 + $0x548] ss:$28 sps:$4 sm:$0xff]  }
 0x813   :  { %v3839_v40 = vmul.f32 %v3828_v26, %v3813_v31  ;;  %v3814_v41 = vmul.f32 %v7488_v33, %v8614_v37  ;;  %v7247_v37 = vld [vmem:[#allocation34 + $0x3bc] ss:$28 sps:$4 sm:$0xff]   ;;  %v7292_v26 = vld [vmem:[#allocation34 + $0x54c] ss:$28 sps:$4 sm:$0xff]  }
 0x814   :  { %v3838_v42 = vmul.f32 %v3824_v28, %v3812_v38  ;;  %v3863_v43 = vadd.f32 %v3846_v29, %v3837_v34  ;;  %v7287_v7 = vld [vmem:[#allocation34 + $0x540] ss:$28 sps:$4 sm:$0xff]   ;;  %v7293_v30 = vld [vmem:[#allocation34 + $0x578] ss:$28 sps:$4 sm:$0xff]   ;;  %v7299_v33 = vld [vmem:[#allocation34 + $0x5b0] ss:$28 sps:$4 sm:$0xff]  }
 0x815   :  { %v3840_v44 = vmul.f32 %v3832_v32, %v3814_v41  ;;  %v8630_v45 = vadd.f32 %v3854_v8, %v3839_v40  ;;  %v7295_v28 = vld [vmem:[#allocation34 + $0x57c] ss:$28 sps:$4 sm:$0xff]   ;;  %v7298_v29 = vld [vmem:[#allocation34 + $0x584] ss:$28 sps:$4 sm:$0xff]   ;;  %v7301_v32 = vld [vmem:[#allocation34 + $0x5b4] ss:$28 sps:$4 sm:$0xff]  }
 0x816   :  { %v3864_v35 = vadd.f32 %v3850_v39, %v3838_v42  ;;  %v3867_v46 = vmax.f32 %v3863_v43, 0.0  ;;  %v7296_v31 = vld [vmem:[#allocation34 + $0x580] ss:$28 sps:$4 sm:$0xff]   ;;  %v7302_v34 = vld [vmem:[#allocation34 + $0x5b8] ss:$28 sps:$4 sm:$0xff]  }
 0x817   :  { %v3866_v47 = vadd.f32 %v3858_v9, %v3840_v44  ;;  %v7304_v8 = vld [vmem:[#allocation34 + $0x5bc] ss:$28 sps:$4 sm:$0xff]   ;;  %v7307_v38 = vld [vmem:[#allocation34 + $0x5ec] ss:$28 sps:$4 sm:$0xff]   ;;  %v7310_v39 = vld [vmem:[#allocation34 + $0x5f4] ss:$28 sps:$4 sm:$0xff]  }
 0x818   :  { %v3868_v48 = vmax.f32 %v3864_v35, 0.0  ;;  %v8634_v52 = vpack.c.bf16 %v3867_v46, %v3867_v46  ;;  %v7305_v40 = vld [vmem:[#allocation34 + $0x5e8] ss:$28 sps:$4 sm:$0xff]   ;;  %v7308_v41 = vld [vmem:[#allocation34 + $0x5f0] ss:$28 sps:$4 sm:$0xff]  }
 0x819   :  { %v3870_v49 = vmax.f32 %v3866_v47, 0.0  ;;  %v7313_v9 = vld [vmem:[#allocation34 + $0x624] ss:$28 sps:$4 sm:$0xff]   ;;  %v7316_v42 = vld [vmem:[#allocation34 + $0x62c] ss:$28 sps:$4 sm:$0xff]  }
 0x81a   :  { %v8632_v50 = vpack.c.bf16 %v3868_v48, %v3868_v48  ;;  %v7311_v43 = vld [vmem:[#allocation34 + $0x620] ss:$28 sps:$4 sm:$0xff]   ;;  %v7314_v44 = vld [vmem:[#allocation34 + $0x628] ss:$28 sps:$4 sm:$0xff]   ;;  %v7317_v47 = vld [vmem:[#allocation34 + $0x658] ss:$28 sps:$4 sm:$0xff]  }
 0x81b   :  { %v8640_v54 = vpack.c.bf16 %v3870_v49, %v3870_v49  ;;  %v7319_v35 = vld [vmem:[#allocation34 + $0x65c] ss:$28 sps:$4 sm:$0xff]   ;;  %v7322_v46 = vld [vmem:[#allocation34 + $0x664] ss:$28 sps:$4 sm:$0xff]   ;;  %v7325_v49 = vld [vmem:[#allocation34 + $0x694] ss:$28 sps:$4 sm:$0xff]  }
 0x81c   :  { %5352 = vmatprep.mubr.bf16.mxu1 %v8632_v50  ;;  %5434 = vmatprep.mubr.bf16.mxu0 %v8632_v50  ;;  %v7320_v48 = vld [vmem:[#allocation34 + $0x660] ss:$28 sps:$4 sm:$0xff]  }
 0x81d   :  { %5353 = vmatmul.mubr.bf16.vlgmr.msra.gmra.mrb[16].mxu1 %v8634_v52  ;;  %5435 = vmatmul.mubr.bf16.vlgmr.msra.gmra.mrb[12].mxu0 %v8634_v52 }
 0x81e   :  { %5362 = vmatpush1.bf16.msra.mxu1 %v7239_v36  ;;  %5444 = vmatpush1.bf16.msra.mxu0 %v7242_v51  ;;  %v7328_v36 = vld [vmem:[#allocation34 + $0x69c] ss:$28 sps:$4 sm:$0xff]   ;;  %v7323_v51 = vld [vmem:[#allocation34 + $0x690] ss:$28 sps:$4 sm:$0xff]  }
 0x81f   :  { %5393 = vmatprep.mubr.bf16.mxu1 %v8640_v54  ;;  %5475 = vmatprep.mubr.bf16.mxu0 %v8640_v54 }
 0x820   :  { %5363 = vmatprep.subr.bf16.mxu1 %v7247_v37  ;;  %5445 = vmatprep.subr.bf16.mxu0 %v7250_v53  ;;  %v7326_v37 = vld [vmem:[#allocation34 + $0x698] ss:$28 sps:$4 sm:$0xff]   ;;  %v7331_v53 = vld [vmem:[#allocation34 + $0x6cc] ss:$28 sps:$4 sm:$0xff]  }
 0x822   :  { %5364 = vmatpush1.bf16.msra.mxu1 %v7245_v55  ;;  %5446 = vmatpush1.bf16.msra.mxu0 %v7248_v56  ;;  %v7334_v55 = vld [vmem:[#allocation34 + $0x6d4] ss:$28 sps:$4 sm:$0xff]   ;;  %v7329_v56 = vld [vmem:[#allocation34 + $0x6c8] ss:$28 sps:$4 sm:$0xff]  }
 0x823   :  { %5365 = vmatprep.subr.bf16.mxu1 %v7253_v57  ;;  %5447 = vmatprep.subr.bf16.mxu0 %v7256_v58  ;;  %v7332_v57 = vld [vmem:[#allocation34 + $0x6d0] ss:$28 sps:$4 sm:$0xff]   ;;  %v3869_v58 = vmax.f32 %v8630_v45, 0.0  ;;  %v7340_v45 = vld [vmem:[#allocation34 + $0x48] ss:$28 sps:$4 sm:$0xff]  }
 0x826   :  { %5366 = vmatpush1.bf16.msra.mxu1 %v7251_v59  ;;  %5448 = vmatpush1.bf16.msra.mxu0 %v7254_v60  ;;  %v7337_v59 = vld [vmem:[#allocation34 + $0x14] ss:$28 sps:$4 sm:$0xff]  }
 0x827   :  { %5367 = vmatprep.subr.bf16.mxu1 %v7259_v25  ;;  %5449 = vmatprep.subr.bf16.mxu0 %v7262_v22  ;;  %v7338_v60 = vld [vmem:[#allocation34 + $0x1d8] ss:$28 sps:$4 sm:$0xff]   ;;  %v7335_v25 = vld [vmem:[#allocation34 + $0x10] ss:$28 sps:$4 sm:$0xff]   ;;  %v8645_v22 = vpack.c.bf16 %v3869_v58, %v3869_v58 }
 0x828   :  { %v7404_v58 = vld [vmem:[#allocation34 + $0x4b0] ss:$28 sps:$4 sm:$0xff]  }
 0x82a   :  { %5368 = vmatpush1.bf16.msra.mxu1 %v7257_v61  ;;  %5450 = vmatpush1.bf16.msra.mxu0 %v7260_v62  ;;  %v7339_v61 = vld [vmem:[#allocation34 + $0x18] ss:$28 sps:$4 sm:$0xff]   ;;  %v7342_v62 = vld [vmem:[#allocation34 + $0x4c] ss:$28 sps:$4 sm:$0xff]  }
 0x82b   :  { %5369 = vmatprep.subr.bf16.mxu1 %v7265_v63  ;;  %5451 = vmatprep.subr.bf16.mxu0 %v7268_v0  ;;  %v7343_v63 = vld [vmem:[#allocation34 + $0x210] ss:$28 sps:$4 sm:$0xff]  }
 0x82c   :  { %v7344_v0 = vld [vmem:[#allocation34 + $0x50] ss:$28 sps:$4 sm:$0xff]  }
 0x82e   :  { %5370 = vmatpush1.bf16.msra.mxu1 %v7263_v1  ;;  %5452 = vmatpush1.bf16.msra.mxu0 %v7266_v2  ;;  %v7347_v1 = vld [vmem:[#allocation34 + $0x84] ss:$28 sps:$4 sm:$0xff]  }
 0x82f   :  { %5371 = vmatprep.subr.bf16.mxu1 %v7271_v3  ;;  %5453 = vmatprep.subr.bf16.mxu0 %v7274_v4  ;;  %v7348_v2 = vld [vmem:[#allocation34 + $0x248] ss:$28 sps:$4 sm:$0xff]   ;;  %v7345_v3 = vld [vmem:[#allocation34 + $0x80] ss:$28 sps:$4 sm:$0xff]  }
 0x830   :  { %v7349_v4 = vld [vmem:[#allocation34 + $0x88] ss:$28 sps:$4 sm:$0xff]  }
 0x832   :  { %5372 = vmatpush1.bf16.msra.mxu1 %v7269_v5  ;;  %5454 = vmatpush1.bf16.msra.mxu0 %v7272_v10  ;;  %v7352_v5 = vld [vmem:[#allocation34 + $0xbc] ss:$28 sps:$4 sm:$0xff]  }
 0x833   :  { %5373 = vmatprep.subr.bf16.mxu1 %v7277_v12  ;;  %5455 = vmatprep.subr.bf16.mxu0 %v7280_v13  ;;  %v7353_v10 = vld [vmem:[#allocation34 + $0x280] ss:$28 sps:$4 sm:$0xff]   ;;  %v7350_v12 = vld [vmem:[#allocation34 + $0xb8] ss:$28 sps:$4 sm:$0xff]  }
 0x834   :  { %v7354_v13 = vld [vmem:[#allocation34 + $0xc0] ss:$28 sps:$4 sm:$0xff]  }
 0x836   :  { %5374 = vmatpush1.bf16.msra.mxu1 %v7275_v17  ;;  %5456 = vmatpush1.bf16.msra.mxu0 %v7278_v20  ;;  %v7357_v17 = vld [vmem:[#allocation34 + $0xf4] ss:$28 sps:$4 sm:$0xff]  }
 0x837   :  { %5375 = vmatprep.subr.bf16.mxu1 %v7283_v21  ;;  %5457 = vmatprep.subr.bf16.mxu0 %v7286_v6  ;;  %v7355_v20 = vld [vmem:[#allocation34 + $0xf0] ss:$28 sps:$4 sm:$0xff]   ;;  %v7359_v21 = vld [vmem:[#allocation34 + $0xf8] ss:$28 sps:$4 sm:$0xff]  }
 0x838   :  { %v7362_v6 = vld [vmem:[#allocation34 + $0x12c] ss:$28 sps:$4 sm:$0xff]  }
 0x83a   :  { %5376 = vmatpush1.bf16.msra.mxu1 %v7281_v11  ;;  %5458 = vmatpush1.bf16.msra.mxu0 %v7284_v23  ;;  %v7363_v11 = vld [vmem:[#allocation34 + $0x2f0] ss:$28 sps:$4 sm:$0xff]   ;;  %v7360_v23 = vld [vmem:[#allocation34 + $0x128] ss:$28 sps:$4 sm:$0xff]  }
 0x83b   :  { %5377 = vmatprep.subr.bf16.mxu1 %v7289_v24  ;;  %5459 = vmatprep.subr.bf16.mxu0 %v7292_v26  ;;  %v7364_v24 = vld [vmem:[#allocation34 + $0x130] ss:$28 sps:$4 sm:$0xff]   ;;  %v7367_v26 = vld [vmem:[#allocation34 + $0x164] ss:$28 sps:$4 sm:$0xff]  }
 0x83e   :  { %5378 = vmatpush1.bf16.msra.mxu1 %v7287_v7  ;;  %5460 = vmatpush1.bf16.msra.mxu0 %v7290_v27  ;;  %v7368_v7 = vld [vmem:[#allocation34 + $0x328] ss:$28 sps:$4 sm:$0xff]   ;;  %v7365_v27 = vld [vmem:[#allocation34 + $0x160] ss:$28 sps:$4 sm:$0xff]  }
 0x83f   :  { %5379 = vmatprep.subr.bf16.mxu1 %v7295_v28  ;;  %5461 = vmatprep.subr.bf16.mxu0 %v7298_v29  ;;  %v7369_v28 = vld [vmem:[#allocation34 + $0x168] ss:$28 sps:$4 sm:$0xff]   ;;  %v7372_v29 = vld [vmem:[#allocation34 + $0x19c] ss:$28 sps:$4 sm:$0xff]  }
 0x842   :  { %5380 = vmatpush1.bf16.msra.mxu1 %v7293_v30  ;;  %5462 = vmatpush1.bf16.msra.mxu0 %v7296_v31  ;;  %v7373_v30 = vld [vmem:[#allocation34 + $0x360] ss:$28 sps:$4 sm:$0xff]   ;;  %v7370_v31 = vld [vmem:[#allocation34 + $0x198] ss:$28 sps:$4 sm:$0xff]  }
 0x843   :  { %5381 = vmatprep.subr.bf16.mxu1 %v7301_v32  ;;  %5463 = vmatprep.subr.bf16.mxu0 %v7304_v8  ;;  %v7374_v32 = vld [vmem:[#allocation34 + $0x1a0] ss:$28 sps:$4 sm:$0xff]   ;;  %v7377_v8 = vld [vmem:[#allocation34 + $0x1d4] ss:$28 sps:$4 sm:$0xff]  }
 0x846   :  { %5382 = vmatpush1.bf16.msra.mxu1 %v7299_v33  ;;  %5464 = vmatpush1.bf16.msra.mxu0 %v7302_v34  ;;  %v7378_v33 = vld [vmem:[#allocation34 + $0x558] ss:$28 sps:$4 sm:$0xff]   ;;  %v7375_v34 = vld [vmem:[#allocation34 + $0x1d0] ss:$28 sps:$4 sm:$0xff]  }
 0x847   :  { %5383 = vmatprep.subr.bf16.mxu1 %v7307_v38  ;;  %5465 = vmatprep.subr.bf16.mxu0 %v7310_v39  ;;  %v7379_v38 = vld [vmem:[#allocation34 + $0x398] ss:$28 sps:$4 sm:$0xff]   ;;  %v7382_v39 = vld [vmem:[#allocation34 + $0x20c] ss:$28 sps:$4 sm:$0xff]  }
 0x84a   :  { %5384 = vmatpush1.bf16.msra.mxu1 %v7305_v40  ;;  %5466 = vmatpush1.bf16.msra.mxu0 %v7308_v41  ;;  %v7383_v40 = vld [vmem:[#allocation34 + $0x590] ss:$28 sps:$4 sm:$0xff]   ;;  %v7380_v41 = vld [vmem:[#allocation34 + $0x208] ss:$28 sps:$4 sm:$0xff]  }
 0x84b   :  { %5385 = vmatprep.subr.bf16.mxu1 %v7313_v9  ;;  %5467 = vmatprep.subr.bf16.mxu0 %v7316_v42  ;;  %v7384_v9 = vld [vmem:[#allocation34 + $0x3d0] ss:$28 sps:$4 sm:$0xff]   ;;  %v7387_v42 = vld [vmem:[#allocation34 + $0x244] ss:$28 sps:$4 sm:$0xff]  }
 0x84e   :  { %5386 = vmatpush1.bf16.msra.mxu1 %v7311_v43  ;;  %5468 = vmatpush1.bf16.msra.mxu0 %v7314_v44  ;;  %v7388_v43 = vld [vmem:[#allocation34 + $0x5c8] ss:$28 sps:$4 sm:$0xff]   ;;  %v7385_v44 = vld [vmem:[#allocation34 + $0x240] ss:$28 sps:$4 sm:$0xff]  }
 0x84f   :  { %5387 = vmatprep.subr.bf16.mxu1 %v7319_v35  ;;  %5469 = vmatprep.subr.bf16.mxu0 %v7322_v46  ;;  %v7389_v35 = vld [vmem:[#allocation34 + $0x408] ss:$28 sps:$4 sm:$0xff]   ;;  %v7392_v46 = vld [vmem:[#allocation34 + $0x27c] ss:$28 sps:$4 sm:$0xff]  }
 0x852   :  { %5388 = vmatpush1.bf16.msra.mxu1 %v7317_v47  ;;  %5470 = vmatpush1.bf16.msra.mxu0 %v7320_v48  ;;  %v7393_v47 = vld [vmem:[#allocation34 + $0x600] ss:$28 sps:$4 sm:$0xff]   ;;  %v7390_v48 = vld [vmem:[#allocation34 + $0x278] ss:$28 sps:$4 sm:$0xff]  }
 0x853   :  { %5389 = vmatprep.subr.bf16.mxu1 %v7325_v49  ;;  %5471 = vmatprep.subr.bf16.mxu0 %v7328_v36  ;;  %v7394_v49 = vld [vmem:[#allocation34 + $0x440] ss:$28 sps:$4 sm:$0xff]   ;;  %v7397_v36 = vld [vmem:[#allocation34 + $0x2b4] ss:$28 sps:$4 sm:$0xff]  }
 0x856   :  { %5390 = vmatpush1.bf16.msra.mxu1 %v7323_v51  ;;  %5472 = vmatpush1.bf16.msra.mxu0 %v7326_v37  ;;  %v7398_v51 = vld [vmem:[#allocation34 + $0x638] ss:$28 sps:$4 sm:$0xff]   ;;  %v7395_v37 = vld [vmem:[#allocation34 + $0x2b0] ss:$28 sps:$4 sm:$0xff]  }
 0x857   :  { %5391 = vmatprep.subr.bf16.mxu1 %v7331_v53  ;;  %5473 = vmatprep.subr.bf16.mxu0 %v7334_v55  ;;  %v7399_v53 = vld [vmem:[#allocation34 + $0x478] ss:$28 sps:$4 sm:$0xff]   ;;  %v7402_v55 = vld [vmem:[#allocation34 + $0x2ec] ss:$28 sps:$4 sm:$0xff]  }
 0x85a   :  { %5392 = vmatpush1.bf16.msra.mxu1 %v7329_v56  ;;  %5474 = vmatpush1.bf16.msra.mxu0 %v7332_v57  ;;  %v7403_v56 = vld [vmem:[#allocation34 + $0x670] ss:$28 sps:$4 sm:$0xff]   ;;  %v7400_v57 = vld [vmem:[#allocation34 + $0x2e8] ss:$28 sps:$4 sm:$0xff]  }
 0x85b   :  { %5484 = vmatprep.subr.bf16.mxu1 %v7337_v59  ;;  %6408 = vmatprep.subr.bf16.mxu0 %v7338_v60  ;;  %v7407_v59 = vld [vmem:[#allocation34 + $0x324] ss:$28 sps:$4 sm:$0xff]  }
 0x85c   :  { %v7408_v60 = vld [vmem:[#allocation34 + $0x6a8] ss:$28 sps:$4 sm:$0xff]  }
 0x85d   :  { %5394 = vmatmul.mubr.bf16.vlgmr.msra.gmra.mrb[16].mxu1 %v8645_v22  ;;  %5476 = vmatmul.mubr.bf16.vlgmr.msra.gmra.mrb[12].mxu0 %v8645_v22 }
 0x85e   :  { %5485 = vmatpush1.bf16.msra.mxu1 %v7335_v25  ;;  %5516 = vmatprep.mubr.bf16.mxu1 %v8632_v50  ;;  %v7405_v25 = vld [vmem:[#allocation34 + $0x320] ss:$28 sps:$4 sm:$0xff]  }
 0x85f   :  { %6409 = vmatpush3.bf16.msra.mxu0 %v7339_v61  ;;  %5598 = vmatprep.mubr.bf16.mxu0 %v8632_v50  ;;  %v7358_v50 = vld [vmem:[#allocation34 + $0x2b8] ss:$28 sps:$4 sm:$0xff]   ;;  %v7409_v61 = vld [vmem:[#allocation34 + $0x4e8] ss:$28 sps:$4 sm:$0xff]  }
 0x860   :  { %5486 = vmatprep.subr.bf16.mxu1 %v7342_v62  ;;  %6410 = vmatprep.subr.bf16.mxu0 %v7343_v63  ;;  %v7412_v62 = vld [vmem:[#allocation34 + $0x35c] ss:$28 sps:$4 sm:$0xff]  }
 0x861   :  { %v7413_v63 = vld [vmem:[#allocation34 + $0x6e0] ss:$28 sps:$4 sm:$0xff]  }
 0x862   :  { %5487 = vmatpush1.bf16.msra.mxu1 %v7340_v45  ;;  %v7410_v45 = vld [vmem:[#allocation34 + $0x358] ss:$28 sps:$4 sm:$0xff]  }
 0x863   :  { %6411 = vmatpush3.bf16.msra.mxu0 %v7344_v0  ;;  %5488 = vmatprep.subr.bf16.mxu1 %v7347_v1  ;;  %v7414_v0 = vld [vmem:[#allocation34 + $0x520] ss:$28 sps:$4 sm:$0xff]   ;;  %v7417_v1 = vld [vmem:[#allocation34 + $0x394] ss:$28 sps:$4 sm:$0xff]  }
 0x864   :  { %6412 = vmatprep.subr.bf16.mxu0 %v7348_v2  ;;  %v7415_v2 = vld [vmem:[#allocation34 + $0x390] ss:$28 sps:$4 sm:$0xff]  }
 0x866   :  { %5489 = vmatpush1.bf16.msra.mxu1 %v7345_v3  ;;  %v7420_v3 = vld [vmem:[#allocation34 + $0x3cc] ss:$28 sps:$4 sm:$0xff]  }
 0x867   :  { %6413 = vmatpush3.bf16.msra.mxu0 %v7349_v4  ;;  %5490 = vmatprep.subr.bf16.mxu1 %v7352_v5  ;;  %v7418_v4 = vld [vmem:[#allocation34 + $0x3c8] ss:$28 sps:$4 sm:$0xff]  }
 0x868   :  { %6414 = vmatprep.subr.bf16.mxu0 %v7353_v10  ;;  %v7423_v5 = vld [vmem:[#allocation34 + $0x404] ss:$28 sps:$4 sm:$0xff]  }
 0x869   :  { %v7421_v10 = vld [vmem:[#allocation34 + $0x400] ss:$28 sps:$4 sm:$0xff]  }
 0x86a   :  { %5491 = vmatpush1.bf16.msra.mxu1 %v7350_v12  ;;  %v7426_v12 = vld [vmem:[#allocation34 + $0x43c] ss:$28 sps:$4 sm:$0xff]  }
 0x86b   :  { %6415 = vmatpush3.bf16.msra.mxu0 %v7354_v13  ;;  %5492 = vmatprep.subr.bf16.mxu1 %v7357_v17  ;;  %v7424_v13 = vld [vmem:[#allocation34 + $0x438] ss:$28 sps:$4 sm:$0xff]  }
 0x86c   :  { %6416 = vmatprep.subr.bf16.mxu0 %v7358_v50  ;;  %v7429_v17 = vld [vmem:[#allocation34 + $0x474] ss:$28 sps:$4 sm:$0xff]  }
 0x86d   :  { %v7427_v50 = vld [vmem:[#allocation34 + $0x470] ss:$28 sps:$4 sm:$0xff]  }
 0x86e   :  { %5493 = vmatpush1.bf16.msra.mxu1 %v7355_v20  ;;  %v7430_v20 = vld [vmem:[#allocation34 + $0x4a8] ss:$28 sps:$4 sm:$0xff]  }
 0x86f   :  { %6417 = vmatpush3.bf16.msra.mxu0 %v7359_v21  ;;  %5494 = vmatprep.subr.bf16.mxu1 %v7362_v6  ;;  %v7435_v21 = vld [vmem:[#allocation34 + $0x4e4] ss:$28 sps:$4 sm:$0xff]   ;;  %v7438_v6 = vld [vmem:[#allocation34 + $0x51c] ss:$28 sps:$4 sm:$0xff]  }
 0x870   :  { %6418 = vmatprep.subr.bf16.mxu0 %v7363_v11  ;;  %v7436_v11 = vld [vmem:[#allocation34 + $0x518] ss:$28 sps:$4 sm:$0xff]  }
 0x872   :  { %5495 = vmatpush1.bf16.msra.mxu1 %v7360_v23  ;;  %v7441_v23 = vld [vmem:[#allocation34 + $0x554] ss:$28 sps:$4 sm:$0xff]  }
 0x873   :  { %6419 = vmatpush3.bf16.msra.mxu0 %v7364_v24  ;;  %5496 = vmatprep.subr.bf16.mxu1 %v7367_v26  ;;  %v7439_v24 = vld [vmem:[#allocation34 + $0x550] ss:$28 sps:$4 sm:$0xff]  }
 0x874   :  { %6420 = vmatprep.subr.bf16.mxu0 %v7368_v7  ;;  %v7444_v26 = vld [vmem:[#allocation34 + $0x58c] ss:$28 sps:$4 sm:$0xff]  }
 0x875   :  { %v7442_v7 = vld [vmem:[#allocation34 + $0x588] ss:$28 sps:$4 sm:$0xff]  }
 0x876   :  { %5497 = vmatpush1.bf16.msra.mxu1 %v7365_v27  ;;  %v7447_v27 = vld [vmem:[#allocation34 + $0x5c4] ss:$28 sps:$4 sm:$0xff]  }
 0x877   :  { %6421 = vmatpush3.bf16.msra.mxu0 %v7369_v28  ;;  %5498 = vmatprep.subr.bf16.mxu1 %v7372_v29  ;;  %v7445_v28 = vld [vmem:[#allocation34 + $0x5c0] ss:$28 sps:$4 sm:$0xff]  }
 0x878   :  { %6422 = vmatprep.subr.bf16.mxu0 %v7373_v30  ;;  %v7450_v29 = vld [vmem:[#allocation34 + $0x5fc] ss:$28 sps:$4 sm:$0xff]  }
 0x879   :  { %v7448_v30 = vld [vmem:[#allocation34 + $0x5f8] ss:$28 sps:$4 sm:$0xff]  }
 0x87a   :  { %5499 = vmatpush1.bf16.msra.mxu1 %v7370_v31  ;;  %v7453_v31 = vld [vmem:[#allocation34 + $0x634] ss:$28 sps:$4 sm:$0xff]  }
 0x87b   :  { %6423 = vmatpush3.bf16.msra.mxu0 %v7374_v32  ;;  %5500 = vmatprep.subr.bf16.mxu1 %v7377_v8  ;;  %v7451_v32 = vld [vmem:[#allocation34 + $0x630] ss:$28 sps:$4 sm:$0xff]  }
 0x87c   :  { %6430 = vmatprep.subr.bf16.mxu0 %v7378_v33  ;;  %v7456_v8 = vld [vmem:[#allocation34 + $0x66c] ss:$28 sps:$4 sm:$0xff]  }
 0x87d   :  { %v7454_v33 = vld [vmem:[#allocation34 + $0x668] ss:$28 sps:$4 sm:$0xff]  }
 0x87e   :  { %5599 = vmatmul.mubr.bf16.vlgmr.msra.gmra.mrb[16].mxu0 %v8634_v52  ;;  %5501 = vmatpush1.bf16.msra.mxu1 %v7375_v34  ;;  %v7459_v34 = vld [vmem:[#allocation34 + $0x6a4] ss:$28 sps:$4 sm:$0xff]  }
 0x87f   :  { %6431 = vmatpush3.bf16.msra.mxu0 %v7379_v38  ;;  %5638 = vmatprep.mubr.bf16.mxu0 %v8640_v54  ;;  %v7457_v38 = vld [vmem:[#allocation34 + $0x6a0] ss:$28 sps:$4 sm:$0xff]  }
 0x880   :  { %5502 = vmatprep.subr.bf16.mxu1 %v7382_v39  ;;  %6432 = vmatprep.subr.bf16.mxu0 %v7383_v40  ;;  %v7462_v39 = vld [vmem:[#allocation34 + $0x6dc] ss:$28 sps:$4 sm:$0xff]  }
 0x881   :  { %v7460_v40 = vld [vmem:[#allocation34 + $0x6d8] ss:$28 sps:$4 sm:$0xff]  }
 0x882   :  { %5503 = vmatpush1.bf16.msra.mxu1 %v7380_v41  ;;  %v8657_v41 = vld [vmem:[#allocation35] sm:$0xff] }
 0x883   :  { %6433 = vmatpush3.bf16.msra.mxu0 %v7384_v9  ;;  %5504 = vmatprep.subr.bf16.mxu1 %v7387_v42  ;;  %v4136_v9 = vrot.slane %v8657_v41, %v8542_v15  ;;  %v4144_v42 = vrot.slane %v8657_v41, %v8545_v16 }
 0x884   :  { %6434 = vmatprep.subr.bf16.mxu0 %v7388_v43  ;;  %v4140_v43 = vrot.slane %v8657_v41, %v8548_v18 }
 0x886   :  { %5505 = vmatpush1.bf16.msra.mxu1 %v7385_v44  ;;  %v4148_v44 = vrot.slane %v8657_v41, %v8551_v19 }
 0x887   :  { %6435 = vmatpush3.bf16.msra.mxu0 %v7389_v35  ;;  %5506 = vmatprep.subr.bf16.mxu1 %v7392_v46 }
 0x888   :  { %6436 = vmatprep.subr.bf16.mxu0 %v7393_v47 }
 0x88a   :  { %5507 = vmatpush1.bf16.msra.mxu1 %v7390_v48 }
 0x88b   :  { %6437 = vmatpush3.bf16.msra.mxu0 %v7394_v49  ;;  %5508 = vmatprep.subr.bf16.mxu1 %v7397_v36 }
 0x88c   :  { %6438 = vmatprep.subr.bf16.mxu0 %v7398_v51 }
 0x88e   :  { %5509 = vmatpush1.bf16.msra.mxu1 %v7395_v37 }
 0x88f   :  { %6439 = vmatpush3.bf16.msra.mxu0 %v7399_v53  ;;  %5510 = vmatprep.subr.bf16.mxu1 %v7402_v55 }
 0x890   :  { %6440 = vmatprep.subr.bf16.mxu0 %v7403_v56 }
 0x892   :  { %5511 = vmatpush1.bf16.msra.mxu1 %v7400_v57 }
 0x893   :  { %6441 = vmatpush3.bf16.msra.mxu0 %v7404_v58  ;;  %5512 = vmatprep.subr.bf16.mxu1 %v7407_v59 }
 0x894   :  { %6442 = vmatprep.subr.bf16.mxu0 %v7408_v60 }
 0x896   :  { %5513 = vmatpush1.bf16.msra.mxu1 %v7405_v25 }
 0x897   :  { %6443 = vmatpush3.bf16.msra.mxu0 %v7409_v61  ;;  %5514 = vmatprep.subr.bf16.mxu1 %v7412_v62 }
 0x898   :  { %6444 = vmatprep.subr.bf16.mxu0 %v7413_v63 }
 0x89a   :  { %5515 = vmatpush1.bf16.msra.mxu1 %v7410_v45 }
 0x89b   :  { %6445 = vmatpush3.bf16.msra.mxu0 %v7414_v0  ;;  %5525 = vmatprep.subr.bf16.mxu1 %v7417_v1 }
 0x89d   :  { %5517 = vmatmul.mubr.bf16.vlgmr.msra.gmra.mrb[20].mxu1 %v8634_v52  ;;  %v7432_v52 = vld [vmem:[#allocation34 + $0x4ac] ss:$28 sps:$4 sm:$0xff]  }
 0x89e   :  { %5639 = vmatmul.mubr.bf16.vlgmr.msra.gmra.mrb[20].mxu0 %v8645_v22  ;;  %5526 = vmatpush1.bf16.msra.mxu1 %v7415_v2 }
 0x89f   :  { %5557 = vmatprep.mubr.bf16.mxu1 %v8640_v54  ;;  %5527 = vmatprep.subr.bf16.mxu1 %v7420_v3  ;;  %v7433_v54 = vld [vmem:[#allocation34 + $0x4e0] ss:$28 sps:$4 sm:$0xff]  }
 0x8a2   :  { %5528 = vmatpush1.bf16.msra.mxu1 %v7418_v4 }
 0x8a3   :  { %5529 = vmatprep.subr.bf16.mxu1 %v7423_v5 }
 0x8a6   :  { %5530 = vmatpush1.bf16.msra.mxu1 %v7421_v10 }
 0x8a7   :  { %5531 = vmatprep.subr.bf16.mxu1 %v7426_v12 }
 0x8aa   :  { %5532 = vmatpush1.bf16.msra.mxu1 %v7424_v13 }
 0x8ab   :  { %5533 = vmatprep.subr.bf16.mxu1 %v7429_v17 }
 0x8ae   :  { %5534 = vmatpush1.bf16.msra.mxu1 %v7427_v50 }
 0x8af   :  { %5535 = vmatprep.subr.bf16.mxu1 %v7432_v52 }
 0x8b2   :  { %5536 = vmatpush1.bf16.msra.mxu1 %v7430_v20 }
 0x8b3   :  { %5537 = vmatprep.subr.bf16.mxu1 %v7435_v21 }
 0x8b6   :  { %5538 = vmatpush1.bf16.msra.mxu1 %v7433_v54 }
 0x8b7   :  { %5539 = vmatprep.subr.bf16.mxu1 %v7438_v6 }
 0x8ba   :  { %5540 = vmatpush1.bf16.msra.mxu1 %v7436_v11 }
 0x8bb   :  { %5541 = vmatprep.subr.bf16.mxu1 %v7441_v23 }
 0x8be   :  { %5542 = vmatpush1.bf16.msra.mxu1 %v7439_v24 }
 0x8bf   :  { %5543 = vmatprep.subr.bf16.mxu1 %v7444_v26 }
 0x8c2   :  { %5544 = vmatpush1.bf16.msra.mxu1 %v7442_v7 }
 0x8c3   :  { %5545 = vmatprep.subr.bf16.mxu1 %v7447_v27 }
 0x8c6   :  { %5546 = vmatpush1.bf16.msra.mxu1 %v7445_v28 }
 0x8c7   :  { %5547 = vmatprep.subr.bf16.mxu1 %v7450_v29 }
 0x8ca   :  { %5548 = vmatpush1.bf16.msra.mxu1 %v7448_v30 }
 0x8cb   :  { %5549 = vmatprep.subr.bf16.mxu1 %v7453_v31 }
 0x8ce   :  { %5550 = vmatpush1.bf16.msra.mxu1 %v7451_v32 }
 0x8cf   :  { %5551 = vmatprep.subr.bf16.mxu1 %v7456_v8 }
 0x8d2   :  { %5552 = vmatpush1.bf16.msra.mxu1 %v7454_v33 }
 0x8d3   :  { %5553 = vmatprep.subr.bf16.mxu1 %v7459_v34 }
 0x8d6   :  { %5554 = vmatpush1.bf16.msra.mxu1 %v7457_v38 }
 0x8d7   :  { %5555 = vmatprep.subr.bf16.mxu1 %v7462_v39 }
 0x8da   :  { %5556 = vmatpush1.bf16.msra.mxu1 %v7460_v40 }
 0x8dd   :  { %5558 = vmatmul.mubr.bf16.vlgmr.msra.gmra.mrb[20].mxu1 %v8645_v22 }
 0x930   :  { %v5395_v35 = vpop.f32.mrb[16].mxu1  ;;  %v5477_v46 = vpop.f32.mrb[12].mxu0 }
 0x931   :  { %v6458_v47 = vadd.f32 %v5395_v35, %v4136_v9  ;;  %v6460_v48 = vadd.f32 %v5477_v46, %v4144_v42  ;;  %v5397_v49 = vpop.f32.mrb[17].mxu1  ;;  %v5479_v22 = vpop.f32.mrb[13].mxu0 }
 0x932   :  { %v6459_v36 = vadd.f32 %v5397_v49, %v4140_v43  ;;  %v6461_v51 = vadd.f32 %v5479_v22, %v4148_v44  ;;  %v5399_v37 = vpop.f32.mrb[18].mxu1  ;;  %v5481_v53 = vpop.f32.mrb[14].mxu0 }
 0x933   :  { %v6393_v15 = vmul.f32 -1.442695, %v6458_v47  ;;  %v6395_v55 = vmul.f32 -1.442695, %v6460_v48  ;;  %v5400_v56 = vpop.f32.mrb[19].mxu1  ;;  %v5482_v16 = vpop.f32.mrb[15].mxu0 }
 0x934   :  { %v6394_v57 = vmul.f32 -1.442695, %v6459_v36  ;;  %v6396_v58 = vmul.f32 -1.442695, %v6461_v51 }
 0x935   :  { %7489 = vpow2.f32 %v6393_v15 }
 0x936   :  { %7491 = vpow2.f32 %v6395_v55 }
 0x937   :  { %7493 = vpow2.f32 %v6394_v57 }
 0x938   :  { %7495 = vpow2.f32 %v6396_v58 }
 0x93f   :  { %v7490_v18 = vpop.eup %7489 }
 0x940   :  { %v7492_v19 = vpop.eup %7491  ;;  %v5667_v59 = vadd.f32 1.0, %v7490_v18 }
 0x941   :  { %v7494_v60 = vpop.eup %7493  ;;  %v5669_v25 = vadd.f32 1.0, %v7492_v19 }
 0x942   :  { %v7496_v61 = vpop.eup %7495  ;;  %7497 = vrcp.f32 %v5667_v59  ;;  %v5668_v62 = vadd.f32 1.0, %v7494_v60 }
 0x943   :  { %7499 = vrcp.f32 %v5669_v25  ;;  %v5670_v63 = vadd.f32 1.0, %v7496_v61 }
 0x944   :  { %7501 = vrcp.f32 %v5668_v62 }
 0x945   :  { %7503 = vrcp.f32 %v5670_v63 }
 0x94c   :  { %v7498_v45 = vpop.eup %7497 }
 0x94d   :  { %v7500_v0 = vpop.eup %7499 }
 0x94e   :  { %v7502_v1 = vpop.eup %7501 }
 0x94f   :  { %v7504_v2 = vpop.eup %7503  ;;  %v6404_v3 = vpack.c.bf16 %v7502_v1, %v7498_v45 }
 0x950   :  { %v6405_v4 = vpack.c.bf16 %v7504_v2, %v7500_v0 }
 0x951   :  { %v6424_v5 = vpop.f32.mrb[16].mxu0  ;;  %5717 = vst [vmem:[#allocation37] sm:$0xff] %v6404_v3 }
 0x952   :  { %v6425_v10 = vpop.f32.mrb[17].mxu0  ;;  %5718 = vst [vmem:[#allocation37 + $0x8] sm:$0xff] %v6405_v4 }
 0x953   :  { %v6426_v12 = vadd.f32 %v6425_v10, %v6424_v5  ;;  %v6427_v13 = vpop.f32.mrb[18].mxu0 }
 0x954   :  { %8012 = shalt.err (!%p8009_p12)
}
 0x955   :  { %s8013_s4 = scalar_lea.hbm %s8720_s23, 256 }
 0x956   :  { %p8014_p13 = scmp.ne.s32.totalorder %s8720_s23, %s8013_s4  ;;  %p8017_p0 = scmp.lt.u32.totalorder %s8013_s4, %s8720_s23 }
 0x958   :  { %p8019_p1 = pnand %p8017_p0, %p8014_p13 }
 0x95a   :  { %8022 = shalt.err (!%p8019_p1)
}
 0x95b   :  { %5740 = dma.vmem_to_hbm [thread:$0]  %s5738_s16, 256, %s8720_s23, [#allocation39]   ;;  %v6428_v17 = vpop.f32.mrb[19].mxu0  ;;  %v4159_v50 = vsub.s32 6, %v8539_v14  ;;  %v4151_v30 = vsub.s32 4, %v8539_v14  ;;  %v4155_v31 = vsub.s32 5, %v8539_v14 }
 0x95c   :  { %s8104_s23 = smov [#allocation37]  }
 0x95d   :  { %v4160_v52 = vrot.slane %v8657_v41, %v4159_v50  ;;  %v4152_v32 = vrot.slane %v8657_v41, %v4151_v30  ;;  %v4156_v8 = vrot.slane %v8657_v41, %v4155_v31  ;;  %s5727_s19 = sshll.u32 %s8104_s23, 4  ;;  %s5728_s19 = int_to_ptr.vmem [resolvable:$true] %s5727_s19 }
 0x95e   :  { %s8023_s18 = scalar_lea.vmem %s5728_s19, 448  ;;  %p8028_p3 = scmp.lt.s32.totalorder %s5728_s19, %s5728_s19 }
 0x95f   :  { %v5601_v54 = vadd.f32 %v6426_v12, %v4160_v52  ;;  %p8024_p2 = scmp.ne.s32.totalorder %s5728_s19, %s8023_s18  ;;  %p8029_p4 = scmp.lt.s32.totalorder %s8023_s18, %s8023_s18 }
 0x961   :  { %p8030_p5 = por %p8029_p4, %p8028_p3 }
 0x963   :  { %p8031_p6 = pnand %p8030_p5, %p8024_p2 }
 0x971   :  { %v6446_v20 = vpop.f32.mrb[20].mxu0 }
 0x972   :  { %v6447_v21 = vpop.f32.mrb[21].mxu0 }
 0x973   :  { %v6448_v6 = vadd.f32 %v6447_v21, %v6446_v20  ;;  %v6449_v11 = vpop.f32.mrb[22].mxu0 }
 0x974   :  { %v6450_v23 = vpop.f32.mrb[23].mxu0 }
 0x975   :  { %v5641_v24 = vadd.f32 %v6448_v6, %v5601_v54 }
 0x977   :  { %v6399_v26 = vmul.f32 -1.442695, %v5641_v24 }
 0x979   :  { %7505 = vpow2.f32 %v6399_v26 }
 0x983   :  { %v7506_v7 = vpop.eup %7505 }
 0x984   :  { %v5673_v27 = vadd.f32 1.0, %v7506_v7 }
 0x986   :  { %7507 = vrcp.f32 %v5673_v27 }
 0x990   :  { %v7508_v28 = vpop.eup %7507 }
 0x991   :  { %v6407_v29 = vpack.c.bf16 %v7508_v28, %v7508_v28 }
 0x993   :  { %5720 = vst [vmem:[#allocation37 + $0x18] sm:$0xf] %v6407_v29 }
 0x9b0   :  { %v5559_v33 = vpop.f32.mrb[20].mxu1 }
 0x9b1   :  { %v6462_v34 = vadd.f32 %v5559_v33, %v4152_v32  ;;  %v5561_v38 = vpop.f32.mrb[21].mxu1 }
 0x9b2   :  { %v6463_v39 = vadd.f32 %v5561_v38, %v4156_v8  ;;  %v5563_v40 = vpop.f32.mrb[22].mxu1 }
 0x9b3   :  { %v6397_v9 = vmul.f32 -1.442695, %v6462_v34  ;;  %v5564_v42 = vpop.f32.mrb[23].mxu1 }
 0x9b4   :  { %v6398_v43 = vmul.f32 -1.442695, %v6463_v39 }
 0x9b5   :  { %7509 = vpow2.f32 %v6397_v9 }
 0x9b6   :  { %7511 = vpow2.f32 %v6398_v43 }
 0x9bf   :  { %v7510_v44 = vpop.eup %7509 }
 0x9c0   :  { %v7512_v35 = vpop.eup %7511  ;;  %v5671_v46 = vadd.f32 1.0, %v7510_v44 }
 0x9c1   :  { %v5672_v47 = vadd.f32 1.0, %v7512_v35 }
 0x9c2   :  { %7513 = vrcp.f32 %v5671_v46 }
 0x9c3   :  { %7515 = vrcp.f32 %v5672_v47 }
 0x9cc   :  { %v7514_v14 = vpop.eup %7513 }
 0x9cd   :  { %v7516_v41 = vpop.eup %7515 }
 0x9ce   :  { %v6406_v48 = vpack.c.bf16 %v7516_v41, %v7514_v14 }
 0x9d0   :  { %5719 = vst [vmem:[#allocation37 + $0x10] sm:$0xff] %v6406_v48 }
 0x9d1   :  { %8034 = shalt.err (!%p8031_p6)
}
 0x9d2   :  { %s8747_s10 = sld [smem:[#allocation62_spill]] }
 0x9d8   :  { %s8035_s29 = scalar_lea.hbm %s8747_s10, 448 }
 0x9d9   :  { %p8036_p7 = scmp.ne.s32.totalorder %s8747_s10, %s8035_s29  ;;  %p8039_p8 = scmp.lt.u32.totalorder %s8035_s29, %s8747_s10 }
 0x9db   :  { %p8041_p9 = pnand %p8039_p8, %p8036_p7 }
 0x9dd   :  { %8044 = shalt.err (!%p8041_p9)
}
 0x9de   :  { %5730 = dma.vmem_to_hbm [thread:$0]  %s5728_s19, 448, %s8747_s10, [#allocation4]  }
 0x9df   :  { %8069 = dma.done.wait [#allocation4], 448  }
 0x9e0   :  { %8070 = vsyncadd [#allocation4], 4294966848 }
 0x9e1   :  { %8071 = dma.done.wait [#allocation39], 256  }
 0x9e2   :  { %8072 = vsyncadd [#allocation39], 4294967040 }
 0x9e3   :  { %5747 = vsyncpa [#allocation3], 1 }
 0x9e4   :  { %5748 = vsyncpa [#allocation6], 1 }
 0x9e5   :  { %5749 = vsyncpa [#allocation9], 1 }
 0x9e6   :  { %5750 = vsyncpa [#allocation12], 1 }
 0x9e7   :  { %5751 = vsyncpa [#allocation15], 1 }
 0x9e8   :  { %5752 = vsyncpa [#allocation18], 1 }
 0x9e9   :  { %5753 = vsyncpa [#allocation21], 1 }
 0x9ea   :  { %5754 = vsyncpa [#allocation24], 1 }
 0x9eb   :  { %5755 = vsyncpa [#allocation27], 1 }
 0x9ec   :  { %5756 = vsyncpa [#allocation30], 1 }
 0x9ed   :  { %5757 = vsyncpa [#allocation33], 1 }
 0x9ee   :  { %5758 = vsyncpa [#allocation36], 1 }
 0x9ef   :  { %5759 = vsyncpa [#allocation4], 1 }
 0x9f0   :  { %5760 = vsyncpa [#allocation39], 1 }

</bundles_post_ra>
